<compile_context>
chip_gen: v5e
topology: v5e:2x2
jax: 0.10.0
libtpu: 0.0.40
codegen_flags: <defaults>
</compile_context>

<pallas_src>
import math
import functools

import jax
import jax.numpy as jnp
from jax.experimental import pallas as pl
from jax.experimental.pallas import tpu as pltpu

EXPANSION = 2          # Bottleneck.expansion
SEPARABLE_ALL = False  # Bottleneck conv1/conv3 are 1x1 convolutions
EPS = 1e-5


# ------------------------------ sublane-roll probe ------------------------------

_ROLL_SIGN = None  # +1 / -1: supported (with that shift convention); 0: unsupported


def _sublane_roll_sign():
    """One-time probe: does pltpu.roll work on the sublane axis, and with which
    shift convention?  Guards both lowering support and direction."""
    global _ROLL_SIGN
    if _ROLL_SIGN is not None:
        return _ROLL_SIGN

    def _probe_kernel(x_ref, o_ref):
        o_ref[...] = pltpu.roll(x_ref[...], shift=1, axis=0)

    sign = 0
    try:
        x = jnp.arange(64 * 8, dtype=jnp.float32).reshape(64, 8)
        y = pl.pallas_call(
            _probe_kernel,
            out_shape=jax.ShapeDtypeStruct((64, 8), jnp.float32),
        )(x)
        if bool(jnp.array_equal(y, jnp.roll(x, 1, axis=0))):
            sign = 1        # result[i] = x[i-1]  (jnp.roll convention)
        elif bool(jnp.array_equal(y, jnp.roll(x, -1, axis=0))):
            sign = -1       # opposite convention
    except Exception:
        sign = 0
    _ROLL_SIGN = sign
    return sign


# ------------------------------ fused Bottleneck kernel ------------------------------

def _bottleneck_kernel(x_ref, xt_ref, xb_ref,
                       s1_ref, sh1_ref, w1_ref, b1_ref, wp_ref, shp_ref,
                       wdw_ref, shdw_ref, s3_ref, sh3_ref, w3_ref, b3_ref,
                       o_ref,
                       x1buf_ref,
                       *, w_img, g, roll_sign, has_halo):
    """Whole Bottleneck on one (TH*W, C) row tile (channels-last, spatially flattened)."""
    rows, cexp = x_ref.shape                 # rows = TH * W  (multiple of 8)
    cinit = wp_ref.shape[1]
    halo = rows + 2 * w_img                  # tile + one image row above and below

    s1, sh1 = s1_ref[...], sh1_ref[...]
    w1, b1 = w1_ref[...], b1_ref[...]        # w1 is bf16
    wp, shp = wp_ref[...], shp_ref[...]      # wp is bf16 (BN scale folded)

    def front(v):
        # bn1 -> relu (f32 VPU), conv1 1x1 + bias, ghost primary 1x1 + BN shift -> relu
        hh = jnp.maximum(v * s1 + sh1, 0.0)
        hh = jnp.dot(hh.astype(jnp.bfloat16), w1,
                     preferred_element_type=jnp.float32) + b1
        return jnp.maximum(
            jnp.dot(hh.astype(jnp.bfloat16), wp,
                    preferred_element_type=jnp.float32) + shp, 0.0)

    # ---- front on the main rows (no staging of x through VMEM scratch) -------------
    x_main = x_ref[...]                      # (rows, cexp), also the residual
    x1_main = front(x_main)                  # (rows, cinit)

    # ---- front on the two halo rows (zeroed when outside the image = zero padding) --
    if has_halo:
        t = pl.program_id(1)
        nt = pl.num_programs(1)
        x1_halo = front(jnp.concatenate([xt_ref[0], xb_ref[0]], axis=0))  # (2*w, cinit)
        x1_top = x1_halo[:w_img, :] * (t > 0).astype(jnp.float32)
        x1_bot = x1_halo[w_img:, :] * (t < nt - 1).astype(jnp.float32)
    else:
        x1_top = jnp.zeros((w_img, cinit), jnp.float32)
        x1_bot = jnp.zeros((w_img, cinit), jnp.float32)

    # stage x1 (main + halo rows) so the 9 depthwise taps are static ref slices
    x1buf_ref[g:g + w_img, :] = x1_top
    x1buf_ref[g + w_img:g + w_img + rows, :] = x1_main
    x1buf_ref[g + w_img + rows:g + halo, :] = x1_bot

    # ---- ghost cheap op: depthwise 3x3, stride 1, pad 1 (BN scale folded) -> relu ---
    wdw = wdw_ref[...]                       # (9, cinit)
    shdw = shdw_ref[...]
    wcol = jax.lax.broadcasted_iota(jnp.int32, (rows, 1), 0) % w_img
    not_left = wcol > 0
    not_right = wcol < (w_img - 1)
    acc = jnp.zeros((rows, cinit), jnp.float32)
    for dy in range(3):
        if roll_sign != 0:
            # one (8-aligned when W%8==0) center load per dy + XLU rolls for dx=0/2;
            # the wrapped rows land exactly where not_left / not_right already mask.
            if dy == 1:
                center = x1_main
            else:
                start = g + dy * w_img
                center = x1buf_ref[start:start + rows, :]
            left = jnp.where(not_left,
                             pltpu.roll(center, shift=roll_sign, axis=0), 0.0)
            right = jnp.where(not_right,
                              pltpu.roll(center, shift=-roll_sign, axis=0), 0.0)
            taps = (left, center, right)
        else:
            taps = []
            for dx in range(3):
                start = g + dy * w_img + dx - 1
                tap = x1buf_ref[start:start + rows, :]
                if dx == 0:
                    tap = jnp.where(not_left, tap, 0.0)
                elif dx == 2:
                    tap = jnp.where(not_right, tap, 0.0)
                taps.append(tap)
        for dx in range(3):
            k = 3 * dy + dx
            acc = acc + taps[dx] * wdw[k:k + 1, :]
    x2 = jnp.maximum(acc + shdw, 0.0)        # (rows, cinit)

    # ---- back: bn3 -> relu -> conv3(1x1, single fused matmul) -> bias + residual ----
    y = jnp.concatenate([x1_main, x2], axis=1)              # GhostModule concat -> (rows, planes)
    y = jnp.maximum(y * s3_ref[...] + sh3_ref[...], 0.0)    # bn3 + relu (f32 VPU)
    out = jnp.dot(y.astype(jnp.bfloat16), w3_ref[...],
                  preferred_element_type=jnp.float32)       # one K=planes MXU pass
    o_ref[...] = out + b3_ref[...] + x_main


# ------------------------------ VMEM budget & tile selection ------------------------------

def _vmem_budget():
    """Generation-aware budgets: chooser budget ~30% of physical VMEM, scoped limit ~75%."""
    cap = 64 * 1024 * 1024                       # conservative default (v7x per-TC)
    try:
        info = pltpu.get_tpu_info()
        cap = int(getattr(info, "vmem_capacity_bytes", cap))
    except Exception:
        pass
    budget = max(16 * 1024 * 1024, min(int(0.30 * cap), 64 * 1024 * 1024))
    limit = max(32 * 1024 * 1024, min(int(0.75 * cap), 96 * 1024 * 1024))
    return budget, limit


def _est_vmem_bytes(th, w, cexp, planes, cinit):
    """Rough per-grid-step VMEM footprint (double-buffered I/O + scratch + live values)."""
    f = 4
    rows = th * w
    halo = (th + 2) * w
    io = 2 * f * (2 * rows * cexp + 2 * w * cexp)                # dbl-buffered x/out + halo rows
    weights = 2 * (2 * (cexp * planes + planes * cinit + planes * cexp)      # bf16 matmul weights
                   + f * (9 * cinit + 2 * cexp + 2 * planes + 3 * cinit + cexp))
    scratch = f * (halo + 16) * cinit
    live = f * rows * (2 * cexp + 2 * planes + 3 * cinit)
    return io + weights + scratch + live


def _choose_row_tile(n, h, w, cexp, planes, cinit, budget, max_rows=8192):
    """Pick TH dividing H with TH*W a multiple of 8, as large as the VMEM budget allows.
    When the batch is 1, prefer >=2 grid steps so v7x's second TensorCore gets work."""
    cands = sorted({th for th in range(1, h + 1)
                    if h % th == 0 and (th * w) % 8 == 0}, reverse=True)
    if not cands:
        raise ValueError(f"spatial shape ({h},{w}) too small/odd for the fused kernel")
    fits = [th for th in cands
            if th * w <= max_rows and _est_vmem_bytes(th, w, cexp, planes, cinit) <= budget]
    if not fits:
        fits = [th for th in cands
                if _est_vmem_bytes(th, w, cexp, planes, cinit) <= budget] or [cands[-1]]
    if n < 2:
        multi = [th for th in fits if h // th >= 2]
        if multi:
            return multi[0]
    return fits[0]


# ------------------------------ module forward ------------------------------

def bottleneck(x, p):
    """Bottleneck(inplanes=planes*EXPANSION, planes) forward, NHWC, one fused kernel."""
    n, h, w, cexp = x.shape
    planes = p["w1"].shape[1]
    cinit = p["wp_s"].shape[1]

    budget, vmem_limit = _vmem_budget()
    th = _choose_row_tile(n, h, w, cexp, planes, cinit, budget)
    nt = h // th
    rows = th * w
    halo = rows + 2 * w
    g = 8 if w % 8 == 0 else 8 - (w % 8)     # leading pad so main rows are 8-aligned
    roll_sign = _sublane_roll_sign()
    has_halo = nt > 1

    x2d = x.reshape(n * h * w, cexp)         # free reshape (channels-last contiguous)
    x3d = x.reshape(n * h, w, cexp)          # per-image-row view for the halo rows

    blk_row = lambda b, t: (b * nt + t, 0)
    rep = lambda b, t: (0, 0)
    top_map = lambda b, t: (b * h + jnp.maximum(t * th - 1, 0), 0, 0)
    bot_map = lambda b, t: (b * h + jnp.minimum((t + 1) * th, h - 1), 0, 0)

    # advisory cost estimate: matmuls + depthwise; activations + weights bytes
    flops = (2 * n * h * w * (cexp * planes + planes * cinit + planes * cexp)
             + 18 * n * h * w * cinit)
    bytes_accessed = (4 * 2 * n * h * w * cexp                      # x in + out (f32)
                      + 4 * n * nt * 2 * w * cexp                   # halo row re-fetch
                      + 2 * (cexp * planes + planes * cinit + planes * cexp)   # bf16 weights
                      + 4 * (9 * cinit + 3 * cexp + 3 * planes + 3 * cinit))
    cost = pl.CostEstimate(flops=int(flops), transcendentals=0,
                           bytes_accessed=int(bytes_accessed))

    out2d = pl.pallas_call(
        functools.partial(_bottleneck_kernel, w_img=w, g=g,
                          roll_sign=roll_sign, has_halo=has_halo),
        out_shape=jax.ShapeDtypeStruct((n * h * w, cexp), jnp.float32),
        grid=(n, nt),
        in_specs=[
            pl.BlockSpec((rows, cexp), blk_row),       # x main tile (flattened rows)
            pl.BlockSpec((1, w, cexp), top_map),       # image row above the tile
            pl.BlockSpec((1, w, cexp), bot_map),       # image row below the tile
            pl.BlockSpec((1, cexp), rep),              # bn1 scale
            pl.BlockSpec((1, cexp), rep),              # bn1 shift
            pl.BlockSpec((cexp, planes), rep),         # conv1 weight (bf16)
            pl.BlockSpec((1, planes), rep),            # conv1 bias
            pl.BlockSpec((planes, cinit), rep),        # ghost primary weight (bf16, BN folded)
            pl.BlockSpec((1, cinit), rep),             # ghost primary BN shift
            pl.BlockSpec((9, cinit), rep),             # depthwise 3x3 weight (BN scale folded)
            pl.BlockSpec((1, cinit), rep),             # depthwise BN shift
            pl.BlockSpec((1, planes), rep),            # bn3 scale
            pl.BlockSpec((1, planes), rep),            # bn3 shift
            pl.BlockSpec((planes, cexp), rep),         # conv3 weight (bf16, fused halves)
            pl.BlockSpec((1, cexp), rep),              # conv3 bias
        ],
        out_specs=pl.BlockSpec((rows, cexp), blk_row),
        scratch_shapes=[
            pltpu.VMEM((g + halo + 8, cinit), jnp.float32),   # x1 with halo (+ slack rows)
        ],
        compiler_params=pltpu.CompilerParams(
            dimension_semantics=("parallel", "parallel"),
            vmem_limit_bytes=vmem_limit),
        cost_estimate=cost,
    )(x2d, x3d, x3d,
      p["s1"], p["sh1"], p["w1"], p["b1"], p["wp_s"], p["shp"],
      p["w_dw_s"], p["sh_dw"], p["s3"], p["sh3"], p["w3"], p["b3"])
    return out2d.reshape(n, h, w, cexp)


def residual_seq(x, blocks):
    for bp in blocks:
        x = bottleneck(x, bp)
    return x


def max_pool2(x):  # F.max_pool2d(x, 2, stride=2)
    n, h, w, c = x.shape
    return x.reshape(n, h // 2, 2, w // 2, 2, c).max(axis=(2, 4))


def upsample2(x):  # F.interpolate(scale_factor=2), default mode='nearest'
    n, h, w, c = x.shape
    return jnp.broadcast_to(x[:, :, None, :, None, :],
                            (n, h, 2, w, 2, c)).reshape(n, 2 * h, 2 * w, c)


def hourglass_forward(params, x, depth):
    def rec(n, x):
        level = params[n - 1]
        up1 = residual_seq(x, level[0])
        low1 = max_pool2(x)
        low1 = residual_seq(low1, level[1])
        if n > 1:
            low2 = rec(n - 1, low1)
        else:
            low2 = residual_seq(low1, level[3])
        low3 = residual_seq(low2, level[2])
        up2 = upsample2(low3)
        return up1 + up2
    return rec(depth, x)


# ------------------------------ parameter init ------------------------------

def _init_bn(key, c):
    k1, k2, k3, k4 = jax.random.split(key, 4)
    gamma = 1.0 + 0.1 * jax.random.normal(k1, (c,), jnp.float32)
    beta = 0.1 * jax.random.normal(k2, (c,), jnp.float32)
    rmean = 0.1 * jax.random.normal(k3, (c,), jnp.float32)
    rvar = 0.5 + jax.random.uniform(k4, (c,), jnp.float32)
    scale = gamma / jnp.sqrt(rvar + EPS)
    shift = beta - rmean * scale
    return scale, shift


def init_block(key, cexp, planes):
    assert planes % 2 == 0, "planes must be even (GhostModule ratio=2)"
    cinit = math.ceil(planes / 2)
    keys = jax.random.split(key, 10)
    s1, sh1 = _init_bn(keys[0], cexp)
    w1 = 0.2 * jax.random.normal(keys[1], (cexp, planes), jnp.float32)   # conv1 1x1 (PyTorch weight^T)
    b1 = 0.05 * jax.random.normal(keys[2], (1, planes), jnp.float32)
    wp = 0.2 * jax.random.normal(keys[3], (planes, cinit), jnp.float32)  # ghost primary 1x1, no bias
    sp, shp = _init_bn(keys[4], cinit)
    w_dw = 0.2 * jax.random.normal(keys[5], (9, cinit), jnp.float32)     # depthwise 3x3: [3*dy+dx, c]
    sc, shc = _init_bn(keys[6], cinit)
    s3, sh3 = _init_bn(keys[7], planes)
    w3 = 0.2 * jax.random.normal(keys[8], (planes, cexp), jnp.float32)   # conv3 1x1 (PyTorch weight^T)
    b3 = 0.05 * jax.random.normal(keys[9], (1, cexp), jnp.float32)
    return dict(
        s1=s1.reshape(1, cexp), sh1=sh1.reshape(1, cexp),
        w1=w1.astype(jnp.bfloat16), b1=b1,
        wp_s=(wp * sp[None, :]).astype(jnp.bfloat16), shp=shp.reshape(1, cinit),
        w_dw_s=w_dw * sc[None, :], sh_dw=shc.reshape(1, cinit),
        s3=s3.reshape(1, planes), sh3=sh3.reshape(1, planes),
        w3=w3.astype(jnp.bfloat16), b3=b3,
    )


def init_hourglass(key, planes, depth, num_blocks):
    cexp = planes * EXPANSION
    params = []
    for i in range(depth):
        n_res = 4 if i == 0 else 3
        branches = []
        for _ in range(n_res):
            blocks = []
            for _ in range(num_blocks):
                key, sub = jax.random.split(key)
                blocks.append(init_block(sub, cexp, planes))
            branches.append(blocks)
        params.append(branches)
    return params


# ------------------------------------ main ------------------------------------

if __name__ == "__main__":
    planes, depth, num_blocks = 4, 2, 1
    N, H, W = 2, 16, 16
    cexp = planes * EXPANSION  # Hourglass input channels = planes * Bottleneck.expansion

    key = jax.random.PRNGKey(0)
    kx, kp = jax.random.split(key)
    x_nchw = jax.random.normal(kx, (N, cexp, H, W), jnp.float32)  # PyTorch NCHW input
    params = init_hourglass(kp, planes, depth, num_blocks)

    x_nhwc = jnp.transpose(x_nchw, (0, 2, 3, 1))
    fwd = jax.jit(functools.partial(hourglass_forward, depth=depth))
    out_nhwc = fwd(params, x_nhwc)
    out_nchw = jnp.transpose(out_nhwc, (0, 3, 1, 2))
    jax.block_until_ready(out_nchw)

    assert out_nchw.shape == (N, cexp, H, W)
    assert bool(jnp.all(jnp.isfinite(out_nchw)))
    print("KERNEL_OK")
</pallas_src>

<mosaic_0001>
module attributes {stable_mosaic.version = 11 : i64} {
  func.func @_bottleneck_kernel(%arg0: i32, %arg1: i32, %arg2: memref<256x8xf32, #tpu.memory_space<vmem>>, %arg3: memref<1x16x8xf32, #tpu.memory_space<vmem>>, %arg4: memref<1x16x8xf32, #tpu.memory_space<vmem>>, %arg5: memref<1x8xf32, #tpu.memory_space<vmem>>, %arg6: memref<1x8xf32, #tpu.memory_space<vmem>>, %arg7: memref<8x4xbf16, #tpu.memory_space<vmem>>, %arg8: memref<1x4xf32, #tpu.memory_space<vmem>>, %arg9: memref<4x2xbf16, #tpu.memory_space<vmem>>, %arg10: memref<1x2xf32, #tpu.memory_space<vmem>>, %arg11: memref<9x2xf32, #tpu.memory_space<vmem>>, %arg12: memref<1x2xf32, #tpu.memory_space<vmem>>, %arg13: memref<1x4xf32, #tpu.memory_space<vmem>>, %arg14: memref<1x4xf32, #tpu.memory_space<vmem>>, %arg15: memref<4x8xbf16, #tpu.memory_space<vmem>>, %arg16: memref<1x8xf32, #tpu.memory_space<vmem>>, %arg17: memref<256x8xf32, #tpu.memory_space<vmem>>, %arg18: memref<304x2xf32, #tpu.memory_space<vmem>>) attributes {dimension_semantics = [#tpu.dimension_semantics<parallel>, #tpu.dimension_semantics<parallel>], iteration_bounds = array<i64: 2, 1>, scalar_prefetch = 0 : i64, scratch_operands = 1 : i64, tpu.core_type = #tpu.core_type<tc>, window_params = [{transform_indices = @transform_0, window_bounds = array<i64: 256, 8>}, {transform_indices = @transform_1, window_bounds = array<i64: 1, 16, 8>}, {transform_indices = @transform_2, window_bounds = array<i64: 1, 16, 8>}, {pipeline_mode = #tpu.pipeline_mode<synchronous>, transform_indices = @transform_3, window_bounds = array<i64: 1, 8>}, {pipeline_mode = #tpu.pipeline_mode<synchronous>, transform_indices = @transform_4, window_bounds = array<i64: 1, 8>}, {pipeline_mode = #tpu.pipeline_mode<synchronous>, transform_indices = @transform_5, window_bounds = array<i64: 8, 4>}, {pipeline_mode = #tpu.pipeline_mode<synchronous>, transform_indices = @transform_6, window_bounds = array<i64: 1, 4>}, {pipeline_mode = #tpu.pipeline_mode<synchronous>, transform_indices = @transform_7, window_bounds = array<i64: 4, 2>}, {pipeline_mode = #tpu.pipeline_mode<synchronous>, transform_indices = @transform_8, window_bounds = array<i64: 1, 2>}, {pipeline_mode = #tpu.pipeline_mode<synchronous>, transform_indices = @transform_9, window_bounds = array<i64: 9, 2>}, {pipeline_mode = #tpu.pipeline_mode<synchronous>, transform_indices = @transform_10, window_bounds = array<i64: 1, 2>}, {pipeline_mode = #tpu.pipeline_mode<synchronous>, transform_indices = @transform_11, window_bounds = array<i64: 1, 4>}, {pipeline_mode = #tpu.pipeline_mode<synchronous>, transform_indices = @transform_12, window_bounds = array<i64: 1, 4>}, {pipeline_mode = #tpu.pipeline_mode<synchronous>, transform_indices = @transform_13, window_bounds = array<i64: 4, 8>}, {pipeline_mode = #tpu.pipeline_mode<synchronous>, transform_indices = @transform_14, window_bounds = array<i64: 1, 8>}, {transform_indices = @transform_15, window_bounds = array<i64: 256, 8>}]} {
    %c0 = arith.constant 0 : index
    %c0_0 = arith.constant 0 : index
    %0 = vector.load %arg5[%c0, %c0_0] : memref<1x8xf32, #tpu.memory_space<vmem>>, vector<1x8xf32>
    %c0_1 = arith.constant 0 : index
    %c0_2 = arith.constant 0 : index
    %1 = vector.load %arg6[%c0_1, %c0_2] : memref<1x8xf32, #tpu.memory_space<vmem>>, vector<1x8xf32>
    %c0_3 = arith.constant 0 : index
    %c0_4 = arith.constant 0 : index
    %2 = vector.load %arg7[%c0_3, %c0_4] : memref<8x4xbf16, #tpu.memory_space<vmem>>, vector<8x4xbf16>
    %c0_5 = arith.constant 0 : index
    %c0_6 = arith.constant 0 : index
    %3 = vector.load %arg8[%c0_5, %c0_6] : memref<1x4xf32, #tpu.memory_space<vmem>>, vector<1x4xf32>
    %c0_7 = arith.constant 0 : index
    %c0_8 = arith.constant 0 : index
    %4 = vector.load %arg9[%c0_7, %c0_8] : memref<4x2xbf16, #tpu.memory_space<vmem>>, vector<4x2xbf16>
    %c0_9 = arith.constant 0 : index
    %c0_10 = arith.constant 0 : index
    %5 = vector.load %arg10[%c0_9, %c0_10] : memref<1x2xf32, #tpu.memory_space<vmem>>, vector<1x2xf32>
    %c0_11 = arith.constant 0 : index
    %c0_12 = arith.constant 0 : index
    %6 = vector.load %arg2[%c0_11, %c0_12] : memref<256x8xf32, #tpu.memory_space<vmem>>, vector<256x8xf32>
    %7 = vector.broadcast %0 : vector<1x8xf32> to vector<256x8xf32>
    %8 = arith.mulf %6, %7 : vector<256x8xf32>
    %9 = vector.broadcast %1 : vector<1x8xf32> to vector<256x8xf32>
    %10 = arith.addf %8, %9 : vector<256x8xf32>
    %cst = arith.constant 0.000000e+00 : f32
    %11 = vector.broadcast %cst : f32 to vector<256x8xf32>
    %12 = arith.maximumf %10, %11 : vector<256x8xf32>
    %13 = arith.truncf %12 : vector<256x8xf32> to vector<256x8xbf16>
    %cst_13 = arith.constant dense<0.000000e+00> : vector<256x4xf32>
    %14 = tpu.matmul %13, %2, %cst_13 {dimension_numbers = #tpu.dot_dimension_numbers<[1], [0], [0], [1], [0, 0, 1, 1], [], []>} : vector<256x8xbf16>, vector<8x4xbf16>, vector<256x4xf32> -> vector<256x4xf32>
    %15 = vector.broadcast %3 : vector<1x4xf32> to vector<256x4xf32>
    %16 = arith.addf %14, %15 : vector<256x4xf32>
    %17 = arith.truncf %16 : vector<256x4xf32> to vector<256x4xbf16>
    %cst_14 = arith.constant dense<0.000000e+00> : vector<256x2xf32>
    %18 = tpu.matmul %17, %4, %cst_14 {dimension_numbers = #tpu.dot_dimension_numbers<[1], [0], [0], [1], [0, 0, 1, 1], [], []>} : vector<256x4xbf16>, vector<4x2xbf16>, vector<256x2xf32> -> vector<256x2xf32>
    %19 = vector.broadcast %5 : vector<1x2xf32> to vector<256x2xf32>
    %20 = arith.addf %18, %19 : vector<256x2xf32>
    %cst_15 = arith.constant 0.000000e+00 : f32
    %21 = vector.broadcast %cst_15 : f32 to vector<256x2xf32>
    %22 = arith.maximumf %20, %21 : vector<256x2xf32>
    %cst_16 = arith.constant 0.000000e+00 : f32
    %23 = vector.broadcast %cst_16 : f32 to vector<16x2xf32>
    %cst_17 = arith.constant 0.000000e+00 : f32
    %24 = vector.broadcast %cst_17 : f32 to vector<16x2xf32>
    %c8 = arith.constant 8 : index
    %c0_18 = arith.constant 0 : index
    %25 = vector.load %arg18[%c8, %c0_18] : memref<304x2xf32, #tpu.memory_space<vmem>>, vector<16x2xf32>
    tpu.vector_store %arg18[%c8, %c0_18], %23 {strides = array<i32>} : memref<304x2xf32, #tpu.memory_space<vmem>>, vector<16x2xf32>,
    %c24 = arith.constant 24 : index
    %c0_19 = arith.constant 0 : index
    %26 = vector.load %arg18[%c24, %c0_19] : memref<304x2xf32, #tpu.memory_space<vmem>>, vector<256x2xf32>
    tpu.vector_store %arg18[%c24, %c0_19], %22 {strides = array<i32>} : memref<304x2xf32, #tpu.memory_space<vmem>>, vector<256x2xf32>,
    %c280 = arith.constant 280 : index
    %c0_20 = arith.constant 0 : index
    %27 = vector.load %arg18[%c280, %c0_20] : memref<304x2xf32, #tpu.memory_space<vmem>>, vector<16x2xf32>
    tpu.vector_store %arg18[%c280, %c0_20], %24 {strides = array<i32>} : memref<304x2xf32, #tpu.memory_space<vmem>>, vector<16x2xf32>,
    %c0_21 = arith.constant 0 : index
    %c0_22 = arith.constant 0 : index
    %28 = vector.load %arg11[%c0_21, %c0_22] : memref<9x2xf32, #tpu.memory_space<vmem>>, vector<9x2xf32>
    %c0_23 = arith.constant 0 : index
    %c0_24 = arith.constant 0 : index
    %29 = vector.load %arg12[%c0_23, %c0_24] : memref<1x2xf32, #tpu.memory_space<vmem>>, vector<1x2xf32>
    %30 = tpu.iota {dimensions = array<i32: 0>} : vector<256x1xi32>
    %c16_i32 = arith.constant 16 : i32
    %c0_i32 = arith.constant 0 : i32
    %31 = arith.cmpi eq, %c16_i32, %c0_i32 : i32
    %c1_i32 = arith.constant 1 : i32
    %32 = arith.select %31, %c1_i32, %c16_i32 : i32
    %33 = vector.broadcast %32 : i32 to vector<256x1xi32>
    %34 = arith.remsi %30, %33 : vector<256x1xi32>
    %c0_i32_25 = arith.constant 0 : i32
    %35 = vector.broadcast %c0_i32_25 : i32 to vector<256x1xi32>
    %36 = arith.cmpi ne, %34, %35 : vector<256x1xi32>
    %c0_i32_26 = arith.constant 0 : i32
    %37 = vector.broadcast %c0_i32_26 : i32 to vector<256x1xi32>
    %38 = arith.cmpi slt, %34, %37 : vector<256x1xi32>
    %c0_i32_27 = arith.constant 0 : i32
    %39 = arith.cmpi slt, %32, %c0_i32_27 : i32
    %40 = vector.broadcast %39 : i1 to vector<256x1xi1>
    %41 = vector.broadcast %40 : vector<256x1xi1> to vector<256x1xi1>
    %42 = arith.xori %38, %41 : vector<256x1xi1>
    %43 = arith.andi %42, %36 : vector<256x1xi1>
    %44 = vector.broadcast %32 : i32 to vector<256x1xi32>
    %45 = arith.addi %34, %44 : vector<256x1xi32>
    %46 = arith.select %43, %45, %34 : vector<256x1xi1>, vector<256x1xi32>
    %c0_i32_28 = arith.constant 0 : i32
    %47 = vector.broadcast %c0_i32_28 : i32 to vector<256x1xi32>
    %48 = arith.cmpi sgt, %46, %47 : vector<256x1xi32>
    %c15_i32 = arith.constant 15 : i32
    %49 = vector.broadcast %c15_i32 : i32 to vector<256x1xi32>
    %50 = arith.cmpi slt, %46, %49 : vector<256x1xi32>
    %cst_29 = arith.constant 0.000000e+00 : f32
    %51 = vector.broadcast %cst_29 : f32 to vector<256x2xf32>
    %c7 = arith.constant 7 : index
    %c0_30 = arith.constant 0 : index
    %52 = vector.load %arg18[%c7, %c0_30] : memref<304x2xf32, #tpu.memory_space<vmem>>, vector<256x2xf32>
    %cst_31 = arith.constant 0.000000e+00 : f32
    %53 = vector.shape_cast %48 : vector<256x1xi1> to vector<256x1xi1>
    %54 = vector.broadcast %53 : vector<256x1xi1> to vector<256x2xi1>
    %55 = vector.broadcast %cst_31 : f32 to vector<256x2xf32>
    %56 = arith.select %54, %52, %55 : vector<256x2xi1>, vector<256x2xf32>
    %c8_32 = arith.constant 8 : index
    %c0_33 = arith.constant 0 : index
    %57 = vector.load %arg18[%c8_32, %c0_33] : memref<304x2xf32, #tpu.memory_space<vmem>>, vector<256x2xf32>
    %c9 = arith.constant 9 : index
    %c0_34 = arith.constant 0 : index
    %58 = vector.load %arg18[%c9, %c0_34] : memref<304x2xf32, #tpu.memory_space<vmem>>, vector<256x2xf32>
    %cst_35 = arith.constant 0.000000e+00 : f32
    %59 = vector.shape_cast %50 : vector<256x1xi1> to vector<256x1xi1>
    %60 = vector.broadcast %59 : vector<256x1xi1> to vector<256x2xi1>
    %61 = vector.broadcast %cst_35 : f32 to vector<256x2xf32>
    %62 = arith.select %60, %58, %61 : vector<256x2xi1>, vector<256x2xf32>
    %63 = vector.extract_strided_slice %28 {offsets = [0, 0], sizes = [1, 2], strides = [1, 1]} : vector<9x2xf32> to vector<1x2xf32>
    %64 = vector.broadcast %63 : vector<1x2xf32> to vector<256x2xf32>
    %65 = arith.mulf %56, %64 : vector<256x2xf32>
    %66 = arith.addf %51, %65 : vector<256x2xf32>
    %67 = vector.extract_strided_slice %28 {offsets = [1, 0], sizes = [1, 2], strides = [1, 1]} : vector<9x2xf32> to vector<1x2xf32>
    %68 = vector.broadcast %67 : vector<1x2xf32> to vector<256x2xf32>
    %69 = arith.mulf %57, %68 : vector<256x2xf32>
    %70 = arith.addf %66, %69 : vector<256x2xf32>
    %71 = vector.extract_strided_slice %28 {offsets = [2, 0], sizes = [1, 2], strides = [1, 1]} : vector<9x2xf32> to vector<1x2xf32>
    %72 = vector.broadcast %71 : vector<1x2xf32> to vector<256x2xf32>
    %73 = arith.mulf %62, %72 : vector<256x2xf32>
    %74 = arith.addf %70, %73 : vector<256x2xf32>
    %c23 = arith.constant 23 : index
    %c0_36 = arith.constant 0 : index
    %75 = vector.load %arg18[%c23, %c0_36] : memref<304x2xf32, #tpu.memory_space<vmem>>, vector<256x2xf32>
    %cst_37 = arith.constant 0.000000e+00 : f32
    %76 = vector.shape_cast %48 : vector<256x1xi1> to vector<256x1xi1>
    %77 = vector.broadcast %76 : vector<256x1xi1> to vector<256x2xi1>
    %78 = vector.broadcast %cst_37 : f32 to vector<256x2xf32>
    %79 = arith.select %77, %75, %78 : vector<256x2xi1>, vector<256x2xf32>
    %c24_38 = arith.constant 24 : index
    %c0_39 = arith.constant 0 : index
    %80 = vector.load %arg18[%c24_38, %c0_39] : memref<304x2xf32, #tpu.memory_space<vmem>>, vector<256x2xf32>
    %c25 = arith.constant 25 : index
    %c0_40 = arith.constant 0 : index
    %81 = vector.load %arg18[%c25, %c0_40] : memref<304x2xf32, #tpu.memory_space<vmem>>, vector<256x2xf32>
    %cst_41 = arith.constant 0.000000e+00 : f32
    %82 = vector.shape_cast %50 : vector<256x1xi1> to vector<256x1xi1>
    %83 = vector.broadcast %82 : vector<256x1xi1> to vector<256x2xi1>
    %84 = vector.broadcast %cst_41 : f32 to vector<256x2xf32>
    %85 = arith.select %83, %81, %84 : vector<256x2xi1>, vector<256x2xf32>
    %86 = vector.extract_strided_slice %28 {offsets = [3, 0], sizes = [1, 2], strides = [1, 1]} : vector<9x2xf32> to vector<1x2xf32>
    %87 = vector.broadcast %86 : vector<1x2xf32> to vector<256x2xf32>
    %88 = arith.mulf %79, %87 : vector<256x2xf32>
    %89 = arith.addf %74, %88 : vector<256x2xf32>
    %90 = vector.extract_strided_slice %28 {offsets = [4, 0], sizes = [1, 2], strides = [1, 1]} : vector<9x2xf32> to vector<1x2xf32>
    %91 = vector.broadcast %90 : vector<1x2xf32> to vector<256x2xf32>
    %92 = arith.mulf %80, %91 : vector<256x2xf32>
    %93 = arith.addf %89, %92 : vector<256x2xf32>
    %94 = vector.extract_strided_slice %28 {offsets = [5, 0], sizes = [1, 2], strides = [1, 1]} : vector<9x2xf32> to vector<1x2xf32>
    %95 = vector.broadcast %94 : vector<1x2xf32> to vector<256x2xf32>
    %96 = arith.mulf %85, %95 : vector<256x2xf32>
    %97 = arith.addf %93, %96 : vector<256x2xf32>
    %c39 = arith.constant 39 : index
    %c0_42 = arith.constant 0 : index
    %98 = vector.load %arg18[%c39, %c0_42] : memref<304x2xf32, #tpu.memory_space<vmem>>, vector<256x2xf32>
    %cst_43 = arith.constant 0.000000e+00 : f32
    %99 = vector.shape_cast %48 : vector<256x1xi1> to vector<256x1xi1>
    %100 = vector.broadcast %99 : vector<256x1xi1> to vector<256x2xi1>
    %101 = vector.broadcast %cst_43 : f32 to vector<256x2xf32>
    %102 = arith.select %100, %98, %101 : vector<256x2xi1>, vector<256x2xf32>
    %c40 = arith.constant 40 : index
    %c0_44 = arith.constant 0 : index
    %103 = vector.load %arg18[%c40, %c0_44] : memref<304x2xf32, #tpu.memory_space<vmem>>, vector<256x2xf32>
    %c41 = arith.constant 41 : index
    %c0_45 = arith.constant 0 : index
    %104 = vector.load %arg18[%c41, %c0_45] : memref<304x2xf32, #tpu.memory_space<vmem>>, vector<256x2xf32>
    %cst_46 = arith.constant 0.000000e+00 : f32
    %105 = vector.shape_cast %50 : vector<256x1xi1> to vector<256x1xi1>
    %106 = vector.broadcast %105 : vector<256x1xi1> to vector<256x2xi1>
    %107 = vector.broadcast %cst_46 : f32 to vector<256x2xf32>
    %108 = arith.select %106, %104, %107 : vector<256x2xi1>, vector<256x2xf32>
    %109 = vector.extract_strided_slice %28 {offsets = [6, 0], sizes = [1, 2], strides = [1, 1]} : vector<9x2xf32> to vector<1x2xf32>
    %110 = vector.broadcast %109 : vector<1x2xf32> to vector<256x2xf32>
    %111 = arith.mulf %102, %110 : vector<256x2xf32>
    %112 = arith.addf %97, %111 : vector<256x2xf32>
    %113 = vector.extract_strided_slice %28 {offsets = [7, 0], sizes = [1, 2], strides = [1, 1]} : vector<9x2xf32> to vector<1x2xf32>
    %114 = vector.broadcast %113 : vector<1x2xf32> to vector<256x2xf32>
    %115 = arith.mulf %103, %114 : vector<256x2xf32>
    %116 = arith.addf %112, %115 : vector<256x2xf32>
    %117 = vector.extract_strided_slice %28 {offsets = [8, 0], sizes = [1, 2], strides = [1, 1]} : vector<9x2xf32> to vector<1x2xf32>
    %118 = vector.broadcast %117 : vector<1x2xf32> to vector<256x2xf32>
    %119 = arith.mulf %108, %118 : vector<256x2xf32>
    %120 = arith.addf %116, %119 : vector<256x2xf32>
    %121 = vector.broadcast %29 : vector<1x2xf32> to vector<256x2xf32>
    %122 = arith.addf %120, %121 : vector<256x2xf32>
    %cst_47 = arith.constant 0.000000e+00 : f32
    %123 = vector.broadcast %cst_47 : f32 to vector<256x2xf32>
    %124 = arith.maximumf %122, %123 : vector<256x2xf32>
    %125 = tpu.concatenate %22, %124 in 1 : vector<256x2xf32>, vector<256x2xf32> -> vector<256x4xf32>
    %c0_48 = arith.constant 0 : index
    %c0_49 = arith.constant 0 : index
    %126 = vector.load %arg13[%c0_48, %c0_49] : memref<1x4xf32, #tpu.memory_space<vmem>>, vector<1x4xf32>
    %127 = vector.broadcast %126 : vector<1x4xf32> to vector<256x4xf32>
    %128 = arith.mulf %125, %127 : vector<256x4xf32>
    %c0_50 = arith.constant 0 : index
    %c0_51 = arith.constant 0 : index
    %129 = vector.load %arg14[%c0_50, %c0_51] : memref<1x4xf32, #tpu.memory_space<vmem>>, vector<1x4xf32>
    %130 = vector.broadcast %129 : vector<1x4xf32> to vector<256x4xf32>
    %131 = arith.addf %128, %130 : vector<256x4xf32>
    %cst_52 = arith.constant 0.000000e+00 : f32
    %132 = vector.broadcast %cst_52 : f32 to vector<256x4xf32>
    %133 = arith.maximumf %131, %132 : vector<256x4xf32>
    %134 = arith.truncf %133 : vector<256x4xf32> to vector<256x4xbf16>
    %c0_53 = arith.constant 0 : index
    %c0_54 = arith.constant 0 : index
    %135 = vector.load %arg15[%c0_53, %c0_54] : memref<4x8xbf16, #tpu.memory_space<vmem>>, vector<4x8xbf16>
    %cst_55 = arith.constant dense<0.000000e+00> : vector<256x8xf32>
    %136 = tpu.matmul %134, %135, %cst_55 {dimension_numbers = #tpu.dot_dimension_numbers<[1], [0], [0], [1], [0, 0, 1, 1], [], []>} : vector<256x4xbf16>, vector<4x8xbf16>, vector<256x8xf32> -> vector<256x8xf32>
    %c0_56 = arith.constant 0 : index
    %c0_57 = arith.constant 0 : index
    %137 = vector.load %arg16[%c0_56, %c0_57] : memref<1x8xf32, #tpu.memory_space<vmem>>, vector<1x8xf32>
    %138 = vector.broadcast %137 : vector<1x8xf32> to vector<256x8xf32>
    %139 = arith.addf %136, %138 : vector<256x8xf32>
    %140 = arith.addf %139, %6 : vector<256x8xf32>
    %c0_58 = arith.constant 0 : index
    %c0_59 = arith.constant 0 : index
    %141 = vector.load %arg17[%c0_58, %c0_59] : memref<256x8xf32, #tpu.memory_space<vmem>>, vector<256x8xf32>
    tpu.vector_store %arg17[%c0_58, %c0_59], %140 {strides = array<i32>} : memref<256x8xf32, #tpu.memory_space<vmem>>, vector<256x8xf32>,
    return
  }
  func.func @transform_0(%arg0: i32, %arg1: i32) -> (i32, i32) {
    %c1_i32 = arith.constant 1 : i32
    %0 = arith.muli %arg0, %c1_i32 : i32
    %1 = arith.addi %0, %arg1 : i32
    %c0_i32 = arith.constant 0 : i32
    %c0_i32_0 = arith.constant 0 : i32
    return %1, %c0_i32 : i32, i32
  }
  func.func @transform_1(%arg0: i32, %arg1: i32) -> (i32, i32, i32) {
    %c16_i32 = arith.constant 16 : i32
    %0 = arith.muli %arg0, %c16_i32 : i32
    %c16_i32_0 = arith.constant 16 : i32
    %1 = arith.muli %arg1, %c16_i32_0 : i32
    %c1_i32 = arith.constant 1 : i32
    %2 = arith.subi %1, %c1_i32 : i32
    %c0_i32 = arith.constant 0 : i32
    %3 = arith.maxsi %2, %c0_i32 : i32
    %4 = arith.addi %0, %3 : i32
    %c0_i32_1 = arith.constant 0 : i32
    %c0_i32_2 = arith.constant 0 : i32
    %c0_i32_3 = arith.constant 0 : i32
    return %4, %c0_i32_1, %c0_i32_2 : i32, i32, i32
  }
  func.func @transform_2(%arg0: i32, %arg1: i32) -> (i32, i32, i32) {
    %c16_i32 = arith.constant 16 : i32
    %0 = arith.muli %arg0, %c16_i32 : i32
    %c1_i32 = arith.constant 1 : i32
    %1 = arith.addi %arg1, %c1_i32 : i32
    %c16_i32_0 = arith.constant 16 : i32
    %2 = arith.muli %1, %c16_i32_0 : i32
    %c15_i32 = arith.constant 15 : i32
    %3 = arith.minsi %2, %c15_i32 : i32
    %4 = arith.addi %0, %3 : i32
    %c0_i32 = arith.constant 0 : i32
    %c0_i32_1 = arith.constant 0 : i32
    %c0_i32_2 = arith.constant 0 : i32
    return %4, %c0_i32, %c0_i32_1 : i32, i32, i32
  }
  func.func @transform_3(%arg0: i32, %arg1: i32) -> (i32, i32) {
    %c0_i32 = arith.constant 0 : i32
    %c0_i32_0 = arith.constant 0 : i32
    %c0_i32_1 = arith.constant 0 : i32
    return %c0_i32, %c0_i32_0 : i32, i32
  }
  func.func @transform_4(%arg0: i32, %arg1: i32) -> (i32, i32) {
    %c0_i32 = arith.constant 0 : i32
    %c0_i32_0 = arith.constant 0 : i32
    %c0_i32_1 = arith.constant 0 : i32
    return %c0_i32, %c0_i32_0 : i32, i32
  }
  func.func @transform_5(%arg0: i32, %arg1: i32) -> (i32, i32) {
    %c0_i32 = arith.constant 0 : i32
    %c0_i32_0 = arith.constant 0 : i32
    %c0_i32_1 = arith.constant 0 : i32
    return %c0_i32, %c0_i32_0 : i32, i32
  }
  func.func @transform_6(%arg0: i32, %arg1: i32) -> (i32, i32) {
    %c0_i32 = arith.constant 0 : i32
    %c0_i32_0 = arith.constant 0 : i32
    %c0_i32_1 = arith.constant 0 : i32
    return %c0_i32, %c0_i32_0 : i32, i32
  }
  func.func @transform_7(%arg0: i32, %arg1: i32) -> (i32, i32) {
    %c0_i32 = arith.constant 0 : i32
    %c0_i32_0 = arith.constant 0 : i32
    %c0_i32_1 = arith.constant 0 : i32
    return %c0_i32, %c0_i32_0 : i32, i32
  }
  func.func @transform_8(%arg0: i32, %arg1: i32) -> (i32, i32) {
    %c0_i32 = arith.constant 0 : i32
    %c0_i32_0 = arith.constant 0 : i32
    %c0_i32_1 = arith.constant 0 : i32
    return %c0_i32, %c0_i32_0 : i32, i32
  }
  func.func @transform_9(%arg0: i32, %arg1: i32) -> (i32, i32) {
    %c0_i32 = arith.constant 0 : i32
    %c0_i32_0 = arith.constant 0 : i32
    %c0_i32_1 = arith.constant 0 : i32
    return %c0_i32, %c0_i32_0 : i32, i32
  }
  func.func @transform_10(%arg0: i32, %arg1: i32) -> (i32, i32) {
    %c0_i32 = arith.constant 0 : i32
    %c0_i32_0 = arith.constant 0 : i32
    %c0_i32_1 = arith.constant 0 : i32
    return %c0_i32, %c0_i32_0 : i32, i32
  }
  func.func @transform_11(%arg0: i32, %arg1: i32) -> (i32, i32) {
    %c0_i32 = arith.constant 0 : i32
    %c0_i32_0 = arith.constant 0 : i32
    %c0_i32_1 = arith.constant 0 : i32
    return %c0_i32, %c0_i32_0 : i32, i32
  }
  func.func @transform_12(%arg0: i32, %arg1: i32) -> (i32, i32) {
    %c0_i32 = arith.constant 0 : i32
    %c0_i32_0 = arith.constant 0 : i32
    %c0_i32_1 = arith.constant 0 : i32
    return %c0_i32, %c0_i32_0 : i32, i32
  }
  func.func @transform_13(%arg0: i32, %arg1: i32) -> (i32, i32) {
    %c0_i32 = arith.constant 0 : i32
    %c0_i32_0 = arith.constant 0 : i32
    %c0_i32_1 = arith.constant 0 : i32
    return %c0_i32, %c0_i32_0 : i32, i32
  }
  func.func @transform_14(%arg0: i32, %arg1: i32) -> (i32, i32) {
    %c0_i32 = arith.constant 0 : i32
    %c0_i32_0 = arith.constant 0 : i32
    %c0_i32_1 = arith.constant 0 : i32
    return %c0_i32, %c0_i32_0 : i32, i32
  }
  func.func @transform_15(%arg0: i32, %arg1: i32) -> (i32, i32) {
    %c1_i32 = arith.constant 1 : i32
    %0 = arith.muli %arg0, %c1_i32 : i32
    %1 = arith.addi %0, %arg1 : i32
    %c0_i32 = arith.constant 0 : i32
    %c0_i32_0 = arith.constant 0 : i32
    return %1, %c0_i32 : i32, i32
  }
}

module attributes {stable_mosaic.version = 11 : i64} {
  func.func @_bottleneck_kernel(%arg0: i32, %arg1: i32, %arg2: memref<64x8xf32, #tpu.memory_space<vmem>>, %arg3: memref<1x8x8xf32, #tpu.memory_space<vmem>>, %arg4: memref<1x8x8xf32, #tpu.memory_space<vmem>>, %arg5: memref<1x8xf32, #tpu.memory_space<vmem>>, %arg6: memref<1x8xf32, #tpu.memory_space<vmem>>, %arg7: memref<8x4xbf16, #tpu.memory_space<vmem>>, %arg8: memref<1x4xf32, #tpu.memory_space<vmem>>, %arg9: memref<4x2xbf16, #tpu.memory_space<vmem>>, %arg10: memref<1x2xf32, #tpu.memory_space<vmem>>, %arg11: memref<9x2xf32, #tpu.memory_space<vmem>>, %arg12: memref<1x2xf32, #tpu.memory_space<vmem>>, %arg13: memref<1x4xf32, #tpu.memory_space<vmem>>, %arg14: memref<1x4xf32, #tpu.memory_space<vmem>>, %arg15: memref<4x8xbf16, #tpu.memory_space<vmem>>, %arg16: memref<1x8xf32, #tpu.memory_space<vmem>>, %arg17: memref<64x8xf32, #tpu.memory_space<vmem>>, %arg18: memref<96x2xf32, #tpu.memory_space<vmem>>) attributes {dimension_semantics = [#tpu.dimension_semantics<parallel>, #tpu.dimension_semantics<parallel>], iteration_bounds = array<i64: 2, 1>, scalar_prefetch = 0 : i64, scratch_operands = 1 : i64, tpu.core_type = #tpu.core_type<tc>, window_params = [{transform_indices = @transform_0, window_bounds = array<i64: 64, 8>}, {transform_indices = @transform_1, window_bounds = array<i64: 1, 8, 8>}, {transform_indices = @transform_2, window_bounds = array<i64: 1, 8, 8>}, {pipeline_mode = #tpu.pipeline_mode<synchronous>, transform_indices = @transform_3, window_bounds = array<i64: 1, 8>}, {pipeline_mode = #tpu.pipeline_mode<synchronous>, transform_indices = @transform_4, window_bounds = array<i64: 1, 8>}, {pipeline_mode = #tpu.pipeline_mode<synchronous>, transform_indices = @transform_5, window_bounds = array<i64: 8, 4>}, {pipeline_mode = #tpu.pipeline_mode<synchronous>, transform_indices = @transform_6, window_bounds = array<i64: 1, 4>}, {pipeline_mode = #tpu.pipeline_mode<synchronous>, transform_indices = @transform_7, window_bounds = array<i64: 4, 2>}, {pipeline_mode = #tpu.pipeline_mode<synchronous>, transform_indices = @transform_8, window_bounds = array<i64: 1, 2>}, {pipeline_mode = #tpu.pipeline_mode<synchronous>, transform_indices = @transform_9, window_bounds = array<i64: 9, 2>}, {pipeline_mode = #tpu.pipeline_mode<synchronous>, transform_indices = @transform_10, window_bounds = array<i64: 1, 2>}, {pipeline_mode = #tpu.pipeline_mode<synchronous>, transform_indices = @transform_11, window_bounds = array<i64: 1, 4>}, {pipeline_mode = #tpu.pipeline_mode<synchronous>, transform_indices = @transform_12, window_bounds = array<i64: 1, 4>}, {pipeline_mode = #tpu.pipeline_mode<synchronous>, transform_indices = @transform_13, window_bounds = array<i64: 4, 8>}, {pipeline_mode = #tpu.pipeline_mode<synchronous>, transform_indices = @transform_14, window_bounds = array<i64: 1, 8>}, {transform_indices = @transform_15, window_bounds = array<i64: 64, 8>}]} {
    %c0 = arith.constant 0 : index
    %c0_0 = arith.constant 0 : index
    %0 = vector.load %arg5[%c0, %c0_0] : memref<1x8xf32, #tpu.memory_space<vmem>>, vector<1x8xf32>
    %c0_1 = arith.constant 0 : index
    %c0_2 = arith.constant 0 : index
    %1 = vector.load %arg6[%c0_1, %c0_2] : memref<1x8xf32, #tpu.memory_space<vmem>>, vector<1x8xf32>
    %c0_3 = arith.constant 0 : index
    %c0_4 = arith.constant 0 : index
    %2 = vector.load %arg7[%c0_3, %c0_4] : memref<8x4xbf16, #tpu.memory_space<vmem>>, vector<8x4xbf16>
    %c0_5 = arith.constant 0 : index
    %c0_6 = arith.constant 0 : index
    %3 = vector.load %arg8[%c0_5, %c0_6] : memref<1x4xf32, #tpu.memory_space<vmem>>, vector<1x4xf32>
    %c0_7 = arith.constant 0 : index
    %c0_8 = arith.constant 0 : index
    %4 = vector.load %arg9[%c0_7, %c0_8] : memref<4x2xbf16, #tpu.memory_space<vmem>>, vector<4x2xbf16>
    %c0_9 = arith.constant 0 : index
    %c0_10 = arith.constant 0 : index
    %5 = vector.load %arg10[%c0_9, %c0_10] : memref<1x2xf32, #tpu.memory_space<vmem>>, vector<1x2xf32>
    %c0_11 = arith.constant 0 : index
    %c0_12 = arith.constant 0 : index
    %6 = vector.load %arg2[%c0_11, %c0_12] : memref<64x8xf32, #tpu.memory_space<vmem>>, vector<64x8xf32>
    %7 = vector.broadcast %0 : vector<1x8xf32> to vector<64x8xf32>
    %8 = arith.mulf %6, %7 : vector<64x8xf32>
    %9 = vector.broadcast %1 : vector<1x8xf32> to vector<64x8xf32>
    %10 = arith.addf %8, %9 : vector<64x8xf32>
    %cst = arith.constant 0.000000e+00 : f32
    %11 = vector.broadcast %cst : f32 to vector<64x8xf32>
    %12 = arith.maximumf %10, %11 : vector<64x8xf32>
    %13 = arith.truncf %12 : vector<64x8xf32> to vector<64x8xbf16>
    %cst_13 = arith.constant dense<0.000000e+00> : vector<64x4xf32>
    %14 = tpu.matmul %13, %2, %cst_13 {dimension_numbers = #tpu.dot_dimension_numbers<[1], [0], [0], [1], [0, 0, 1, 1], [], []>} : vector<64x8xbf16>, vector<8x4xbf16>, vector<64x4xf32> -> vector<64x4xf32>
    %15 = vector.broadcast %3 : vector<1x4xf32> to vector<64x4xf32>
    %16 = arith.addf %14, %15 : vector<64x4xf32>
    %17 = arith.truncf %16 : vector<64x4xf32> to vector<64x4xbf16>
    %cst_14 = arith.constant dense<0.000000e+00> : vector<64x2xf32>
    %18 = tpu.matmul %17, %4, %cst_14 {dimension_numbers = #tpu.dot_dimension_numbers<[1], [0], [0], [1], [0, 0, 1, 1], [], []>} : vector<64x4xbf16>, vector<4x2xbf16>, vector<64x2xf32> -> vector<64x2xf32>
    %19 = vector.broadcast %5 : vector<1x2xf32> to vector<64x2xf32>
    %20 = arith.addf %18, %19 : vector<64x2xf32>
    %cst_15 = arith.constant 0.000000e+00 : f32
    %21 = vector.broadcast %cst_15 : f32 to vector<64x2xf32>
    %22 = arith.maximumf %20, %21 : vector<64x2xf32>
    %cst_16 = arith.constant 0.000000e+00 : f32
    %23 = vector.broadcast %cst_16 : f32 to vector<8x2xf32>
    %cst_17 = arith.constant 0.000000e+00 : f32
    %24 = vector.broadcast %cst_17 : f32 to vector<8x2xf32>
    %c8 = arith.constant 8 : index
    %c0_18 = arith.constant 0 : index
    %25 = vector.load %arg18[%c8, %c0_18] : memref<96x2xf32, #tpu.memory_space<vmem>>, vector<8x2xf32>
    tpu.vector_store %arg18[%c8, %c0_18], %23 {strides = array<i32>} : memref<96x2xf32, #tpu.memory_space<vmem>>, vector<8x2xf32>,
    %c16 = arith.constant 16 : index
    %c0_19 = arith.constant 0 : index
    %26 = vector.load %arg18[%c16, %c0_19] : memref<96x2xf32, #tpu.memory_space<vmem>>, vector<64x2xf32>
    tpu.vector_store %arg18[%c16, %c0_19], %22 {strides = array<i32>} : memref<96x2xf32, #tpu.memory_space<vmem>>, vector<64x2xf32>,
    %c80 = arith.constant 80 : index
    %c0_20 = arith.constant 0 : index
    %27 = vector.load %arg18[%c80, %c0_20] : memref<96x2xf32, #tpu.memory_space<vmem>>, vector<8x2xf32>
    tpu.vector_store %arg18[%c80, %c0_20], %24 {strides = array<i32>} : memref<96x2xf32, #tpu.memory_space<vmem>>, vector<8x2xf32>,
    %c0_21 = arith.constant 0 : index
    %c0_22 = arith.constant 0 : index
    %28 = vector.load %arg11[%c0_21, %c0_22] : memref<9x2xf32, #tpu.memory_space<vmem>>, vector<9x2xf32>
    %c0_23 = arith.constant 0 : index
    %c0_24 = arith.constant 0 : index
    %29 = vector.load %arg12[%c0_23, %c0_24] : memref<1x2xf32, #tpu.memory_space<vmem>>, vector<1x2xf32>
    %30 = tpu.iota {dimensions = array<i32: 0>} : vector<64x1xi32>
    %c8_i32 = arith.constant 8 : i32
    %c0_i32 = arith.constant 0 : i32
    %31 = arith.cmpi eq, %c8_i32, %c0_i32 : i32
    %c1_i32 = arith.constant 1 : i32
    %32 = arith.select %31, %c1_i32, %c8_i32 : i32
    %33 = vector.broadcast %32 : i32 to vector<64x1xi32>
    %34 = arith.remsi %30, %33 : vector<64x1xi32>
    %c0_i32_25 = arith.constant 0 : i32
    %35 = vector.broadcast %c0_i32_25 : i32 to vector<64x1xi32>
    %36 = arith.cmpi ne, %34, %35 : vector<64x1xi32>
    %c0_i32_26 = arith.constant 0 : i32
    %37 = vector.broadcast %c0_i32_26 : i32 to vector<64x1xi32>
    %38 = arith.cmpi slt, %34, %37 : vector<64x1xi32>
    %c0_i32_27 = arith.constant 0 : i32
    %39 = arith.cmpi slt, %32, %c0_i32_27 : i32
    %40 = vector.broadcast %39 : i1 to vector<64x1xi1>
    %41 = vector.broadcast %40 : vector<64x1xi1> to vector<64x1xi1>
    %42 = arith.xori %38, %41 : vector<64x1xi1>
    %43 = arith.andi %42, %36 : vector<64x1xi1>
    %44 = vector.broadcast %32 : i32 to vector<64x1xi32>
    %45 = arith.addi %34, %44 : vector<64x1xi32>
    %46 = arith.select %43, %45, %34 : vector<64x1xi1>, vector<64x1xi32>
    %c0_i32_28 = arith.constant 0 : i32
    %47 = vector.broadcast %c0_i32_28 : i32 to vector<64x1xi32>
    %48 = arith.cmpi sgt, %46, %47 : vector<64x1xi32>
    %c7_i32 = arith.constant 7 : i32
    %49 = vector.broadcast %c7_i32 : i32 to vector<64x1xi32>
    %50 = arith.cmpi slt, %46, %49 : vector<64x1xi32>
    %cst_29 = arith.constant 0.000000e+00 : f32
    %51 = vector.broadcast %cst_29 : f32 to vector<64x2xf32>
    %c7 = arith.constant 7 : index
    %c0_30 = arith.constant 0 : index
    %52 = vector.load %arg18[%c7, %c0_30] : memref<96x2xf32, #tpu.memory_space<vmem>>, vector<64x2xf32>
    %cst_31 = arith.constant 0.000000e+00 : f32
    %53 = vector.shape_cast %48 : vector<64x1xi1> to vector<64x1xi1>
    %54 = vector.broadcast %53 : vector<64x1xi1> to vector<64x2xi1>
    %55 = vector.broadcast %cst_31 : f32 to vector<64x2xf32>
    %56 = arith.select %54, %52, %55 : vector<64x2xi1>, vector<64x2xf32>
    %c8_32 = arith.constant 8 : index
    %c0_33 = arith.constant 0 : index
    %57 = vector.load %arg18[%c8_32, %c0_33] : memref<96x2xf32, #tpu.memory_space<vmem>>, vector<64x2xf32>
    %c9 = arith.constant 9 : index
    %c0_34 = arith.constant 0 : index
    %58 = vector.load %arg18[%c9, %c0_34] : memref<96x2xf32, #tpu.memory_space<vmem>>, vector<64x2xf32>
    %cst_35 = arith.constant 0.000000e+00 : f32
    %59 = vector.shape_cast %50 : vector<64x1xi1> to vector<64x1xi1>
    %60 = vector.broadcast %59 : vector<64x1xi1> to vector<64x2xi1>
    %61 = vector.broadcast %cst_35 : f32 to vector<64x2xf32>
    %62 = arith.select %60, %58, %61 : vector<64x2xi1>, vector<64x2xf32>
    %63 = vector.extract_strided_slice %28 {offsets = [0, 0], sizes = [1, 2], strides = [1, 1]} : vector<9x2xf32> to vector<1x2xf32>
    %64 = vector.broadcast %63 : vector<1x2xf32> to vector<64x2xf32>
    %65 = arith.mulf %56, %64 : vector<64x2xf32>
    %66 = arith.addf %51, %65 : vector<64x2xf32>
    %67 = vector.extract_strided_slice %28 {offsets = [1, 0], sizes = [1, 2], strides = [1, 1]} : vector<9x2xf32> to vector<1x2xf32>
    %68 = vector.broadcast %67 : vector<1x2xf32> to vector<64x2xf32>
    %69 = arith.mulf %57, %68 : vector<64x2xf32>
    %70 = arith.addf %66, %69 : vector<64x2xf32>
    %71 = vector.extract_strided_slice %28 {offsets = [2, 0], sizes = [1, 2], strides = [1, 1]} : vector<9x2xf32> to vector<1x2xf32>
    %72 = vector.broadcast %71 : vector<1x2xf32> to vector<64x2xf32>
    %73 = arith.mulf %62, %72 : vector<64x2xf32>
    %74 = arith.addf %70, %73 : vector<64x2xf32>
    %c15 = arith.constant 15 : index
    %c0_36 = arith.constant 0 : index
    %75 = vector.load %arg18[%c15, %c0_36] : memref<96x2xf32, #tpu.memory_space<vmem>>, vector<64x2xf32>
    %cst_37 = arith.constant 0.000000e+00 : f32
    %76 = vector.shape_cast %48 : vector<64x1xi1> to vector<64x1xi1>
    %77 = vector.broadcast %76 : vector<64x1xi1> to vector<64x2xi1>
    %78 = vector.broadcast %cst_37 : f32 to vector<64x2xf32>
    %79 = arith.select %77, %75, %78 : vector<64x2xi1>, vector<64x2xf32>
    %c16_38 = arith.constant 16 : index
    %c0_39 = arith.constant 0 : index
    %80 = vector.load %arg18[%c16_38, %c0_39] : memref<96x2xf32, #tpu.memory_space<vmem>>, vector<64x2xf32>
    %c17 = arith.constant 17 : index
    %c0_40 = arith.constant 0 : index
    %81 = vector.load %arg18[%c17, %c0_40] : memref<96x2xf32, #tpu.memory_space<vmem>>, vector<64x2xf32>
    %cst_41 = arith.constant 0.000000e+00 : f32
    %82 = vector.shape_cast %50 : vector<64x1xi1> to vector<64x1xi1>
    %83 = vector.broadcast %82 : vector<64x1xi1> to vector<64x2xi1>
    %84 = vector.broadcast %cst_41 : f32 to vector<64x2xf32>
    %85 = arith.select %83, %81, %84 : vector<64x2xi1>, vector<64x2xf32>
    %86 = vector.extract_strided_slice %28 {offsets = [3, 0], sizes = [1, 2], strides = [1, 1]} : vector<9x2xf32> to vector<1x2xf32>
    %87 = vector.broadcast %86 : vector<1x2xf32> to vector<64x2xf32>
    %88 = arith.mulf %79, %87 : vector<64x2xf32>
    %89 = arith.addf %74, %88 : vector<64x2xf32>
    %90 = vector.extract_strided_slice %28 {offsets = [4, 0], sizes = [1, 2], strides = [1, 1]} : vector<9x2xf32> to vector<1x2xf32>
    %91 = vector.broadcast %90 : vector<1x2xf32> to vector<64x2xf32>
    %92 = arith.mulf %80, %91 : vector<64x2xf32>
    %93 = arith.addf %89, %92 : vector<64x2xf32>
    %94 = vector.extract_strided_slice %28 {offsets = [5, 0], sizes = [1, 2], strides = [1, 1]} : vector<9x2xf32> to vector<1x2xf32>
    %95 = vector.broadcast %94 : vector<1x2xf32> to vector<64x2xf32>
    %96 = arith.mulf %85, %95 : vector<64x2xf32>
    %97 = arith.addf %93, %96 : vector<64x2xf32>
    %c23 = arith.constant 23 : index
    %c0_42 = arith.constant 0 : index
    %98 = vector.load %arg18[%c23, %c0_42] : memref<96x2xf32, #tpu.memory_space<vmem>>, vector<64x2xf32>
    %cst_43 = arith.constant 0.000000e+00 : f32
    %99 = vector.shape_cast %48 : vector<64x1xi1> to vector<64x1xi1>
    %100 = vector.broadcast %99 : vector<64x1xi1> to vector<64x2xi1>
    %101 = vector.broadcast %cst_43 : f32 to vector<64x2xf32>
    %102 = arith.select %100, %98, %101 : vector<64x2xi1>, vector<64x2xf32>
    %c24 = arith.constant 24 : index
    %c0_44 = arith.constant 0 : index
    %103 = vector.load %arg18[%c24, %c0_44] : memref<96x2xf32, #tpu.memory_space<vmem>>, vector<64x2xf32>
    %c25 = arith.constant 25 : index
    %c0_45 = arith.constant 0 : index
    %104 = vector.load %arg18[%c25, %c0_45] : memref<96x2xf32, #tpu.memory_space<vmem>>, vector<64x2xf32>
    %cst_46 = arith.constant 0.000000e+00 : f32
    %105 = vector.shape_cast %50 : vector<64x1xi1> to vector<64x1xi1>
    %106 = vector.broadcast %105 : vector<64x1xi1> to vector<64x2xi1>
    %107 = vector.broadcast %cst_46 : f32 to vector<64x2xf32>
    %108 = arith.select %106, %104, %107 : vector<64x2xi1>, vector<64x2xf32>
    %109 = vector.extract_strided_slice %28 {offsets = [6, 0], sizes = [1, 2], strides = [1, 1]} : vector<9x2xf32> to vector<1x2xf32>
    %110 = vector.broadcast %109 : vector<1x2xf32> to vector<64x2xf32>
    %111 = arith.mulf %102, %110 : vector<64x2xf32>
    %112 = arith.addf %97, %111 : vector<64x2xf32>
    %113 = vector.extract_strided_slice %28 {offsets = [7, 0], sizes = [1, 2], strides = [1, 1]} : vector<9x2xf32> to vector<1x2xf32>
    %114 = vector.broadcast %113 : vector<1x2xf32> to vector<64x2xf32>
    %115 = arith.mulf %103, %114 : vector<64x2xf32>
    %116 = arith.addf %112, %115 : vector<64x2xf32>
    %117 = vector.extract_strided_slice %28 {offsets = [8, 0], sizes = [1, 2], strides = [1, 1]} : vector<9x2xf32> to vector<1x2xf32>
    %118 = vector.broadcast %117 : vector<1x2xf32> to vector<64x2xf32>
    %119 = arith.mulf %108, %118 : vector<64x2xf32>
    %120 = arith.addf %116, %119 : vector<64x2xf32>
    %121 = vector.broadcast %29 : vector<1x2xf32> to vector<64x2xf32>
    %122 = arith.addf %120, %121 : vector<64x2xf32>
    %cst_47 = arith.constant 0.000000e+00 : f32
    %123 = vector.broadcast %cst_47 : f32 to vector<64x2xf32>
    %124 = arith.maximumf %122, %123 : vector<64x2xf32>
    %125 = tpu.concatenate %22, %124 in 1 : vector<64x2xf32>, vector<64x2xf32> -> vector<64x4xf32>
    %c0_48 = arith.constant 0 : index
    %c0_49 = arith.constant 0 : index
    %126 = vector.load %arg13[%c0_48, %c0_49] : memref<1x4xf32, #tpu.memory_space<vmem>>, vector<1x4xf32>
    %127 = vector.broadcast %126 : vector<1x4xf32> to vector<64x4xf32>
    %128 = arith.mulf %125, %127 : vector<64x4xf32>
    %c0_50 = arith.constant 0 : index
    %c0_51 = arith.constant 0 : index
    %129 = vector.load %arg14[%c0_50, %c0_51] : memref<1x4xf32, #tpu.memory_space<vmem>>, vector<1x4xf32>
    %130 = vector.broadcast %129 : vector<1x4xf32> to vector<64x4xf32>
    %131 = arith.addf %128, %130 : vector<64x4xf32>
    %cst_52 = arith.constant 0.000000e+00 : f32
    %132 = vector.broadcast %cst_52 : f32 to vector<64x4xf32>
    %133 = arith.maximumf %131, %132 : vector<64x4xf32>
    %134 = arith.truncf %133 : vector<64x4xf32> to vector<64x4xbf16>
    %c0_53 = arith.constant 0 : index
    %c0_54 = arith.constant 0 : index
    %135 = vector.load %arg15[%c0_53, %c0_54] : memref<4x8xbf16, #tpu.memory_space<vmem>>, vector<4x8xbf16>
    %cst_55 = arith.constant dense<0.000000e+00> : vector<64x8xf32>
    %136 = tpu.matmul %134, %135, %cst_55 {dimension_numbers = #tpu.dot_dimension_numbers<[1], [0], [0], [1], [0, 0, 1, 1], [], []>} : vector<64x4xbf16>, vector<4x8xbf16>, vector<64x8xf32> -> vector<64x8xf32>
    %c0_56 = arith.constant 0 : index
    %c0_57 = arith.constant 0 : index
    %137 = vector.load %arg16[%c0_56, %c0_57] : memref<1x8xf32, #tpu.memory_space<vmem>>, vector<1x8xf32>
    %138 = vector.broadcast %137 : vector<1x8xf32> to vector<64x8xf32>
    %139 = arith.addf %136, %138 : vector<64x8xf32>
    %140 = arith.addf %139, %6 : vector<64x8xf32>
    %c0_58 = arith.constant 0 : index
    %c0_59 = arith.constant 0 : index
    %141 = vector.load %arg17[%c0_58, %c0_59] : memref<64x8xf32, #tpu.memory_space<vmem>>, vector<64x8xf32>
    tpu.vector_store %arg17[%c0_58, %c0_59], %140 {strides = array<i32>} : memref<64x8xf32, #tpu.memory_space<vmem>>, vector<64x8xf32>,
    return
  }
  func.func @transform_0(%arg0: i32, %arg1: i32) -> (i32, i32) {
    %c1_i32 = arith.constant 1 : i32
    %0 = arith.muli %arg0, %c1_i32 : i32
    %1 = arith.addi %0, %arg1 : i32
    %c0_i32 = arith.constant 0 : i32
    %c0_i32_0 = arith.constant 0 : i32
    return %1, %c0_i32 : i32, i32
  }
  func.func @transform_1(%arg0: i32, %arg1: i32) -> (i32, i32, i32) {
    %c8_i32 = arith.constant 8 : i32
    %0 = arith.muli %arg0, %c8_i32 : i32
    %c8_i32_0 = arith.constant 8 : i32
    %1 = arith.muli %arg1, %c8_i32_0 : i32
    %c1_i32 = arith.constant 1 : i32
    %2 = arith.subi %1, %c1_i32 : i32
    %c0_i32 = arith.constant 0 : i32
    %3 = arith.maxsi %2, %c0_i32 : i32
    %4 = arith.addi %0, %3 : i32
    %c0_i32_1 = arith.constant 0 : i32
    %c0_i32_2 = arith.constant 0 : i32
    %c0_i32_3 = arith.constant 0 : i32
    return %4, %c0_i32_1, %c0_i32_2 : i32, i32, i32
  }
  func.func @transform_2(%arg0: i32, %arg1: i32) -> (i32, i32, i32) {
    %c8_i32 = arith.constant 8 : i32
    %0 = arith.muli %arg0, %c8_i32 : i32
    %c1_i32 = arith.constant 1 : i32
    %1 = arith.addi %arg1, %c1_i32 : i32
    %c8_i32_0 = arith.constant 8 : i32
    %2 = arith.muli %1, %c8_i32_0 : i32
    %c7_i32 = arith.constant 7 : i32
    %3 = arith.minsi %2, %c7_i32 : i32
    %4 = arith.addi %0, %3 : i32
    %c0_i32 = arith.constant 0 : i32
    %c0_i32_1 = arith.constant 0 : i32
    %c0_i32_2 = arith.constant 0 : i32
    return %4, %c0_i32, %c0_i32_1 : i32, i32, i32
  }
  func.func @transform_3(%arg0: i32, %arg1: i32) -> (i32, i32) {
    %c0_i32 = arith.constant 0 : i32
    %c0_i32_0 = arith.constant 0 : i32
    %c0_i32_1 = arith.constant 0 : i32
    return %c0_i32, %c0_i32_0 : i32, i32
  }
  func.func @transform_4(%arg0: i32, %arg1: i32) -> (i32, i32) {
    %c0_i32 = arith.constant 0 : i32
    %c0_i32_0 = arith.constant 0 : i32
    %c0_i32_1 = arith.constant 0 : i32
    return %c0_i32, %c0_i32_0 : i32, i32
  }
  func.func @transform_5(%arg0: i32, %arg1: i32) -> (i32, i32) {
    %c0_i32 = arith.constant 0 : i32
    %c0_i32_0 = arith.constant 0 : i32
    %c0_i32_1 = arith.constant 0 : i32
    return %c0_i32, %c0_i32_0 : i32, i32
  }
  func.func @transform_6(%arg0: i32, %arg1: i32) -> (i32, i32) {
    %c0_i32 = arith.constant 0 : i32
    %c0_i32_0 = arith.constant 0 : i32
    %c0_i32_1 = arith.constant 0 : i32
    return %c0_i32, %c0_i32_0 : i32, i32
  }
  func.func @transform_7(%arg0: i32, %arg1: i32) -> (i32, i32) {
    %c0_i32 = arith.constant 0 : i32
    %c0_i32_0 = arith.constant 0 : i32
    %c0_i32_1 = arith.constant 0 : i32
    return %c0_i32, %c0_i32_0 : i32, i32
  }
  func.func @transform_8(%arg0: i32, %arg1: i32) -> (i32, i32) {
    %c0_i32 = arith.constant 0 : i32
    %c0_i32_0 = arith.constant 0 : i32
    %c0_i32_1 = arith.constant 0 : i32
    return %c0_i32, %c0_i32_0 : i32, i32
  }
  func.func @transform_9(%arg0: i32, %arg1: i32) -> (i32, i32) {
    %c0_i32 = arith.constant 0 : i32
    %c0_i32_0 = arith.constant 0 : i32
    %c0_i32_1 = arith.constant 0 : i32
    return %c0_i32, %c0_i32_0 : i32, i32
  }
  func.func @transform_10(%arg0: i32, %arg1: i32) -> (i32, i32) {
    %c0_i32 = arith.constant 0 : i32
    %c0_i32_0 = arith.constant 0 : i32
    %c0_i32_1 = arith.constant 0 : i32
    return %c0_i32, %c0_i32_0 : i32, i32
  }
  func.func @transform_11(%arg0: i32, %arg1: i32) -> (i32, i32) {
    %c0_i32 = arith.constant 0 : i32
    %c0_i32_0 = arith.constant 0 : i32
    %c0_i32_1 = arith.constant 0 : i32
    return %c0_i32, %c0_i32_0 : i32, i32
  }
  func.func @transform_12(%arg0: i32, %arg1: i32) -> (i32, i32) {
    %c0_i32 = arith.constant 0 : i32
    %c0_i32_0 = arith.constant 0 : i32
    %c0_i32_1 = arith.constant 0 : i32
    return %c0_i32, %c0_i32_0 : i32, i32
  }
  func.func @transform_13(%arg0: i32, %arg1: i32) -> (i32, i32) {
    %c0_i32 = arith.constant 0 : i32
    %c0_i32_0 = arith.constant 0 : i32
    %c0_i32_1 = arith.constant 0 : i32
    return %c0_i32, %c0_i32_0 : i32, i32
  }
  func.func @transform_14(%arg0: i32, %arg1: i32) -> (i32, i32) {
    %c0_i32 = arith.constant 0 : i32
    %c0_i32_0 = arith.constant 0 : i32
    %c0_i32_1 = arith.constant 0 : i32
    return %c0_i32, %c0_i32_0 : i32, i32
  }
  func.func @transform_15(%arg0: i32, %arg1: i32) -> (i32, i32) {
    %c1_i32 = arith.constant 1 : i32
    %0 = arith.muli %arg0, %c1_i32 : i32
    %1 = arith.addi %0, %arg1 : i32
    %c0_i32 = arith.constant 0 : i32
    %c0_i32_0 = arith.constant 0 : i32
    return %1, %c0_i32 : i32, i32
  }
}

module attributes {stable_mosaic.version = 11 : i64} {
  func.func @_bottleneck_kernel(%arg0: i32, %arg1: i32, %arg2: memref<16x8xf32, #tpu.memory_space<vmem>>, %arg3: memref<1x4x8xf32, #tpu.memory_space<vmem>>, %arg4: memref<1x4x8xf32, #tpu.memory_space<vmem>>, %arg5: memref<1x8xf32, #tpu.memory_space<vmem>>, %arg6: memref<1x8xf32, #tpu.memory_space<vmem>>, %arg7: memref<8x4xbf16, #tpu.memory_space<vmem>>, %arg8: memref<1x4xf32, #tpu.memory_space<vmem>>, %arg9: memref<4x2xbf16, #tpu.memory_space<vmem>>, %arg10: memref<1x2xf32, #tpu.memory_space<vmem>>, %arg11: memref<9x2xf32, #tpu.memory_space<vmem>>, %arg12: memref<1x2xf32, #tpu.memory_space<vmem>>, %arg13: memref<1x4xf32, #tpu.memory_space<vmem>>, %arg14: memref<1x4xf32, #tpu.memory_space<vmem>>, %arg15: memref<4x8xbf16, #tpu.memory_space<vmem>>, %arg16: memref<1x8xf32, #tpu.memory_space<vmem>>, %arg17: memref<16x8xf32, #tpu.memory_space<vmem>>, %arg18: memref<36x2xf32, #tpu.memory_space<vmem>>) attributes {dimension_semantics = [#tpu.dimension_semantics<parallel>, #tpu.dimension_semantics<parallel>], iteration_bounds = array<i64: 2, 1>, scalar_prefetch = 0 : i64, scratch_operands = 1 : i64, tpu.core_type = #tpu.core_type<tc>, window_params = [{transform_indices = @transform_0, window_bounds = array<i64: 16, 8>}, {transform_indices = @transform_1, window_bounds = array<i64: 1, 4, 8>}, {transform_indices = @transform_2, window_bounds = array<i64: 1, 4, 8>}, {pipeline_mode = #tpu.pipeline_mode<synchronous>, transform_indices = @transform_3, window_bounds = array<i64: 1, 8>}, {pipeline_mode = #tpu.pipeline_mode<synchronous>, transform_indices = @transform_4, window_bounds = array<i64: 1, 8>}, {pipeline_mode = #tpu.pipeline_mode<synchronous>, transform_indices = @transform_5, window_bounds = array<i64: 8, 4>}, {pipeline_mode = #tpu.pipeline_mode<synchronous>, transform_indices = @transform_6, window_bounds = array<i64: 1, 4>}, {pipeline_mode = #tpu.pipeline_mode<synchronous>, transform_indices = @transform_7, window_bounds = array<i64: 4, 2>}, {pipeline_mode = #tpu.pipeline_mode<synchronous>, transform_indices = @transform_8, window_bounds = array<i64: 1, 2>}, {pipeline_mode = #tpu.pipeline_mode<synchronous>, transform_indices = @transform_9, window_bounds = array<i64: 9, 2>}, {pipeline_mode = #tpu.pipeline_mode<synchronous>, transform_indices = @transform_10, window_bounds = array<i64: 1, 2>}, {pipeline_mode = #tpu.pipeline_mode<synchronous>, transform_indices = @transform_11, window_bounds = array<i64: 1, 4>}, {pipeline_mode = #tpu.pipeline_mode<synchronous>, transform_indices = @transform_12, window_bounds = array<i64: 1, 4>}, {pipeline_mode = #tpu.pipeline_mode<synchronous>, transform_indices = @transform_13, window_bounds = array<i64: 4, 8>}, {pipeline_mode = #tpu.pipeline_mode<synchronous>, transform_indices = @transform_14, window_bounds = array<i64: 1, 8>}, {transform_indices = @transform_15, window_bounds = array<i64: 16, 8>}]} {
    %c0 = arith.constant 0 : index
    %c0_0 = arith.constant 0 : index
    %0 = vector.load %arg5[%c0, %c0_0] : memref<1x8xf32, #tpu.memory_space<vmem>>, vector<1x8xf32>
    %c0_1 = arith.constant 0 : index
    %c0_2 = arith.constant 0 : index
    %1 = vector.load %arg6[%c0_1, %c0_2] : memref<1x8xf32, #tpu.memory_space<vmem>>, vector<1x8xf32>
    %c0_3 = arith.constant 0 : index
    %c0_4 = arith.constant 0 : index
    %2 = vector.load %arg7[%c0_3, %c0_4] : memref<8x4xbf16, #tpu.memory_space<vmem>>, vector<8x4xbf16>
    %c0_5 = arith.constant 0 : index
    %c0_6 = arith.constant 0 : index
    %3 = vector.load %arg8[%c0_5, %c0_6] : memref<1x4xf32, #tpu.memory_space<vmem>>, vector<1x4xf32>
    %c0_7 = arith.constant 0 : index
    %c0_8 = arith.constant 0 : index
    %4 = vector.load %arg9[%c0_7, %c0_8] : memref<4x2xbf16, #tpu.memory_space<vmem>>, vector<4x2xbf16>
    %c0_9 = arith.constant 0 : index
    %c0_10 = arith.constant 0 : index
    %5 = vector.load %arg10[%c0_9, %c0_10] : memref<1x2xf32, #tpu.memory_space<vmem>>, vector<1x2xf32>
    %c0_11 = arith.constant 0 : index
    %c0_12 = arith.constant 0 : index
    %6 = vector.load %arg2[%c0_11, %c0_12] : memref<16x8xf32, #tpu.memory_space<vmem>>, vector<16x8xf32>
    %7 = vector.broadcast %0 : vector<1x8xf32> to vector<16x8xf32>
    %8 = arith.mulf %6, %7 : vector<16x8xf32>
    %9 = vector.broadcast %1 : vector<1x8xf32> to vector<16x8xf32>
    %10 = arith.addf %8, %9 : vector<16x8xf32>
    %cst = arith.constant 0.000000e+00 : f32
    %11 = vector.broadcast %cst : f32 to vector<16x8xf32>
    %12 = arith.maximumf %10, %11 : vector<16x8xf32>
    %13 = arith.truncf %12 : vector<16x8xf32> to vector<16x8xbf16>
    %cst_13 = arith.constant dense<0.000000e+00> : vector<16x4xf32>
    %14 = tpu.matmul %13, %2, %cst_13 {dimension_numbers = #tpu.dot_dimension_numbers<[1], [0], [0], [1], [0, 0, 1, 1], [], []>} : vector<16x8xbf16>, vector<8x4xbf16>, vector<16x4xf32> -> vector<16x4xf32>
    %15 = vector.broadcast %3 : vector<1x4xf32> to vector<16x4xf32>
    %16 = arith.addf %14, %15 : vector<16x4xf32>
    %17 = arith.truncf %16 : vector<16x4xf32> to vector<16x4xbf16>
    %cst_14 = arith.constant dense<0.000000e+00> : vector<16x2xf32>
    %18 = tpu.matmul %17, %4, %cst_14 {dimension_numbers = #tpu.dot_dimension_numbers<[1], [0], [0], [1], [0, 0, 1, 1], [], []>} : vector<16x4xbf16>, vector<4x2xbf16>, vector<16x2xf32> -> vector<16x2xf32>
    %19 = vector.broadcast %5 : vector<1x2xf32> to vector<16x2xf32>
    %20 = arith.addf %18, %19 : vector<16x2xf32>
    %cst_15 = arith.constant 0.000000e+00 : f32
    %21 = vector.broadcast %cst_15 : f32 to vector<16x2xf32>
    %22 = arith.maximumf %20, %21 : vector<16x2xf32>
    %cst_16 = arith.constant 0.000000e+00 : f32
    %23 = vector.broadcast %cst_16 : f32 to vector<4x2xf32>
    %cst_17 = arith.constant 0.000000e+00 : f32
    %24 = vector.broadcast %cst_17 : f32 to vector<4x2xf32>
    %c4 = arith.constant 4 : index
    %c0_18 = arith.constant 0 : index
    %25 = vector.load %arg18[%c4, %c0_18] : memref<36x2xf32, #tpu.memory_space<vmem>>, vector<4x2xf32>
    tpu.vector_store %arg18[%c4, %c0_18], %23 {strides = array<i32>} : memref<36x2xf32, #tpu.memory_space<vmem>>, vector<4x2xf32>,
    %c8 = arith.constant 8 : index
    %c0_19 = arith.constant 0 : index
    %26 = vector.load %arg18[%c8, %c0_19] : memref<36x2xf32, #tpu.memory_space<vmem>>, vector<16x2xf32>
    tpu.vector_store %arg18[%c8, %c0_19], %22 {strides = array<i32>} : memref<36x2xf32, #tpu.memory_space<vmem>>, vector<16x2xf32>,
    %c24 = arith.constant 24 : index
    %c0_20 = arith.constant 0 : index
    %27 = vector.load %arg18[%c24, %c0_20] : memref<36x2xf32, #tpu.memory_space<vmem>>, vector<4x2xf32>
    tpu.vector_store %arg18[%c24, %c0_20], %24 {strides = array<i32>} : memref<36x2xf32, #tpu.memory_space<vmem>>, vector<4x2xf32>,
    %c0_21 = arith.constant 0 : index
    %c0_22 = arith.constant 0 : index
    %28 = vector.load %arg11[%c0_21, %c0_22] : memref<9x2xf32, #tpu.memory_space<vmem>>, vector<9x2xf32>
    %c0_23 = arith.constant 0 : index
    %c0_24 = arith.constant 0 : index
    %29 = vector.load %arg12[%c0_23, %c0_24] : memref<1x2xf32, #tpu.memory_space<vmem>>, vector<1x2xf32>
    %30 = tpu.iota {dimensions = array<i32: 0>} : vector<16x1xi32>
    %c4_i32 = arith.constant 4 : i32
    %c0_i32 = arith.constant 0 : i32
    %31 = arith.cmpi eq, %c4_i32, %c0_i32 : i32
    %c1_i32 = arith.constant 1 : i32
    %32 = arith.select %31, %c1_i32, %c4_i32 : i32
    %33 = vector.broadcast %32 : i32 to vector<16x1xi32>
    %34 = arith.remsi %30, %33 : vector<16x1xi32>
    %c0_i32_25 = arith.constant 0 : i32
    %35 = vector.broadcast %c0_i32_25 : i32 to vector<16x1xi32>
    %36 = arith.cmpi ne, %34, %35 : vector<16x1xi32>
    %c0_i32_26 = arith.constant 0 : i32
    %37 = vector.broadcast %c0_i32_26 : i32 to vector<16x1xi32>
    %38 = arith.cmpi slt, %34, %37 : vector<16x1xi32>
    %c0_i32_27 = arith.constant 0 : i32
    %39 = arith.cmpi slt, %32, %c0_i32_27 : i32
    %40 = vector.broadcast %39 : i1 to vector<16x1xi1>
    %41 = vector.broadcast %40 : vector<16x1xi1> to vector<16x1xi1>
    %42 = arith.xori %38, %41 : vector<16x1xi1>
    %43 = arith.andi %42, %36 : vector<16x1xi1>
    %44 = vector.broadcast %32 : i32 to vector<16x1xi32>
    %45 = arith.addi %34, %44 : vector<16x1xi32>
    %46 = arith.select %43, %45, %34 : vector<16x1xi1>, vector<16x1xi32>
    %c0_i32_28 = arith.constant 0 : i32
    %47 = vector.broadcast %c0_i32_28 : i32 to vector<16x1xi32>
    %48 = arith.cmpi sgt, %46, %47 : vector<16x1xi32>
    %c3_i32 = arith.constant 3 : i32
    %49 = vector.broadcast %c3_i32 : i32 to vector<16x1xi32>
    %50 = arith.cmpi slt, %46, %49 : vector<16x1xi32>
    %cst_29 = arith.constant 0.000000e+00 : f32
    %51 = vector.broadcast %cst_29 : f32 to vector<16x2xf32>
    %c3 = arith.constant 3 : index
    %c0_30 = arith.constant 0 : index
    %52 = vector.load %arg18[%c3, %c0_30] : memref<36x2xf32, #tpu.memory_space<vmem>>, vector<16x2xf32>
    %cst_31 = arith.constant 0.000000e+00 : f32
    %53 = vector.shape_cast %48 : vector<16x1xi1> to vector<16x1xi1>
    %54 = vector.broadcast %53 : vector<16x1xi1> to vector<16x2xi1>
    %55 = vector.broadcast %cst_31 : f32 to vector<16x2xf32>
    %56 = arith.select %54, %52, %55 : vector<16x2xi1>, vector<16x2xf32>
    %c4_32 = arith.constant 4 : index
    %c0_33 = arith.constant 0 : index
    %57 = vector.load %arg18[%c4_32, %c0_33] : memref<36x2xf32, #tpu.memory_space<vmem>>, vector<16x2xf32>
    %c5 = arith.constant 5 : index
    %c0_34 = arith.constant 0 : index
    %58 = vector.load %arg18[%c5, %c0_34] : memref<36x2xf32, #tpu.memory_space<vmem>>, vector<16x2xf32>
    %cst_35 = arith.constant 0.000000e+00 : f32
    %59 = vector.shape_cast %50 : vector<16x1xi1> to vector<16x1xi1>
    %60 = vector.broadcast %59 : vector<16x1xi1> to vector<16x2xi1>
    %61 = vector.broadcast %cst_35 : f32 to vector<16x2xf32>
    %62 = arith.select %60, %58, %61 : vector<16x2xi1>, vector<16x2xf32>
    %63 = vector.extract_strided_slice %28 {offsets = [0, 0], sizes = [1, 2], strides = [1, 1]} : vector<9x2xf32> to vector<1x2xf32>
    %64 = vector.broadcast %63 : vector<1x2xf32> to vector<16x2xf32>
    %65 = arith.mulf %56, %64 : vector<16x2xf32>
    %66 = arith.addf %51, %65 : vector<16x2xf32>
    %67 = vector.extract_strided_slice %28 {offsets = [1, 0], sizes = [1, 2], strides = [1, 1]} : vector<9x2xf32> to vector<1x2xf32>
    %68 = vector.broadcast %67 : vector<1x2xf32> to vector<16x2xf32>
    %69 = arith.mulf %57, %68 : vector<16x2xf32>
    %70 = arith.addf %66, %69 : vector<16x2xf32>
    %71 = vector.extract_strided_slice %28 {offsets = [2, 0], sizes = [1, 2], strides = [1, 1]} : vector<9x2xf32> to vector<1x2xf32>
    %72 = vector.broadcast %71 : vector<1x2xf32> to vector<16x2xf32>
    %73 = arith.mulf %62, %72 : vector<16x2xf32>
    %74 = arith.addf %70, %73 : vector<16x2xf32>
    %c7 = arith.constant 7 : index
    %c0_36 = arith.constant 0 : index
    %75 = vector.load %arg18[%c7, %c0_36] : memref<36x2xf32, #tpu.memory_space<vmem>>, vector<16x2xf32>
    %cst_37 = arith.constant 0.000000e+00 : f32
    %76 = vector.shape_cast %48 : vector<16x1xi1> to vector<16x1xi1>
    %77 = vector.broadcast %76 : vector<16x1xi1> to vector<16x2xi1>
    %78 = vector.broadcast %cst_37 : f32 to vector<16x2xf32>
    %79 = arith.select %77, %75, %78 : vector<16x2xi1>, vector<16x2xf32>
    %c8_38 = arith.constant 8 : index
    %c0_39 = arith.constant 0 : index
    %80 = vector.load %arg18[%c8_38, %c0_39] : memref<36x2xf32, #tpu.memory_space<vmem>>, vector<16x2xf32>
    %c9 = arith.constant 9 : index
    %c0_40 = arith.constant 0 : index
    %81 = vector.load %arg18[%c9, %c0_40] : memref<36x2xf32, #tpu.memory_space<vmem>>, vector<16x2xf32>
    %cst_41 = arith.constant 0.000000e+00 : f32
    %82 = vector.shape_cast %50 : vector<16x1xi1> to vector<16x1xi1>
    %83 = vector.broadcast %82 : vector<16x1xi1> to vector<16x2xi1>
    %84 = vector.broadcast %cst_41 : f32 to vector<16x2xf32>
    %85 = arith.select %83, %81, %84 : vector<16x2xi1>, vector<16x2xf32>
    %86 = vector.extract_strided_slice %28 {offsets = [3, 0], sizes = [1, 2], strides = [1, 1]} : vector<9x2xf32> to vector<1x2xf32>
    %87 = vector.broadcast %86 : vector<1x2xf32> to vector<16x2xf32>
    %88 = arith.mulf %79, %87 : vector<16x2xf32>
    %89 = arith.addf %74, %88 : vector<16x2xf32>
    %90 = vector.extract_strided_slice %28 {offsets = [4, 0], sizes = [1, 2], strides = [1, 1]} : vector<9x2xf32> to vector<1x2xf32>
    %91 = vector.broadcast %90 : vector<1x2xf32> to vector<16x2xf32>
    %92 = arith.mulf %80, %91 : vector<16x2xf32>
    %93 = arith.addf %89, %92 : vector<16x2xf32>
    %94 = vector.extract_strided_slice %28 {offsets = [5, 0], sizes = [1, 2], strides = [1, 1]} : vector<9x2xf32> to vector<1x2xf32>
    %95 = vector.broadcast %94 : vector<1x2xf32> to vector<16x2xf32>
    %96 = arith.mulf %85, %95 : vector<16x2xf32>
    %97 = arith.addf %93, %96 : vector<16x2xf32>
    %c11 = arith.constant 11 : index
    %c0_42 = arith.constant 0 : index
    %98 = vector.load %arg18[%c11, %c0_42] : memref<36x2xf32, #tpu.memory_space<vmem>>, vector<16x2xf32>
    %cst_43 = arith.constant 0.000000e+00 : f32
    %99 = vector.shape_cast %48 : vector<16x1xi1> to vector<16x1xi1>
    %100 = vector.broadcast %99 : vector<16x1xi1> to vector<16x2xi1>
    %101 = vector.broadcast %cst_43 : f32 to vector<16x2xf32>
    %102 = arith.select %100, %98, %101 : vector<16x2xi1>, vector<16x2xf32>
    %c12 = arith.constant 12 : index
    %c0_44 = arith.constant 0 : index
    %103 = vector.load %arg18[%c12, %c0_44] : memref<36x2xf32, #tpu.memory_space<vmem>>, vector<16x2xf32>
    %c13 = arith.constant 13 : index
    %c0_45 = arith.constant 0 : index
    %104 = vector.load %arg18[%c13, %c0_45] : memref<36x2xf32, #tpu.memory_space<vmem>>, vector<16x2xf32>
    %cst_46 = arith.constant 0.000000e+00 : f32
    %105 = vector.shape_cast %50 : vector<16x1xi1> to vector<16x1xi1>
    %106 = vector.broadcast %105 : vector<16x1xi1> to vector<16x2xi1>
    %107 = vector.broadcast %cst_46 : f32 to vector<16x2xf32>
    %108 = arith.select %106, %104, %107 : vector<16x2xi1>, vector<16x2xf32>
    %109 = vector.extract_strided_slice %28 {offsets = [6, 0], sizes = [1, 2], strides = [1, 1]} : vector<9x2xf32> to vector<1x2xf32>
    %110 = vector.broadcast %109 : vector<1x2xf32> to vector<16x2xf32>
    %111 = arith.mulf %102, %110 : vector<16x2xf32>
    %112 = arith.addf %97, %111 : vector<16x2xf32>
    %113 = vector.extract_strided_slice %28 {offsets = [7, 0], sizes = [1, 2], strides = [1, 1]} : vector<9x2xf32> to vector<1x2xf32>
    %114 = vector.broadcast %113 : vector<1x2xf32> to vector<16x2xf32>
    %115 = arith.mulf %103, %114 : vector<16x2xf32>
    %116 = arith.addf %112, %115 : vector<16x2xf32>
    %117 = vector.extract_strided_slice %28 {offsets = [8, 0], sizes = [1, 2], strides = [1, 1]} : vector<9x2xf32> to vector<1x2xf32>
    %118 = vector.broadcast %117 : vector<1x2xf32> to vector<16x2xf32>
    %119 = arith.mulf %108, %118 : vector<16x2xf32>
    %120 = arith.addf %116, %119 : vector<16x2xf32>
    %121 = vector.broadcast %29 : vector<1x2xf32> to vector<16x2xf32>
    %122 = arith.addf %120, %121 : vector<16x2xf32>
    %cst_47 = arith.constant 0.000000e+00 : f32
    %123 = vector.broadcast %cst_47 : f32 to vector<16x2xf32>
    %124 = arith.maximumf %122, %123 : vector<16x2xf32>
    %125 = tpu.concatenate %22, %124 in 1 : vector<16x2xf32>, vector<16x2xf32> -> vector<16x4xf32>
    %c0_48 = arith.constant 0 : index
    %c0_49 = arith.constant 0 : index
    %126 = vector.load %arg13[%c0_48, %c0_49] : memref<1x4xf32, #tpu.memory_space<vmem>>, vector<1x4xf32>
    %127 = vector.broadcast %126 : vector<1x4xf32> to vector<16x4xf32>
    %128 = arith.mulf %125, %127 : vector<16x4xf32>
    %c0_50 = arith.constant 0 : index
    %c0_51 = arith.constant 0 : index
    %129 = vector.load %arg14[%c0_50, %c0_51] : memref<1x4xf32, #tpu.memory_space<vmem>>, vector<1x4xf32>
    %130 = vector.broadcast %129 : vector<1x4xf32> to vector<16x4xf32>
    %131 = arith.addf %128, %130 : vector<16x4xf32>
    %cst_52 = arith.constant 0.000000e+00 : f32
    %132 = vector.broadcast %cst_52 : f32 to vector<16x4xf32>
    %133 = arith.maximumf %131, %132 : vector<16x4xf32>
    %134 = arith.truncf %133 : vector<16x4xf32> to vector<16x4xbf16>
    %c0_53 = arith.constant 0 : index
    %c0_54 = arith.constant 0 : index
    %135 = vector.load %arg15[%c0_53, %c0_54] : memref<4x8xbf16, #tpu.memory_space<vmem>>, vector<4x8xbf16>
    %cst_55 = arith.constant dense<0.000000e+00> : vector<16x8xf32>
    %136 = tpu.matmul %134, %135, %cst_55 {dimension_numbers = #tpu.dot_dimension_numbers<[1], [0], [0], [1], [0, 0, 1, 1], [], []>} : vector<16x4xbf16>, vector<4x8xbf16>, vector<16x8xf32> -> vector<16x8xf32>
    %c0_56 = arith.constant 0 : index
    %c0_57 = arith.constant 0 : index
    %137 = vector.load %arg16[%c0_56, %c0_57] : memref<1x8xf32, #tpu.memory_space<vmem>>, vector<1x8xf32>
    %138 = vector.broadcast %137 : vector<1x8xf32> to vector<16x8xf32>
    %139 = arith.addf %136, %138 : vector<16x8xf32>
    %140 = arith.addf %139, %6 : vector<16x8xf32>
    %c0_58 = arith.constant 0 : index
    %c0_59 = arith.constant 0 : index
    %141 = vector.load %arg17[%c0_58, %c0_59] : memref<16x8xf32, #tpu.memory_space<vmem>>, vector<16x8xf32>
    tpu.vector_store %arg17[%c0_58, %c0_59], %140 {strides = array<i32>} : memref<16x8xf32, #tpu.memory_space<vmem>>, vector<16x8xf32>,
    return
  }
  func.func @transform_0(%arg0: i32, %arg1: i32) -> (i32, i32) {
    %c1_i32 = arith.constant 1 : i32
    %0 = arith.muli %arg0, %c1_i32 : i32
    %1 = arith.addi %0, %arg1 : i32
    %c0_i32 = arith.constant 0 : i32
    %c0_i32_0 = arith.constant 0 : i32
    return %1, %c0_i32 : i32, i32
  }
  func.func @transform_1(%arg0: i32, %arg1: i32) -> (i32, i32, i32) {
    %c4_i32 = arith.constant 4 : i32
    %0 = arith.muli %arg0, %c4_i32 : i32
    %c4_i32_0 = arith.constant 4 : i32
    %1 = arith.muli %arg1, %c4_i32_0 : i32
    %c1_i32 = arith.constant 1 : i32
    %2 = arith.subi %1, %c1_i32 : i32
    %c0_i32 = arith.constant 0 : i32
    %3 = arith.maxsi %2, %c0_i32 : i32
    %4 = arith.addi %0, %3 : i32
    %c0_i32_1 = arith.constant 0 : i32
    %c0_i32_2 = arith.constant 0 : i32
    %c0_i32_3 = arith.constant 0 : i32
    return %4, %c0_i32_1, %c0_i32_2 : i32, i32, i32
  }
  func.func @transform_2(%arg0: i32, %arg1: i32) -> (i32, i32, i32) {
    %c4_i32 = arith.constant 4 : i32
    %0 = arith.muli %arg0, %c4_i32 : i32
    %c1_i32 = arith.constant 1 : i32
    %1 = arith.addi %arg1, %c1_i32 : i32
    %c4_i32_0 = arith.constant 4 : i32
    %2 = arith.muli %1, %c4_i32_0 : i32
    %c3_i32 = arith.constant 3 : i32
    %3 = arith.minsi %2, %c3_i32 : i32
    %4 = arith.addi %0, %3 : i32
    %c0_i32 = arith.constant 0 : i32
    %c0_i32_1 = arith.constant 0 : i32
    %c0_i32_2 = arith.constant 0 : i32
    return %4, %c0_i32, %c0_i32_1 : i32, i32, i32
  }
  func.func @transform_3(%arg0: i32, %arg1: i32) -> (i32, i32) {
    %c0_i32 = arith.constant 0 : i32
    %c0_i32_0 = arith.constant 0 : i32
    %c0_i32_1 = arith.constant 0 : i32
    return %c0_i32, %c0_i32_0 : i32, i32
  }
  func.func @transform_4(%arg0: i32, %arg1: i32) -> (i32, i32) {
    %c0_i32 = arith.constant 0 : i32
    %c0_i32_0 = arith.constant 0 : i32
    %c0_i32_1 = arith.constant 0 : i32
    return %c0_i32, %c0_i32_0 : i32, i32
  }
  func.func @transform_5(%arg0: i32, %arg1: i32) -> (i32, i32) {
    %c0_i32 = arith.constant 0 : i32
    %c0_i32_0 = arith.constant 0 : i32
    %c0_i32_1 = arith.constant 0 : i32
    return %c0_i32, %c0_i32_0 : i32, i32
  }
  func.func @transform_6(%arg0: i32, %arg1: i32) -> (i32, i32) {
    %c0_i32 = arith.constant 0 : i32
    %c0_i32_0 = arith.constant 0 : i32
    %c0_i32_1 = arith.constant 0 : i32
    return %c0_i32, %c0_i32_0 : i32, i32
  }
  func.func @transform_7(%arg0: i32, %arg1: i32) -> (i32, i32) {
    %c0_i32 = arith.constant 0 : i32
    %c0_i32_0 = arith.constant 0 : i32
    %c0_i32_1 = arith.constant 0 : i32
    return %c0_i32, %c0_i32_0 : i32, i32
  }
  func.func @transform_8(%arg0: i32, %arg1: i32) -> (i32, i32) {
    %c0_i32 = arith.constant 0 : i32
    %c0_i32_0 = arith.constant 0 : i32
    %c0_i32_1 = arith.constant 0 : i32
    return %c0_i32, %c0_i32_0 : i32, i32
  }
  func.func @transform_9(%arg0: i32, %arg1: i32) -> (i32, i32) {
    %c0_i32 = arith.constant 0 : i32
    %c0_i32_0 = arith.constant 0 : i32
    %c0_i32_1 = arith.constant 0 : i32
    return %c0_i32, %c0_i32_0 : i32, i32
  }
  func.func @transform_10(%arg0: i32, %arg1: i32) -> (i32, i32) {
    %c0_i32 = arith.constant 0 : i32
    %c0_i32_0 = arith.constant 0 : i32
    %c0_i32_1 = arith.constant 0 : i32
    return %c0_i32, %c0_i32_0 : i32, i32
  }
  func.func @transform_11(%arg0: i32, %arg1: i32) -> (i32, i32) {
    %c0_i32 = arith.constant 0 : i32
    %c0_i32_0 = arith.constant 0 : i32
    %c0_i32_1 = arith.constant 0 : i32
    return %c0_i32, %c0_i32_0 : i32, i32
  }
  func.func @transform_12(%arg0: i32, %arg1: i32) -> (i32, i32) {
    %c0_i32 = arith.constant 0 : i32
    %c0_i32_0 = arith.constant 0 : i32
    %c0_i32_1 = arith.constant 0 : i32
    return %c0_i32, %c0_i32_0 : i32, i32
  }
  func.func @transform_13(%arg0: i32, %arg1: i32) -> (i32, i32) {
    %c0_i32 = arith.constant 0 : i32
    %c0_i32_0 = arith.constant 0 : i32
    %c0_i32_1 = arith.constant 0 : i32
    return %c0_i32, %c0_i32_0 : i32, i32
  }
  func.func @transform_14(%arg0: i32, %arg1: i32) -> (i32, i32) {
    %c0_i32 = arith.constant 0 : i32
    %c0_i32_0 = arith.constant 0 : i32
    %c0_i32_1 = arith.constant 0 : i32
    return %c0_i32, %c0_i32_0 : i32, i32
  }
  func.func @transform_15(%arg0: i32, %arg1: i32) -> (i32, i32) {
    %c1_i32 = arith.constant 1 : i32
    %0 = arith.muli %arg0, %c1_i32 : i32
    %1 = arith.addi %0, %arg1 : i32
    %c0_i32 = arith.constant 0 : i32
    %c0_i32_0 = arith.constant 0 : i32
    return %1, %c0_i32 : i32, i32
  }
}

</mosaic_0001>

<bundles_post_ra>
// kernel: hourglass_forward.8
= control target key start
LH: loop header
LB: loop body
LE: loop exit
PB: predicated region body
PF: predicated region fallthrough
CT: control target
= control target key end

     0   :  { %s1620_s16 = smov 0   ;;  %s1622_s17 = smov 0   ;;  %s2178_s0 = inlined_call_operand.vmem [shape: f32[128,8], index: 0, kind: input, shape index: {}, may-alias: {0,1,2}]   ;;  %s2179_s1 = inlined_call_operand.vmem [shape: f32[16,8,8], index: 1, kind: input, shape index: {}, may-alias: {0,1,2}]   ;;  %s2180_s2 = inlined_call_operand.vmem [shape: f32[16,8,8], index: 2, kind: input, shape index: {}, may-alias: {0,1,2}]   ;;  %s2181_s3 = inlined_call_operand.vmem [shape: f32[1,8], index: 3, kind: input, shape index: {}]   ;;  %s2182_s4 = inlined_call_operand.vmem [shape: f32[1,8], index: 4, kind: input, shape index: {}]   ;;  %s2183_s5 = inlined_call_operand.vmem [shape: bf16[8,4], index: 5, kind: input, shape index: {}]   ;;  %s2184_s6 = inlined_call_operand.vmem [shape: f32[1,4], index: 6, kind: input, shape index: {}]   ;;  %s2185_s7 = inlined_call_operand.vmem [shape: bf16[4,2], index: 7, kind: input, shape index: {}]   ;;  %s2186_s8 = inlined_call_operand.vmem [shape: f32[1,2], index: 8, kind: input, shape index: {}]   ;;  %s2187_s9 = inlined_call_operand.vmem [shape: f32[9,2], index: 9, kind: input, shape index: {}]   ;;  %s2188_s10 = inlined_call_operand.vmem [shape: f32[1,2], index: 10, kind: input, shape index: {}]   ;;  %s2189_s11 = inlined_call_operand.vmem [shape: f32[1,4], index: 11, kind: input, shape index: {}]   ;;  %s2190_s12 = inlined_call_operand.vmem [shape: f32[1,4], index: 12, kind: input, shape index: {}]   ;;  %s2191_s13 = inlined_call_operand.vmem [shape: bf16[4,8], index: 13, kind: input, shape index: {}]   ;;  %s2192_s14 = inlined_call_operand.vmem [shape: f32[1,8], index: 14, kind: input, shape index: {}]   ;;  %s2193_s15 = inlined_call_operand.vmem [shape: f32[128,8], index: 15, kind: output, shape index: {}]  }
   0x1   :  { %s1624_s1 = smov 0  }
   0x2 LB: > { %s37_s18 = sadd.s32 1, %s1532_s17  ;;  %p1457_p0 = scmp.ge.s32.totalorder %s1536_s1, 1  ;;  %s1536_s1 = sphi %s1624_s1, %s25_s1   ;;  %s1532_s17 = sphi %s1622_s17, %s2252_s17   ;;  %s1528_s16 = sphi %s1620_s16, %s2251_s16  }
   0x3   : > { %p39_p1 = scmp.ge.s32.totalorder %s37_s18, 2  ;;  %p522_p2 = scmp.lt.s32.totalorder %s1536_s1, 3 }
   0x5   : > { %s2254_s18 = smov (%p39_p1, %s37_s18), 0  ;;  %p523_p3 = pnand %p1457_p0, %p522_p2 }
   0x7   : > { %526 = sbr.rel (%p523_p3) target bundleno = 644 (0x284), region = 80 }
   0xc   : > { %v643_v0 = vld [vmem:[%s2183_s5] sm:$0xf]  ;;  %vm705_vm0 = vcmask 1043456   ;;  %s1458_s20 = sshll.u32 %s1528_s16, 3  ;;  %vm692_vm1 = vcmask 64512   ;;  %vm758_vm2 = vcmask 1041408  }
   0xd   : > { %v707_v1 = vsel %vm705_vm0, %v643_v0, 0  ;;  %p594_p4 = scmp.lt.s32.totalorder %s1458_s20, 15  ;;  %v1505_v2 = vld [vmem:[%s2181_s3] ss:$0 sm:$0xff]  ;;  %vm745_vm3 = vcmask 31744   ;;  %vm799_vm4 = vcmask 15360   ;;  %v813_v0 = vlaneseq }
   0xe   : > { %716 = vmatpush.bf16.msra.mxu0 %v707_v1  ;;  %1476 = vmatpush.bf16.msra.mxu3 %v707_v1  ;;  %v1506_v3 = vld [vmem:[%s2182_s4] ss:$0 sm:$0xff]  ;;  %v1538_v63 = vmov 0.0   ;;  %s1539_s29 = smov 2  }
   0xf   : > { %s2256_s20 = smov (!%p594_p4, %s1458_s20), 15  ;;  %v645_v26 = vld [vmem:[%s2185_s7] sm:$0x3]  ;;  %800 = vst.msk [vmem:[#allocation2 + $0x8] sm:$0xff] %vm799_vm4, %v1538_v63  ;;  %v1706_v1 = vshrl.u32 %v813_v0, 7 }
  0x10   : > { %s1459_s23 = sshll.u32 %s2256_s20, 3  ;;  %v760_v27 = vsel %vm758_vm2, %v645_v26, 0  ;;  %v1507_v43 = vld [vmem:[%s2184_s6] ss:$0 sm:$0xff]  ;;  %809 = vst.msk [vmem:[#allocation2 + $0x50] sm:$0xff] %vm799_vm4, %v1538_v63 }
  0x11   : > { %s1652_s26 = scalar_lea.vmem %s2178_s0, %s1459_s23  ;;  %1477 = vmatpush.bf16.msra.mxu1 %v760_v27  ;;  %v817_v26 = vadd.s32 24, %v1706_v1  ;;  %s637_s28 = scalar_lea.vmem %s2193_s15, %s1459_s23 }
  0x12   : > { %v1658_v4 = vld [vmem:[%s1652_s26] sm:$0xff]  ;;  %v1661_v5 = vld [vmem:[%s1652_s26 + $0x8] sm:$0xff]  ;;  %v1664_v6 = vld [vmem:[%s1652_s26 + $0x10] sm:$0xff]  ;;  %769 = vmatpush.bf16.msrb.mxu0 %v760_v27 }
  0x13   : > { %2204 = vst [vmem:[#allocation3_spill] sm:$0xff] %v1661_v5  ;;  %v658_v7 = vmul.f32 %v1505_v2, %v1658_v4  ;;  %v659_v8 = vmul.f32 %v1505_v2, %v1661_v5  ;;  %v1669_v9 = vld [vmem:[%s1652_s26 + $0x18] sm:$0xff]  ;;  %v660_v10 = vmul.f32 %v1505_v2, %v1664_v6  ;;  %v1674_v21 = vld [vmem:[%s1652_s26 + $0x20] sm:$0xff]  ;;  %v1677_v22 = vld [vmem:[%s1652_s26 + $0x28] sm:$0xff] }
  0x14   : > { %v661_v11 = vmul.f32 %v1505_v2, %v1669_v9  ;;  %v662_v24 = vmul.f32 %v1505_v2, %v1674_v21  ;;  %v663_v25 = vmul.f32 %v1505_v2, %v1677_v22  ;;  %v1688_v33 = vld [vmem:[%s1652_s26 + $0x30] sm:$0xff]  ;;  %v1691_v34 = vld [vmem:[%s1652_s26 + $0x38] sm:$0xff] }
  0x15   : > { %v669_v12 = vadd.f32 %v1506_v3, %v658_v7  ;;  %v670_v13 = vadd.f32 %v1506_v3, %v659_v8  ;;  %v671_v14 = vadd.f32 %v1506_v3, %v660_v10  ;;  %2205 = vst [vmem:[#allocation4_spill] sm:$0xff] %v1688_v33  ;;  %v664_v35 = vmul.f32 %v1505_v2, %v1688_v33 }
  0x16   : > { %v672_v15 = vadd.f32 %v1506_v3, %v661_v11  ;;  %v673_v28 = vadd.f32 %v1506_v3, %v662_v24  ;;  %v674_v29 = vadd.f32 %v1506_v3, %v663_v25  ;;  %2206 = vst [vmem:[#allocation5_spill] sm:$0xff] %v1691_v34  ;;  %v665_v36 = vmul.f32 %v1505_v2, %v1691_v34  ;;  %v1711_v2 = vld [vmem:[%s2186_s8] ss:$0 sm:$0xff] }
  0x17   : > { %v677_v16 = vmax.f32 %v669_v12, 0.0  ;;  %v678_v17 = vmax.f32 %v670_v13, 0.0  ;;  %v679_v18 = vmax.f32 %v671_v14, 0.0  ;;  %v675_v37 = vadd.f32 %v1506_v3, %v664_v35  ;;  %v810_v11 = vld [vmem:[%s2187_s9] sm:$0xff] }
  0x18   : > { %v680_v19 = vmax.f32 %v672_v15, 0.0  ;;  %v681_v30 = vmax.f32 %v673_v28, 0.0  ;;  %v682_v31 = vmax.f32 %v674_v29, 0.0  ;;  %v676_v38 = vadd.f32 %v1506_v3, %v665_v36  ;;  %v934_v13 = vld [vmem:[#allocation2 + $0x7] sm:$0xff] }
  0x19   : > { %v685_v20 = vpack.c.bf16 %v678_v17, %v677_v16  ;;  %v683_v39 = vmax.f32 %v675_v37, 0.0  ;;  %v826_v7 = vand.u32 7, %v1706_v1  ;;  %v1728_v14 = vperm.slane %v810_v11, 0  ;;  %v1895_v29 = vld [vmem:[%s2187_s9 + $0x8] ss:$0 sm:$0xff] }
  0x1a   : > { %v686_v23 = vpack.c.bf16 %v680_v19, %v679_v18  ;;  %v687_v32 = vpack.c.bf16 %v682_v31, %v681_v30  ;;  %v684_v40 = vmax.f32 %v676_v38, 0.0  ;;  %v1730_v15 = vperm.slane %v810_v11, 1  ;;  %v966_v18 = vld [vmem:[#allocation2 + $0x8] sm:$0xff] }
  0x1b   : > { %1462 = vmatmul.msk.bf16.vlgmr.msra.gmra.mxu0 %vm692_vm1, %v685_v20  ;;  %vm1721_vm5 = vcmp.gt.s32.totalorder %v826_v7, 0  ;;  %v1735_v19 = vadd.s32 8, %v1706_v1  ;;  %v816_v25 = vadd.s32 16, %v1706_v1  ;;  %v1745_v27 = vperm.slane %v810_v11, 2 }
  0x1c   : > { %1463 = vmatmul.msk.bf16.vlgmr.msra.gmra.mxu3 %vm692_vm1, %v686_v23  ;;  %v688_v41 = vpack.c.bf16 %v684_v40, %v683_v39  ;;  %v958_v17 = vsel %vm1721_vm5, %v934_v13, 0.0  ;;  %vm1748_vm6 = vcmp.lt.s32.totalorder %v826_v7, 7  ;;  %v1024_v31 = vmul.f32 %v1730_v15, %v966_v18 }
  0x1d   : > { %v1007_v30 = vmul.f32 %v1728_v14, %v958_v17  ;;  %v833_v35 = vand.u32 7, %v1735_v19  ;;  %v1760_v36 = vadd.s32 32, %v1706_v1  ;;  %v840_v38 = vand.u32 7, %v816_v25 }
  0x1e   : > { %v847_v40 = vand.u32 7, %v817_v26 }
  0x1f   : > { %vm1768_vm7 = vcmp.gt.s32.totalorder %v833_v35, 0  ;;  %vm1781_vm8 = vcmp.gt.s32.totalorder %v840_v38, 0  ;;  %vm1798_vm10 = vcmp.lt.s32.totalorder %v840_v38, 7  ;;  %vm1863_vm13 = vcmp.lt.s32.totalorder %v833_v35, 7 }
  0x20   : > { %vm1792_vm9 = vcmp.gt.s32.totalorder %v847_v40, 0  ;;  %vm1802_vm11 = vcmp.lt.s32.totalorder %v847_v40, 7 }
  0x2c   : > { %1464 = vmatmul.msk.bf16.gmra.mxu3 %vm692_vm1, %v687_v32 }
  0x3c   : > { %1465 = vmatmul.msk.bf16.gmra.mxu3 %vm692_vm1, %v688_v41 }
  0x98   : > { %v718_v42 = vpop.f32.mrf.mxu0 }
  0x99   : > { %v719_v46 = vadd.f32 %v1507_v43, %v718_v42  ;;  %v1032_v42 = vadd.f32 %v1024_v31, %v1007_v30 }
  0x9f   : > { %v723_v44 = vpop.f32.mrf.mxu3 }
  0xa0   : > { %v720_v45 = vpop.f32.mrf.mxu0  ;;  %v724_v50 = vadd.f32 %v1507_v43, %v723_v44 }
  0xa1   : > { %v721_v47 = vadd.f32 %v1507_v43, %v720_v45 }
  0xa3   : > { %v738_v48 = vpack.c.bf16 %v721_v47, %v719_v46  ;;  %v1775_v47 = vperm.slane %v810_v11, 3 }
  0xa5   : > { %1466 = vmatmul.msk.bf16.vlgmr.msrb.gmra.mxu0 %vm745_vm3, %v738_v48  ;;  %v1778_v48 = vadd.s32 40, %v1706_v1 }
  0xa7   : > { %v725_v49 = vpop.f32.mrf.mxu3  ;;  %v2199_v7 = vand.u32 7, %v1778_v48 }
  0xa8   : > { %v726_v51 = vadd.f32 %v1507_v43, %v725_v49  ;;  %v854_v49 = vand.u32 7, %v1760_v36 }
  0xa9   : > { %vm1899_vm15 = vcmp.gt.s32.totalorder %v2199_v7, 0 }
  0xaa   : > { %v739_v52 = vpack.c.bf16 %v726_v51, %v724_v50  ;;  %v1785_v51 = vperm.slane %v810_v11, 4  ;;  %vm1820_vm12 = vcmp.gt.s32.totalorder %v854_v49, 0  ;;  %vm1873_vm14 = vcmp.lt.s32.totalorder %v854_v49, 7 }
  0xac   : > { %1467 = vmatmul.msk.bf16.vlgmr.msra.gmra.mxu1 %vm745_vm3, %v739_v52  ;;  %v1787_v52 = vperm.slane %v810_v11, 7 }
  0xaf   : > { %v728_v53 = vpop.f32.mrf.mxu3 }
  0xb0   : > { %v729_v55 = vadd.f32 %v1507_v43, %v728_v53 }
  0xb7   : > { %v730_v54 = vpop.f32.mrf.mxu3 }
  0xb8   : > { %v731_v56 = vadd.f32 %v1507_v43, %v730_v54 }
  0xba   : > { %v740_v57 = vpack.c.bf16 %v731_v56, %v729_v55 }
  0xbc   : > { %1468 = vmatmul.msk.bf16.gmra.mxu1 %vm745_vm3, %v740_v57 }
  0xbf   : > { %v733_v58 = vpop.f32.mrf.mxu3 }
  0xc0   : > { %v734_v60 = vadd.f32 %v1507_v43, %v733_v58 }
  0xc7   : > { %v735_v59 = vpop.f32.mrf.mxu3 }
  0xc8   : > { %v736_v61 = vadd.f32 %v1507_v43, %v735_v59 }
  0xca   : > { %v741_v62 = vpack.c.bf16 %v736_v61, %v734_v60  ;;  %v1806_v61 = vperm.slane %v810_v11, 5 }
  0xcc   : > { %1469 = vmatmul.msk.bf16.gmra.mxu1 %vm745_vm3, %v741_v62  ;;  %v1808_v62 = vperm.slane %v810_v11, 6 }
 0x122   : > { %v771_v3 = vpop.f32.mrf.mxu0 }
 0x123   : > { %v1715_v8 = vadd.f32 %v1711_v2, %v771_v3 }
 0x125   : > { %v2195_v10 = vmax.f32 %v1715_v8, 0.0 }
 0x127   : > { %801 = vst.msk [vmem:[#allocation2 + $0x10] sm:$0xff] %vm799_vm4, %v2195_v10 }
 0x129   : > { %v776_v16 = vpop.f32.mrf.mxu1 }
 0x12a   : > { %v1738_v20 = vadd.f32 %v1711_v2, %v776_v16  ;;  %v773_v23 = vpop.f32.mrf.mxu0 }
 0x12b   : > { %v1741_v24 = vadd.f32 %v1711_v2, %v773_v23 }
 0x12c   : > { %v2198_v28 = vmax.f32 %v1738_v20, 0.0 }
 0x12d   : > { %v2194_v32 = vmax.f32 %v1741_v24, 0.0 }
 0x12e   : > { %803 = vst.msk [vmem:[#allocation2 + $0x20] sm:$0xff] %vm799_vm4, %v2198_v28  ;;  %v974_v37 = vld [vmem:[#allocation2 + $0x9] sm:$0xff] }
 0x12f   : > { %802 = vst.msk [vmem:[#allocation2 + $0x18] sm:$0xff] %vm799_vm4, %v2194_v32  ;;  %v998_v39 = vsel %vm1748_vm6, %v974_v37, 0.0  ;;  %v935_v41 = vld [vmem:[#allocation2 + $0xf] sm:$0xff] }
 0x130   : > { %v1041_v43 = vmul.f32 %v1745_v27, %v998_v39  ;;  %v967_v53 = vld [vmem:[#allocation2 + $0x10] sm:$0xff]  ;;  %v1058_v54 = vsel %vm1721_vm5, %v935_v41, 0.0  ;;  %v959_v58 = vsel %vm1768_vm7, %v935_v41, 0.0 }
 0x131   : > { %v778_v44 = vpop.f32.mrf.mxu1  ;;  %v1025_v16 = vmul.f32 %v1730_v15, %v967_v53  ;;  %v1077_v11 = vmul.f32 %v1775_v47, %v1058_v54  ;;  %v1008_v26 = vmul.f32 %v1728_v14, %v959_v58  ;;  %v1094_v38 = vmul.f32 %v1785_v51, %v967_v53 }
 0x132   : > { %v1773_v46 = vadd.f32 %v1711_v2, %v778_v44  ;;  %v1049_v57 = vadd.f32 %v1041_v43, %v1032_v42 }
 0x134   : > { %v2196_v55 = vmax.f32 %v1773_v46, 0.0  ;;  %v1085_v37 = vadd.f32 %v1077_v11, %v1049_v57  ;;  %v1861_v11 = vadd.s32 48, %v1706_v1 }
 0x135   : > { %v1837_v30 = vld [vmem:[#allocation2 + $0x20] sm:$0xff] }
 0x136   : > { %804 = vst.msk [vmem:[#allocation2 + $0x28] sm:$0xff] %vm799_vm4, %v2196_v55  ;;  %v1813_v63 = vld [vmem:[#allocation2 + $0x17] sm:$0xff]  ;;  %v1815_v0 = vld [vmem:[#allocation2 + $0x1f] sm:$0xff]  ;;  %v1027_v58 = vmul.f32 %v1730_v15, %v1837_v30 }
 0x137   : > { %v1817_v3 = vld [vmem:[#allocation2 + $0x18] sm:$0xff]  ;;  %v960_v17 = vsel %vm1781_vm8, %v1813_v63, 0.0  ;;  %v961_v18 = vsel %vm1792_vm9, %v1815_v0, 0.0  ;;  %v1060_v42 = vsel %vm1781_vm8, %v1815_v0, 0.0  ;;  %v1128_v53 = vsel %vm1721_vm5, %v1813_v63, 0.0 }
 0x138   : > { %v1832_v19 = vld [vmem:[#allocation2 + $0x19] sm:$0xff]  ;;  %v1026_v23 = vmul.f32 %v1730_v15, %v1817_v3  ;;  %v975_v25 = vld [vmem:[#allocation2 + $0x11] sm:$0xff]  ;;  %v1009_v36 = vmul.f32 %v1728_v14, %v960_v17  ;;  %v1010_v40 = vmul.f32 %v1728_v14, %v961_v18  ;;  %v1033_v18 = vadd.f32 %v1025_v16, %v1008_v26 }
 0x139   : > { %v1000_v31 = vsel %vm1798_vm10, %v1832_v19, 0.0  ;;  %v781_v39 = vpop.f32.mrf.mxu1  ;;  %v1068_v43 = vsel %vm1748_vm6, %v975_v25, 0.0  ;;  %v1079_v10 = vmul.f32 %v1775_v47, %v1060_v42  ;;  %v1138_v16 = vsel %vm1748_vm6, %v1832_v19, 0.0 }
 0x13a   : > { %v1043_v41 = vmul.f32 %v1745_v27, %v1000_v31  ;;  %v1852_v44 = vadd.f32 %v1711_v2, %v781_v39  ;;  %v1034_v54 = vadd.f32 %v1026_v23, %v1009_v36  ;;  %v1111_v57 = vmul.f32 %v1806_v61, %v1068_v43 }
 0x13b   : > { %v1096_v36 = vmul.f32 %v1785_v51, %v1837_v30  ;;  %v1102_v39 = vadd.f32 %v1094_v38, %v1085_v37  ;;  %v1035_v55 = vadd.f32 %v1027_v58, %v1010_v40  ;;  %v1147_v26 = vmul.f32 %v1808_v62, %v1128_v53 }
 0x13c   : > { %v2197_v31 = vmax.f32 %v1852_v44, 0.0  ;;  %v1051_v23 = vadd.f32 %v1043_v41, %v1034_v54  ;;  %v1905_v53 = vadd.s32 56, %v1706_v1  ;;  %v999_v58 = vsel %vm1863_vm13, %v975_v25, 0.0 }
 0x13d   : > { %v938_v12 = vld [vmem:[#allocation2 + $0x27] sm:$0xff]  ;;  %v1119_v41 = vadd.f32 %v1111_v57, %v1102_v39  ;;  %v1164_v25 = vmul.f32 %v1787_v52, %v1817_v3  ;;  %v1042_v50 = vmul.f32 %v1745_v27, %v999_v58 }
 0x13e   : > { %v970_v43 = vld [vmem:[#allocation2 + $0x28] sm:$0xff]  ;;  %805 = vst.msk [vmem:[#allocation2 + $0x30] sm:$0xff] %vm799_vm4, %v2197_v31  ;;  %v1061_v49 = vsel %vm1792_vm9, %v938_v12, 0.0  ;;  %v1087_v54 = vadd.f32 %v1079_v10, %v1051_v23  ;;  %v1130_v7 = vsel %vm1781_vm8, %v938_v12, 0.0  ;;  %v962_v34 = vsel %vm1820_vm12, %v938_v12, 0.0 }
 0x13f   : > { %v1870_v32 = vld [vmem:[#allocation2 + $0x21] sm:$0xff]  ;;  %v1028_v31 = vmul.f32 %v1730_v15, %v970_v43  ;;  %v1080_v28 = vmul.f32 %v1775_v47, %v1061_v49  ;;  %v1011_v1 = vmul.f32 %v1728_v14, %v962_v34  ;;  %v1181_v49 = vmul.f32 %v1895_v29, %v1138_v16 }
 0x140   : > { %v1001_v37 = vsel %vm1802_vm11, %v1870_v32, 0.0  ;;  %v1070_v38 = vsel %vm1798_vm10, %v1870_v32, 0.0  ;;  %v1104_v39 = vadd.f32 %v1096_v36, %v1087_v54  ;;  %v1149_v12 = vmul.f32 %v1808_v62, %v1130_v7 }
 0x141   : > { %v1044_v42 = vmul.f32 %v1745_v27, %v1001_v37  ;;  %v783_v57 = vpop.f32.mrf.mxu1  ;;  %v1113_v10 = vmul.f32 %v1806_v61, %v1070_v38  ;;  %v2229_v36 = vand.u32 7, %v1778_v48  ;;  %v868_v34 = vand.u32 7, %v1861_v11 }
 0x142   : > { %v1918_v37 = vadd.f32 %v1711_v2, %v783_v57  ;;  %v1155_v54 = vadd.f32 %v1147_v26, %v1119_v41  ;;  %v1059_v16 = vsel %vm1768_vm7, %v1813_v63, 0.0  ;;  %v1036_v57 = vadd.f32 %v1028_v31, %v1011_v1 }
 0x143   : > { %v1052_v23 = vadd.f32 %v1044_v42, %v1035_v55  ;;  %v1121_v33 = vadd.f32 %v1113_v10, %v1104_v39  ;;  %vm1927_vm0 = vcmp.lt.s32.totalorder %v2229_v36, 7  ;;  %v1097_v42 = vmul.f32 %v1785_v51, %v970_v43  ;;  %v1962_v36 = vld [vmem:[%s2188_s10] ss:$0 sm:$0xff] }
 0x144   : > { %v2203_v38 = vmax.f32 %v1918_v37, 0.0  ;;  %vm1950_vm5 = vcmp.gt.s32.totalorder %v868_v34, 0  ;;  %vm1989_vm8 = vcmp.lt.s32.totalorder %v868_v34, 7 }
 0x145   : > { %v1088_v5 = vadd.f32 %v1080_v28, %v1052_v23  ;;  %v978_v58 = vld [vmem:[#allocation2 + $0x29] sm:$0xff]  ;;  %v1157_v7 = vadd.f32 %v1149_v12, %v1121_v33  ;;  %v1166_v28 = vmul.f32 %v1787_v52, %v970_v43  ;;  %v1050_v33 = vadd.f32 %v1042_v50, %v1033_v18  ;;  %v1137_v23 = vld [vmem:[#allocation2 + $0x51] sm:$0xff] }
 0x146   : > { %v939_v48 = vld [vmem:[#allocation2 + $0x2f] sm:$0xff]  ;;  %806 = vst.msk [vmem:[#allocation2 + $0x38] sm:$0xff] %vm799_vm4, %v2203_v38  ;;  %v1071_v11 = vsel %vm1802_vm11, %v978_v58, 0.0  ;;  %v1140_v26 = vsel %vm1798_vm10, %v978_v58, 0.0  ;;  %v1002_v59 = vsel %vm1873_vm14, %v978_v58, 0.0  ;;  %v1172_v12 = vadd.f32 %v1164_v25, %v1155_v54 }
 0x147   : > { %v1131_v63 = vsel %vm1792_vm9, %v939_v48, 0.0  ;;  %v1114_v43 = vmul.f32 %v1806_v61, %v1071_v11  ;;  %v1174_v41 = vadd.f32 %v1166_v28, %v1157_v7  ;;  %v1183_v31 = vmul.f32 %v1895_v29, %v1140_v26 }
 0x148   : > { %v1105_v10 = vadd.f32 %v1097_v42, %v1088_v5  ;;  %v1150_v1 = vmul.f32 %v1808_v62, %v1131_v63  ;;  %v1062_v56 = vsel %vm1820_vm12, %v939_v48, 0.0  ;;  %v971_v5 = vld [vmem:[#allocation2 + $0x30] sm:$0xff]  ;;  %v963_v7 = vsel %vm1899_vm15, %v939_v48, 0.0 }
 0x149   : > { %v786_v18 = vpop.f32.mrf.mxu1  ;;  %v1191_v50 = vadd.f32 %v1183_v31, %v1174_v41  ;;  %v1045_v28 = vmul.f32 %v1745_v27, %v1002_v59  ;;  %v1069_v25 = vsel %vm1863_vm13, %v1832_v19, 0.0  ;;  %v1078_v54 = vmul.f32 %v1775_v47, %v1059_v16 }
 0x14a   : > { %v1122_v42 = vadd.f32 %v1114_v43, %v1105_v10  ;;  %v1968_v58 = vadd.f32 %v1711_v2, %v786_v18  ;;  %v1095_v11 = vmul.f32 %v1785_v51, %v1817_v3  ;;  %v1081_v48 = vmul.f32 %v1775_v47, %v1062_v56 }
 0x14b   : > { %v1202_v26 = vadd.f32 %v1962_v36, %v1191_v50  ;;  %v1053_v43 = vadd.f32 %v1045_v28, %v1036_v57  ;;  %v1029_v31 = vmul.f32 %v1730_v15, %v971_v5  ;;  %v1167_v10 = vmul.f32 %v1787_v52, %v971_v5 }
 0x14c   : > { %v1158_v63 = vadd.f32 %v1150_v1, %v1122_v42  ;;  %v797_v41 = vmax.f32 %v1968_v58, 0.0  ;;  %v1012_v59 = vmul.f32 %v1728_v14, %v963_v7  ;;  %v1098_v3 = vmul.f32 %v1785_v51, %v971_v5  ;;  %v1513_v58 = vld [vmem:[%s2192_s14] ss:$0 sm:$0xff] }
 0x14d   : > { %v1210_v19 = vmax.f32 %v1202_v26, 0.0  ;;  %v979_v18 = vld [vmem:[#allocation2 + $0x31] sm:$0xff]  ;;  %v1089_v38 = vadd.f32 %v1081_v48, %v1053_v43  ;;  %v1189_v39 = vadd.f32 %v1181_v49, %v1172_v12  ;;  %v2234_v1 = vand.u32 7, %v1905_v53 }
 0x14e   : > { %v940_v16 = vld [vmem:[#allocation2 + $0x37] sm:$0xff]  ;;  %807 = vst.msk [vmem:[#allocation2 + $0x40] sm:$0xff] %vm799_vm4, %v797_v41  ;;  %v1141_v50 = vsel %vm1802_vm11, %v979_v18, 0.0  ;;  %v1003_v49 = vsel %vm1927_vm0, %v979_v18, 0.0  ;;  %v1086_v5 = vadd.f32 %v1078_v54, %v1050_v33  ;;  %v1175_v34 = vadd.f32 %v1167_v10, %v1158_v63 }
 0x14f   : > { %vm1985_vm6 = vcmp.gt.s32.totalorder %v2234_v1, 0  ;;  %v1063_v12 = vsel %vm1899_vm15, %v940_v16, 0.0  ;;  %1228 = vrot.lane.b32.xlu0 %v1210_v19, %s1539_s29  ;;  %v1184_v42 = vmul.f32 %v1895_v29, %v1141_v50  ;;  %v1046_v7 = vmul.f32 %v1745_v27, %v1003_v49  ;;  %v972_v60 = vld [vmem:[#allocation2 + $0x38] sm:$0xff] }
 0x150   : > { %v1072_v28 = vsel %vm1873_vm14, %v979_v18, 0.0  ;;  %v1106_v26 = vadd.f32 %v1098_v3, %v1089_v38  ;;  %v1132_v48 = vsel %vm1820_vm12, %v940_v16, 0.0  ;;  %v1037_v1 = vadd.f32 %v1029_v31, %v1012_v59 }
 0x151   : > { %v1115_v43 = vmul.f32 %v1806_v61, %v1072_v28  ;;  %v788_v33 = vpop.f32.mrf.mxu1  ;;  %v1192_v54 = vadd.f32 %v1184_v42, %v1175_v34  ;;  %v1082_v19 = vmul.f32 %v1775_v47, %v1063_v12  ;;  %v1151_v63 = vmul.f32 %v1808_v62, %v1132_v48 }
 0x152   : > { %v1200_v10 = vadd.f32 %v1962_v36, %v1189_v39  ;;  %v2014_v50 = vadd.f32 %v1711_v2, %v788_v33  ;;  %v1054_v49 = vadd.f32 %v1046_v7, %v1037_v1  ;;  %v964_v38 = vsel %vm1950_vm5, %v940_v16, 0.0 }
 0x153   : > { %v1123_v18 = vadd.f32 %v1115_v43, %v1106_v26  ;;  %v1203_v13 = vadd.f32 %v1962_v36, %v1192_v54  ;;  %v1030_v31 = vmul.f32 %v1730_v15, %v972_v60  ;;  %v1103_v59 = vadd.f32 %v1095_v11, %v1086_v5 }
 0x154   : > { %v1112_v3 = vmul.f32 %v1806_v61, %v1069_v25  ;;  %v798_v12 = vmax.f32 %v2014_v50, 0.0  ;;  %v1168_v39 = vmul.f32 %v1787_v52, %v972_v60  ;;  %v1090_v42 = vadd.f32 %v1082_v19, %v1054_v49 }
 0x155   : > { %v1159_v34 = vadd.f32 %v1151_v63, %v1123_v18  ;;  %v1211_v2 = vmax.f32 %v1203_v13, 0.0  ;;  %v980_v28 = vld [vmem:[#allocation2 + $0x39] sm:$0xff]  ;;  %v1099_v7 = vmul.f32 %v1785_v51, %v972_v60  ;;  %v1013_v16 = vmul.f32 %v1728_v14, %v964_v38 }
 0x156   : > { %v941_v26 = vld [vmem:[#allocation2 + $0x3f] sm:$0xff]  ;;  %v1129_v11 = vsel %vm1768_vm7, %v1815_v0, 0.0  ;;  %808 = vst.msk [vmem:[#allocation2 + $0x48] sm:$0xff] %vm799_vm4, %v798_v12  ;;  %v1073_v25 = vsel %vm1927_vm0, %v980_v28, 0.0  ;;  %v1142_v5 = vsel %vm1873_vm14, %v980_v28, 0.0  ;;  %v1120_v60 = vadd.f32 %v1112_v3, %v1103_v59 }
 0x157   : > { %v973_v43 = vld [vmem:[#allocation2 + $0x40] sm:$0xff]  ;;  %v1176_v48 = vadd.f32 %v1168_v39, %v1159_v34  ;;  %1230 = vrot.lane.b32.xlu0 %v1211_v2, %s1539_s29  ;;  %v1116_v1 = vmul.f32 %v1806_v61, %v1073_v25  ;;  %v1185_v33 = vmul.f32 %v1895_v29, %v1142_v5  ;;  %v1107_v45 = vadd.f32 %v1099_v7, %v1090_v42 }
 0x158   : > { %v1133_v0 = vsel %vm1899_vm15, %v941_v26, 0.0  ;;  %v1031_v54 = vmul.f32 %v1730_v15, %v973_v43  ;;  %v965_v35 = vsel %vm1985_vm6, %v941_v26, 0.0  ;;  %v1004_v63 = vsel %vm1989_vm8, %v980_v28, 0.0 }
 0x159   : > { %v1152_v19 = vmul.f32 %v1808_v62, %v1133_v0  ;;  %v1193_v18 = vadd.f32 %v1185_v33, %v1176_v48  ;;  %v1124_v49 = vadd.f32 %v1116_v1, %v1107_v45  ;;  %v1014_v38 = vmul.f32 %v1728_v14, %v965_v35 }
 0x15a   : > { %v1047_v13 = vmul.f32 %v1745_v27, %v1004_v63  ;;  %v1038_v59 = vadd.f32 %v1030_v31, %v1013_v16  ;;  %v1064_v40 = vsel %vm1950_vm5, %v941_v26, 0.0  ;;  %v1148_v15 = vmul.f32 %v1808_v62, %v1129_v11 }
 0x15b   : > { %v1204_v3 = vadd.f32 %v1962_v36, %v1193_v18  ;;  %v1160_v34 = vadd.f32 %v1152_v19, %v1124_v49  ;;  %v2239_v39 = vand.u32 7, %v1905_v53  ;;  %v1165_v14 = vmul.f32 %v1787_v52, %v1837_v30 }
 0x15c   : > { %v1208_v2 = vmax.f32 %v1200_v10, 0.0  ;;  %v1169_v31 = vmul.f32 %v1787_v52, %v973_v43  ;;  %v1055_v28 = vadd.f32 %v1047_v13, %v1038_v59  ;;  %v1156_v7 = vadd.f32 %v1148_v15, %v1120_v60 }
 0x15d   : > { %vm2054_vm7 = vcmp.lt.s32.totalorder %v2239_v39, 7  ;;  %v1212_v26 = vmax.f32 %v1204_v3, 0.0  ;;  %v981_v16 = vld [vmem:[#allocation2 + $0x41] sm:$0xff]  ;;  %v1039_v11 = vadd.f32 %v1031_v54, %v1014_v38  ;;  %v1083_v5 = vmul.f32 %v1775_v47, %v1064_v40  ;;  %v1067_v10 = vld [vmem:[#allocation2 + $0x49] sm:$0xff] }
 0x15e   : > { %v1057_v25 = vld [vmem:[#allocation2 + $0x47] sm:$0xff]  ;;  %v1100_v53 = vmul.f32 %v1785_v51, %v973_v43  ;;  %v1143_v48 = vsel %vm1927_vm0, %v981_v16, 0.0  ;;  %v1005_v1 = vsel %vm2054_vm7, %v981_v16, 0.0  ;;  %v1074_v60 = vsel %vm1989_vm8, %v981_v16, 0.0 }
 0x15f   : > { %v1065_v30 = vsel %vm1985_vm6, %v1057_v25, 0.0  ;;  %1232 = vrot.lane.b32.xlu1 %v1212_v26, %s1539_s29  ;;  %1224 = vrot.lane.b32.xlu0 %v1208_v2, %s1539_s29  ;;  %v1177_v33 = vadd.f32 %v1169_v31, %v1160_v34  ;;  %v1186_v43 = vmul.f32 %v1895_v29, %v1143_v48  ;;  %v1048_v55 = vmul.f32 %v1745_v27, %v1005_v1  ;;  %v1066_v0 = vld [vmem:[#allocation2 + $0x48] sm:$0xff] }
 0x160   : > { %v1139_v45 = vsel %vm1863_vm13, %v1870_v32, 0.0  ;;  %v1075_v54 = vsel %vm2054_vm7, %v1067_v10, 0.0  ;;  %v1091_v19 = vadd.f32 %v1083_v5, %v1055_v28  ;;  %v1117_v35 = vmul.f32 %v1806_v61, %v1074_v60  ;;  %v1127_v27 = vld [vmem:[#allocation2 + $0x4f] sm:$0xff] }
 0x161   : > { %v1173_v63 = vadd.f32 %v1165_v14, %v1156_v7  ;;  %v1194_v18 = vadd.f32 %v1186_v43, %v1177_v33  ;;  %v1056_v49 = vadd.f32 %v1048_v55, %v1039_v11  ;;  %v1084_v38 = vmul.f32 %v1775_v47, %v1065_v30  ;;  %v1136_v14 = vld [vmem:[#allocation2 + $0x50] sm:$0xff]  ;;  %v1292_v43 = vld [vmem:[%s2191_s13] sm:$0x3] }
 0x162   : > { %v1134_v13 = vsel %vm1950_vm5, %v1057_v25, 0.0  ;;  %v1108_v59 = vadd.f32 %v1100_v53, %v1091_v19  ;;  %v1101_v40 = vmul.f32 %v1785_v51, %v1066_v0  ;;  %v1182_v15 = vmul.f32 %v1895_v29, %v1139_v45  ;;  %v1511_v45 = vld [vmem:[%s2189_s11] ss:$0 sm:$0xff] }
 0x163   : > { %v1205_v17 = vadd.f32 %v1962_v36, %v1194_v18  ;;  %v1092_v32 = vadd.f32 %v1084_v38, %v1056_v49  ;;  %v1118_v3 = vmul.f32 %v1806_v61, %v1075_v54  ;;  %v1153_v39 = vmul.f32 %v1808_v62, %v1134_v13  ;;  %v1512_v54 = vld [vmem:[%s2190_s12] ss:$0 sm:$0xff] }
 0x164   : > { %v1125_v34 = vadd.f32 %v1117_v35, %v1108_v59  ;;  %v1135_v47 = vsel %vm1985_vm6, %v1127_v27, 0.0  ;;  %v1144_v28 = vsel %vm1989_vm8, %v1067_v10, 0.0  ;;  %v1190_v7 = vadd.f32 %v1182_v15, %v1173_v63 }
 0x165   : > { %v1213_v2 = vmax.f32 %v1205_v17, 0.0  ;;  %v1109_v31 = vadd.f32 %v1101_v40, %v1092_v32  ;;  %v1170_v51 = vmul.f32 %v1787_v52, %v1066_v0  ;;  %v1145_v16 = vsel %vm2054_vm7, %v1137_v23, 0.0 }
 0x166   : > { %v1161_v26 = vadd.f32 %v1153_v39, %v1125_v34  ;;  %v1154_v57 = vmul.f32 %v1808_v62, %v1135_v47  ;;  %v1171_v11 = vmul.f32 %v1787_v52, %v1136_v14  ;;  %v1187_v5 = vmul.f32 %v1895_v29, %v1144_v28 }
 0x167   : > { %1234 = vrot.lane.b32.xlu1 %v1213_v2, %s1539_s29  ;;  %v1126_v61 = vadd.f32 %v1118_v3, %v1109_v31  ;;  %v1201_v56 = vadd.f32 %v1962_v36, %v1190_v7  ;;  %v1188_v1 = vmul.f32 %v1895_v29, %v1145_v16  ;;  %v1310_v29 = vsel %vm758_vm2, %v1292_v43, 0 }
 0x168   : > { %v1178_v25 = vadd.f32 %v1170_v51, %v1161_v26  ;;  %1478 = vmatpush.bf16.msra.mxu2 %v1310_v29  ;;  %1319 = vmatpush.bf16.msra.mxu0 %v1310_v29  ;;  %v2242_v0 = vmax.f32 %v1738_v20, 0.0  ;;  %v2243_v63 = vmax.f32 %v1773_v46, 0.0  ;;  %v2244_v20 = vmax.f32 %v1852_v44, 0.0 }
 0x169   : > { %v1162_v53 = vadd.f32 %v1154_v57, %v1126_v61  ;;  %v1209_v60 = vmax.f32 %v1201_v56, 0.0  ;;  %v2245_v46 = vmax.f32 %v1918_v37, 0.0  ;;  %v2246_v2 = vmax.f32 %v1715_v8, 0.0 }
 0x16a   : > { %v1195_v48 = vadd.f32 %v1187_v5, %v1178_v25  ;;  %v2247_v37 = vmax.f32 %v1741_v24, 0.0 }
 0x16b   : > { %v1179_v30 = vadd.f32 %v1171_v11, %v1162_v53 }
 0x16c   : > { %v1206_v10 = vadd.f32 %v1962_v36, %v1195_v48 }
 0x16d   : > { %v1196_v42 = vadd.f32 %v1188_v1, %v1179_v30 }
 0x16e   : > { %v1214_v33 = vmax.f32 %v1206_v10, 0.0 }
 0x16f   : > { %1226 = vrot.lane.b32.xlu1 %v1209_v60, %s1539_s29  ;;  %v1207_v52 = vadd.f32 %v1962_v36, %v1196_v42 }
 0x170   : > { %1236 = vrot.lane.b32.xlu2 %v1214_v33, %s1539_s29 }
 0x171   : > { %v1215_v62 = vmax.f32 %v1207_v52, 0.0 }
 0x178   : > { %1238 = vrot.lane.b32.xlu2 %v1215_v62, %s1539_s29 }
 0x1c1   : > { %v1229_v55 = vpop.permute.xlu0 %1228 }
 0x1c2   : > { %v1250_v36 = vsel %vm799_vm4, %v2242_v0, %v1229_v55 }
 0x1c3   : > { %v1262_v19 = vmul.f32 %v1511_v45, %v1250_v36 }
 0x1c5   : > { %v1274_v49 = vadd.f32 %v1512_v54, %v1262_v19 }
 0x1c7   : > { %v1282_v27 = vmax.f32 %v1274_v49, 0.0  ;;  %v2248_v49 = vld [vmem:[#allocation3_spill] sm:$0xff] }
 0x1c9   : > { %v1231_v35 = vpop.permute.xlu0 %1230 }
 0x1ca   : > { %v1251_v18 = vsel %vm799_vm4, %v2243_v63, %v1231_v35  ;;  %v1237_v15 = vpop.permute.xlu2 %1236 }
 0x1cb   : > { %v1263_v38 = vmul.f32 %v1511_v45, %v1251_v18  ;;  %v1254_v8 = vsel %vm799_vm4, %v797_v41, %v1237_v15 }
 0x1cc   : > { %v1266_v48 = vmul.f32 %v1511_v45, %v1254_v8 }
 0x1cd   : > { %v1275_v13 = vadd.f32 %v1512_v54, %v1263_v38 }
 0x1ce   : > { %v1278_v10 = vadd.f32 %v1512_v54, %v1266_v48 }
 0x1cf   : > { %v1283_v59 = vmax.f32 %v1275_v13, 0.0 }
 0x1d0   : > { %v1286_v60 = vmax.f32 %v1278_v10, 0.0 }
 0x1d1   : > { %v1233_v17 = vpop.permute.xlu1 %1232  ;;  %v1289_v32 = vpack.c.bf16 %v1283_v59, %v1282_v27  ;;  %v1225_v34 = vpop.permute.xlu0 %1224  ;;  %v2249_v27 = vld [vmem:[#allocation4_spill] sm:$0xff] }
 0x1d2   : > { %v1252_v40 = vsel %vm799_vm4, %v2244_v20, %v1233_v17  ;;  %v1248_v31 = vsel %vm799_vm4, %v2246_v2, %v1225_v34  ;;  %v1239_v7 = vpop.permute.xlu2 %1238 }
 0x1d3   : > { %1471 = vmatmul.msk.bf16.vlgmr.msra.gmra.mxu2 %vm745_vm3, %v1289_v32  ;;  %v1264_v3 = vmul.f32 %v1511_v45, %v1252_v40  ;;  %v1260_v44 = vmul.f32 %v1511_v45, %v1248_v31  ;;  %v1255_v57 = vsel %vm799_vm4, %v798_v12, %v1239_v7  ;;  %v2250_v32 = vld [vmem:[#allocation5_spill] sm:$0xff] }
 0x1d4   : > { %v1267_v56 = vmul.f32 %v1511_v45, %v1255_v57 }
 0x1d5   : > { %v1276_v14 = vadd.f32 %v1512_v54, %v1264_v3  ;;  %v1272_v25 = vadd.f32 %v1512_v54, %v1260_v44 }
 0x1d6   : > { %v1279_v30 = vadd.f32 %v1512_v54, %v1267_v56 }
 0x1d7   : > { %v1284_v26 = vmax.f32 %v1276_v14, 0.0  ;;  %v1280_v1 = vmax.f32 %v1272_v25, 0.0 }
 0x1d8   : > { %v1287_v24 = vmax.f32 %v1279_v30, 0.0 }
 0x1d9   : > { %v1235_v39 = vpop.permute.xlu1 %1234 }
 0x1da   : > { %v1253_v47 = vsel %vm799_vm4, %v2245_v46, %v1235_v39  ;;  %v1291_v33 = vpack.c.bf16 %v1287_v24, %v1286_v60 }
 0x1db   : > { %v1265_v23 = vmul.f32 %v1511_v45, %v1253_v47 }
 0x1dd   : > { %v1277_v28 = vadd.f32 %v1512_v54, %v1265_v23 }
 0x1df   : > { %v1285_v51 = vmax.f32 %v1277_v28, 0.0 }
 0x1e1   : > { %v1227_v61 = vpop.permute.xlu1 %1226  ;;  %v1290_v16 = vpack.c.bf16 %v1285_v51, %v1284_v26 }
 0x1e2   : > { %v1249_v11 = vsel %vm799_vm4, %v2247_v37, %v1227_v61 }
 0x1e3   : > { %v1261_v5 = vmul.f32 %v1511_v45, %v1249_v11  ;;  %1472 = vmatmul.msk.bf16.gmra.mxu2 %vm745_vm3, %v1290_v16 }
 0x1e5   : > { %v1273_v53 = vadd.f32 %v1512_v54, %v1261_v5 }
 0x1e7   : > { %v1281_v50 = vmax.f32 %v1273_v53, 0.0 }
 0x1e9   : > { %v1288_v12 = vpack.c.bf16 %v1281_v50, %v1280_v1 }
 0x1eb   : > { %1470 = vmatmul.msk.bf16.vlgmr.msra.gmra.mxu0 %vm745_vm3, %v1288_v12 }
 0x1f3   : > { %1473 = vmatmul.msk.bf16.gmra.mxu2 %vm745_vm3, %v1291_v33 }
 0x256   : > { %v1326_v41 = vpop.f32.mrf.mxu2 }
 0x257   : > { %v1327_v42 = vadd.f32 %v1513_v58, %v1326_v41 }
 0x259   : > { %v1343_v52 = vadd.f32 %v1327_v42, %v1664_v6 }
 0x25b   : > { %1351 = vst.msk [vmem:[%s637_s28 + $0x10] sm:$0xff] %vm692_vm1, %v1343_v52 }
 0x25e   : > { %v1328_v62 = vpop.f32.mrf.mxu2 }
 0x25f   : > { %v1329_v43 = vadd.f32 %v1513_v58, %v1328_v62 }
 0x261   : > { %v1344_v29 = vadd.f32 %v1329_v43, %v1669_v9 }
 0x263   : > { %1352 = vst.msk [vmem:[%s637_s28 + $0x18] sm:$0xff] %vm692_vm1, %v1344_v29 }
 0x266   : > { %v1331_v55 = vpop.f32.mrf.mxu2 }
 0x267   : > { %v1332_v45 = vadd.f32 %v1513_v58, %v1331_v55 }
 0x268   : > { %v1321_v0 = vpop.f32.mrf.mxu0 }
 0x269   : > { %v1345_v36 = vadd.f32 %v1332_v45, %v1674_v21  ;;  %v1322_v54 = vadd.f32 %v1513_v58, %v1321_v0 }
 0x26b   : > { %1353 = vst.msk [vmem:[%s637_s28 + $0x20] sm:$0xff] %vm692_vm1, %v1345_v36  ;;  %v1341_v19 = vadd.f32 %v1322_v54, %v1658_v4 }
 0x26d   : > { %1349 = vst.msk [vmem:[%s637_s28] sm:$0xff] %vm692_vm1, %v1341_v19 }
 0x26e   : > { %v1333_v6 = vpop.f32.mrf.mxu2 }
 0x26f   : > { %v1334_v35 = vadd.f32 %v1513_v58, %v1333_v6 }
 0x270   : > { %v1323_v63 = vpop.f32.mrf.mxu0 }
 0x271   : > { %v1346_v18 = vadd.f32 %v1334_v35, %v1677_v22  ;;  %v1324_v9 = vadd.f32 %v1513_v58, %v1323_v63 }
 0x273   : > { %1354 = vst.msk [vmem:[%s637_s28 + $0x28] sm:$0xff] %vm692_vm1, %v1346_v18  ;;  %v1342_v38 = vadd.f32 %v1324_v9, %v2248_v49 }
 0x275   : > { %1350 = vst.msk [vmem:[%s637_s28 + $0x8] sm:$0xff] %vm692_vm1, %v1342_v38 }
 0x276   : > { %v1336_v21 = vpop.f32.mrf.mxu2 }
 0x277   : > { %v1337_v13 = vadd.f32 %v1513_v58, %v1336_v21 }
 0x279   : > { %v1347_v59 = vadd.f32 %v1337_v13, %v2249_v27 }
 0x27b   : > { %1355 = vst.msk [vmem:[%s637_s28 + $0x30] sm:$0xff] %vm692_vm1, %v1347_v59 }
 0x27e   : > { %v1338_v4 = vpop.f32.mrf.mxu2 }
 0x27f   : > { %v1339_v17 = vadd.f32 %v1513_v58, %v1338_v4 }
 0x281   : > { %v1348_v20 = vadd.f32 %v1339_v17, %v2250_v32 }
 0x283   : > { %1356 = vst.msk [vmem:[%s637_s28 + $0x38] sm:$0xff] %vm692_vm1, %v1348_v20 }
 0x284 PF: > { %s25_s1 = sadd.s32 1, %s1536_s1   ;;  %s2251_s16 = smov %s1532_s17 }
 0x285   : > { %p22_p5 = scmp.ge.s32.totalorder %s25_s1, 4   ;;  %s2252_s17 = smov %s2254_s18 }
 0x287   :  { %24 = sbr.rel (!%p22_p5) target bundleno = 2 (0x2), region = 116 }

// kernel: hourglass_forward.10
= control target key start
LH: loop header
LB: loop body
LE: loop exit
PB: predicated region body
PF: predicated region fallthrough
CT: control target
= control target key end

     0   :  { %s1147_s16 = smov 0   ;;  %s1149_s17 = smov 0   ;;  %s1309_s0 = inlined_call_operand.vmem [shape: f32[32,8], index: 0, kind: input, shape index: {}, may-alias: {0,1,2}]   ;;  %s1310_s1 = inlined_call_operand.vmem [shape: f32[8,4,8], index: 1, kind: input, shape index: {}, may-alias: {0,1,2}]   ;;  %s1311_s2 = inlined_call_operand.vmem [shape: f32[8,4,8], index: 2, kind: input, shape index: {}, may-alias: {0,1,2}]   ;;  %s1312_s3 = inlined_call_operand.vmem [shape: f32[1,8], index: 3, kind: input, shape index: {}]   ;;  %s1313_s4 = inlined_call_operand.vmem [shape: f32[1,8], index: 4, kind: input, shape index: {}]   ;;  %s1314_s5 = inlined_call_operand.vmem [shape: bf16[8,4], index: 5, kind: input, shape index: {}]   ;;  %s1315_s6 = inlined_call_operand.vmem [shape: f32[1,4], index: 6, kind: input, shape index: {}]   ;;  %s1316_s7 = inlined_call_operand.vmem [shape: bf16[4,2], index: 7, kind: input, shape index: {}]   ;;  %s1317_s8 = inlined_call_operand.vmem [shape: f32[1,2], index: 8, kind: input, shape index: {}]   ;;  %s1318_s9 = inlined_call_operand.vmem [shape: f32[9,2], index: 9, kind: input, shape index: {}]   ;;  %s1319_s10 = inlined_call_operand.vmem [shape: f32[1,2], index: 10, kind: input, shape index: {}]   ;;  %s1320_s11 = inlined_call_operand.vmem [shape: f32[1,4], index: 11, kind: input, shape index: {}]   ;;  %s1321_s12 = inlined_call_operand.vmem [shape: f32[1,4], index: 12, kind: input, shape index: {}]   ;;  %s1322_s13 = inlined_call_operand.vmem [shape: bf16[4,8], index: 13, kind: input, shape index: {}]   ;;  %s1323_s14 = inlined_call_operand.vmem [shape: f32[1,8], index: 14, kind: input, shape index: {}]   ;;  %s1324_s15 = inlined_call_operand.vmem [shape: f32[32,8], index: 15, kind: output, shape index: {}]  }
   0x1   :  { %s1151_s1 = smov 0  }
   0x2 LB: > { %s37_s18 = sadd.s32 1, %s1059_s17  ;;  %p996_p0 = scmp.ge.s32.totalorder %s1063_s1, 1  ;;  %s1063_s1 = sphi %s1151_s1, %s25_s1   ;;  %s1059_s17 = sphi %s1149_s17, %s1334_s17   ;;  %s1055_s16 = sphi %s1147_s16, %s1333_s16  }
   0x3   : > { %p39_p1 = scmp.ge.s32.totalorder %s37_s18, 2  ;;  %p522_p2 = scmp.lt.s32.totalorder %s1063_s1, 3 }
   0x5   : > { %s1336_s18 = smov (%p39_p1, %s37_s18), 0  ;;  %p523_p3 = pnand %p996_p0, %p522_p2 }
   0x6   : > { %s997_s20 = sshll.u32 (!%p523_p3), %s1055_s16, 1  ;;  %s1066_s29 = smov (!%p523_p3), 2  }
   0x7   : > { %526 = sbr.rel (%p523_p3) target bundleno = 604 (0x25c), region = 80  ;;  %p594_p4 = scmp.lt.s32.totalorder (!%p523_p3), %s997_s20, 3 }
   0xc   : > { %v643_v0 = vld [vmem:[%s1314_s5] sm:$0xf]  ;;  %vm669_vm0 = vcmask 1043456   ;;  %s1338_s20 = smov (!%p594_p4, %s997_s20), 3  ;;  %vm665_vm1 = vcmask 64512   ;;  %vm695_vm2 = vcmask 1041408   ;;  %v724_v23 = vlaneseq }
   0xd   : > { %v671_v1 = vsel %vm669_vm0, %v643_v0, 0  ;;  %v1032_v2 = vld [vmem:[%s1312_s3] ss:$0 sm:$0xff]  ;;  %s998_s23 = sshll.u32 %s1338_s20, 3  ;;  %vm691_vm3 = vcmask 31744   ;;  %vm715_vm4 = vcmask 11264  }
   0xe   : > { %680 = vmatpush.bf16.msra.mxu0 %v671_v1  ;;  %s597_s26 = scalar_lea.vmem %s1309_s0, %s998_s23  ;;  %v1033_v3 = vld [vmem:[%s1313_s4] ss:$0 sm:$0xff]  ;;  %v1065_v21 = vmov 0.0   ;;  %vm717_vm5 = vcmask 15360   ;;  %v725_v26 = vshrl.u32 %v724_v23, 7  ;;  %s637_s28 = scalar_lea.vmem %s1324_s15, %s998_s23 }
   0xf   : > { %v1182_v4 = vld [vmem:[%s597_s26] sm:$0xff]  ;;  %v1184_v5 = vld [vmem:[%s597_s26 + $0x8] sm:$0xff]  ;;  %716 = vst.msk [vmem:[#allocation2 + $0x4] sm:$0xf] %vm715_vm4, %v1065_v21 }
  0x10   : > { %v652_v6 = vmul.f32 %v1032_v2, %v1182_v4  ;;  %v653_v7 = vmul.f32 %v1032_v2, %v1184_v5  ;;  %v645_v13 = vld [vmem:[%s1316_s7] sm:$0x3]  ;;  %720 = vst.msk [vmem:[#allocation2 + $0x18] sm:$0xf] %vm715_vm4, %v1065_v21  ;;  %v731_v29 = vand.u32 3, %v725_v26  ;;  %v726_v33 = vadd.s32 8, %v725_v26 }
  0x11   : > { %v697_v14 = vsel %vm695_vm2, %v645_v13, 0  ;;  %v1034_v16 = vld [vmem:[%s1315_s6] ss:$0 sm:$0xff] }
  0x12   : > { %v657_v8 = vadd.f32 %v1033_v3, %v652_v6  ;;  %v658_v9 = vadd.f32 %v1033_v3, %v653_v7  ;;  %706 = vmatpush.bf16.msra.mxu1 %v697_v14  ;;  %v1035_v22 = vld [vmem:[%s1317_s8] ss:$0 sm:$0xff]  ;;  %vm1214_vm6 = vcmp.gt.s32.totalorder %v731_v29, 0  ;;  %vm1218_vm7 = vcmp.lt.s32.totalorder %v731_v29, 3 }
  0x13   : > { %v1209_v28 = vld [vmem:[%s1318_s9] sm:$0xff]  ;;  %v738_v46 = vand.u32 3, %v726_v33 }
  0x14   : > { %v659_v10 = vmax.f32 %v657_v8, 0.0  ;;  %v660_v11 = vmax.f32 %v658_v9, 0.0  ;;  %v778_v32 = vperm.slane %v1209_v28, 1  ;;  %v773_v36 = vperm.slane %v1209_v28, 0 }
  0x15   : > { %v783_v41 = vperm.slane %v1209_v28, 2  ;;  %v798_v48 = vperm.slane %v1209_v28, 3  ;;  %v803_v52 = vperm.slane %v1209_v28, 4  ;;  %vm1236_vm8 = vcmp.gt.s32.totalorder %v738_v46, 0 }
  0x16   : > { %v661_v12 = vpack.c.bf16 %v660_v11, %v659_v10  ;;  %vm1240_vm9 = vcmp.lt.s32.totalorder %v738_v46, 3  ;;  %v808_v58 = vperm.slane %v1209_v28, 5  ;;  %v820_v63 = vperm.slane %v1209_v28, 6 }
  0x17   : > { %v825_v14 = vperm.slane %v1209_v28, 7 }
  0x18   : > { %1001 = vmatmul.msk.bf16.vlgmr.msra.gmra.mxu0 %vm665_vm1, %v661_v12 }
  0x95   : > { %v682_v15 = vpop.f32.mrf.mxu0 }
  0x96   : > { %v683_v18 = vadd.f32 %v1034_v16, %v682_v15 }
  0x9d   : > { %v684_v17 = vpop.f32.mrf.mxu0 }
  0x9e   : > { %v685_v19 = vadd.f32 %v1034_v16, %v684_v17 }
  0xa0   : > { %v687_v20 = vpack.c.bf16 %v685_v19, %v683_v18 }
  0xa2   : > { %1002 = vmatmul.msk.bf16.vlgmr.msra.gmra.mxu1 %vm691_vm3, %v687_v20  ;;  %v1036_v20 = vld [vmem:[%s1318_s9 + $0x8] ss:$0 sm:$0xff] }
 0x11f   : > { %v708_v24 = vpop.f32.mrf.mxu1 }
 0x120   : > { %v1200_v25 = vadd.f32 %v1035_v22, %v708_v24 }
 0x122   : > { %v713_v27 = vmax.f32 %v1200_v25, 0.0  ;;  %v1040_v25 = vld [vmem:[%s1323_s14] ss:$0 sm:$0xff] }
 0x124   : > { %718 = vst.msk [vmem:[#allocation2 + $0x8] sm:$0xff] %vm717_vm5, %v713_v27 }
 0x127   : > { %v710_v30 = vpop.f32.mrf.mxu1 }
 0x128   : > { %v1211_v31 = vadd.f32 %v1035_v22, %v710_v30 }
 0x12a   : > { %v714_v37 = vmax.f32 %v1211_v31, 0.0 }
 0x12b   : > { %v755_v38 = vld [vmem:[#allocation2 + $0x3] sm:$0xff] }
 0x12c   : > { %v763_v39 = vld [vmem:[#allocation2 + $0x4] sm:$0xff]  ;;  %719 = vst.msk [vmem:[#allocation2 + $0x10] sm:$0xff] %vm717_vm5, %v714_v37  ;;  %v761_v42 = vsel %vm1214_vm6, %v755_v38, 0.0  ;;  %v1037_v38 = vld [vmem:[%s1319_s10] ss:$0 sm:$0xff] }
 0x12d   : > { %v765_v40 = vld [vmem:[#allocation2 + $0x5] sm:$0xff]  ;;  %v779_v44 = vmul.f32 %v778_v32, %v763_v39  ;;  %v774_v47 = vmul.f32 %v773_v36, %v761_v42 }
 0x12e   : > { %v771_v43 = vsel %vm1218_vm7, %v765_v40, 0.0  ;;  %v788_v45 = vld [vmem:[#allocation2 + $0x7] sm:$0xff] }
 0x12f   : > { %v790_v49 = vsel %vm1214_vm6, %v788_v45, 0.0  ;;  %v781_v50 = vadd.f32 %v779_v44, %v774_v47  ;;  %v784_v51 = vmul.f32 %v783_v41, %v771_v43  ;;  %v792_v56 = vld [vmem:[#allocation2 + $0x8] sm:$0xff] }
 0x130   : > { %v799_v57 = vmul.f32 %v798_v48, %v790_v49  ;;  %v804_v7 = vmul.f32 %v803_v52, %v792_v56 }
 0x131   : > { %v786_v55 = vadd.f32 %v784_v51, %v781_v50 }
 0x133   : > { %v756_v59 = vld [vmem:[#allocation2 + $0xb] sm:$0xff]  ;;  %v801_v62 = vadd.f32 %v799_v57, %v786_v55  ;;  %v813_v26 = vld [vmem:[#allocation2 + $0x13] sm:$0xff]  ;;  %v867_v57 = vld [vmem:[%s1322_s13] sm:$0x3] }
 0x134   : > { %v764_v60 = vld [vmem:[#allocation2 + $0xc] sm:$0xff]  ;;  %v762_v0 = vsel %vm1236_vm8, %v756_v59, 0.0  ;;  %v814_v10 = vsel %vm1214_vm6, %v756_v59, 0.0  ;;  %v815_v39 = vsel %vm1236_vm8, %v813_v26, 0.0  ;;  %v816_v43 = vld [vmem:[#allocation2 + $0x14] sm:$0xff] }
 0x135   : > { %v766_v61 = vld [vmem:[#allocation2 + $0xd] sm:$0xff]  ;;  %v780_v2 = vmul.f32 %v778_v32, %v764_v60  ;;  %v775_v8 = vmul.f32 %v773_v36, %v762_v0  ;;  %v806_v12 = vadd.f32 %v804_v7, %v801_v62  ;;  %v821_v19 = vmul.f32 %v820_v63, %v814_v10  ;;  %v1038_v59 = vld [vmem:[%s1320_s11] ss:$0 sm:$0xff] }
 0x136   : > { %v772_v1 = vsel %vm1240_vm9, %v766_v61, 0.0  ;;  %v789_v3 = vld [vmem:[#allocation2 + $0xf] sm:$0xff]  ;;  %v818_v24 = vsel %vm1218_vm7, %v766_v61, 0.0  ;;  %v826_v30 = vmul.f32 %v825_v14, %v764_v60  ;;  %v822_v45 = vmul.f32 %v820_v63, %v815_v39  ;;  %v1039_v61 = vld [vmem:[%s1321_s12] ss:$0 sm:$0xff] }
 0x137   : > { %v794_v6 = vld [vmem:[#allocation2 + $0x9] sm:$0xff]  ;;  %v791_v11 = vsel %vm1236_vm8, %v789_v3, 0.0  ;;  %v782_v15 = vadd.f32 %v780_v2, %v775_v8  ;;  %v785_v16 = vmul.f32 %v783_v41, %v772_v1  ;;  %v795_v17 = vld [vmem:[#allocation2 + $0x11] sm:$0xff]  ;;  %v831_v36 = vmul.f32 %v1036_v20, %v818_v24 }
 0x138   : > { %v796_v9 = vsel %vm1218_vm7, %v794_v6, 0.0  ;;  %v793_v21 = vld [vmem:[#allocation2 + $0x10] sm:$0xff]  ;;  %v800_v23 = vmul.f32 %v798_v48, %v791_v11  ;;  %v797_v29 = vsel %vm1240_vm9, %v795_v17, 0.0  ;;  %v827_v49 = vmul.f32 %v825_v14, %v816_v43 }
 0x139   : > { %v809_v13 = vmul.f32 %v808_v58, %v796_v9  ;;  %v787_v22 = vadd.f32 %v785_v16, %v782_v15  ;;  %v805_v33 = vmul.f32 %v803_v52, %v793_v21  ;;  %v810_v35 = vmul.f32 %v808_v58, %v797_v29  ;;  %v817_v41 = vld [vmem:[#allocation2 + $0x15] sm:$0xff] }
 0x13a   : > { %v819_v47 = vsel %vm1240_vm9, %v817_v41, 0.0  ;;  %v876_v58 = vsel %vm695_vm2, %v867_v57, 0 }
 0x13b   : > { %v811_v18 = vadd.f32 %v809_v13, %v806_v12  ;;  %v802_v32 = vadd.f32 %v800_v23, %v787_v22  ;;  %v832_v52 = vmul.f32 %v1036_v20, %v819_v47  ;;  %885 = vmatpush.bf16.msra.mxu2 %v876_v58 }
 0x13d   : > { %v823_v28 = vadd.f32 %v821_v19, %v811_v18  ;;  %v807_v40 = vadd.f32 %v805_v33, %v802_v32 }
 0x13f   : > { %v828_v34 = vadd.f32 %v826_v30, %v823_v28  ;;  %v812_v44 = vadd.f32 %v810_v35, %v807_v40 }
 0x141   : > { %v833_v42 = vadd.f32 %v831_v36, %v828_v34  ;;  %v824_v48 = vadd.f32 %v822_v45, %v812_v44 }
 0x143   : > { %v838_v46 = vadd.f32 %v1037_v38, %v833_v42  ;;  %v829_v51 = vadd.f32 %v827_v49, %v824_v48 }
 0x145   : > { %v840_v50 = vmax.f32 %v838_v46, 0.0  ;;  %v834_v53 = vadd.f32 %v832_v52, %v829_v51 }
 0x147   : > { %844 = vrot.lane.b32.xlu0 %v840_v50, %s1066_s29  ;;  %v839_v55 = vadd.f32 %v1037_v38, %v834_v53 }
 0x149   : > { %v841_v56 = vmax.f32 %v839_v55, 0.0 }
 0x14f   : > { %846 = vrot.lane.b32.xlu0 %v841_v56, %s1066_s29 }
 0x1b9   : > { %v845_v54 = vpop.permute.xlu0 %844 }
 0x1ba   : > { %v850_v60 = vsel %vm717_vm5, %v713_v27, %v845_v54 }
 0x1bb   : > { %v856_v62 = vmul.f32 %v1038_v59, %v850_v60 }
 0x1bd   : > { %v862_v1 = vadd.f32 %v1039_v61, %v856_v62 }
 0x1bf   : > { %v864_v6 = vmax.f32 %v862_v1, 0.0 }
 0x1c1   : > { %v847_v63 = vpop.permute.xlu0 %846 }
 0x1c2   : > { %v851_v0 = vsel %vm717_vm5, %v714_v37, %v847_v63 }
 0x1c3   : > { %v857_v2 = vmul.f32 %v1038_v59, %v851_v0 }
 0x1c5   : > { %v863_v3 = vadd.f32 %v1039_v61, %v857_v2 }
 0x1c7   : > { %v865_v7 = vmax.f32 %v863_v3, 0.0 }
 0x1c9   : > { %v866_v8 = vpack.c.bf16 %v865_v7, %v864_v6 }
 0x1cb   : > { %1003 = vmatmul.msk.bf16.vlgmr.msra.gmra.mxu2 %vm691_vm3, %v866_v8 }
 0x24e   : > { %v887_v27 = vpop.f32.mrf.mxu2 }
 0x24f   : > { %v888_v9 = vadd.f32 %v1040_v25, %v887_v27 }
 0x251   : > { %v892_v31 = vadd.f32 %v888_v9, %v1182_v4 }
 0x253   : > { %894 = vst.msk [vmem:[%s637_s28] sm:$0xff] %vm665_vm1, %v892_v31 }
 0x256   : > { %v889_v37 = vpop.f32.mrf.mxu2 }
 0x257   : > { %v890_v10 = vadd.f32 %v1040_v25, %v889_v37 }
 0x259   : > { %v893_v11 = vadd.f32 %v890_v10, %v1184_v5 }
 0x25b   : > { %895 = vst.msk [vmem:[%s637_s28 + $0x8] sm:$0xff] %vm665_vm1, %v893_v11 }
 0x25c PF: > { %s25_s1 = sadd.s32 1, %s1063_s1   ;;  %s1333_s16 = smov %s1059_s17 }
 0x25d   : > { %p22_p5 = scmp.ge.s32.totalorder %s25_s1, 4   ;;  %s1334_s17 = smov %s1336_s18 }
 0x25f   :  { %24 = sbr.rel (!%p22_p5) target bundleno = 2 (0x2), region = 116 }

// kernel: hourglass_forward.7
= control target key start
LH: loop header
LB: loop body
LE: loop exit
PB: predicated region body
PF: predicated region fallthrough
CT: control target
= control target key end

     0   :  { %s3569_s16 = smov 0   ;;  %s3571_s17 = smov 0   ;;  %s5530_s0 = inlined_call_operand.vmem [shape: f32[512,8], index: 0, kind: input, shape index: {}, may-alias: {0,1,2}]   ;;  %s5531_s1 = inlined_call_operand.vmem [shape: f32[32,16,8], index: 1, kind: input, shape index: {}, may-alias: {0,1,2}]   ;;  %s5532_s2 = inlined_call_operand.vmem [shape: f32[32,16,8], index: 2, kind: input, shape index: {}, may-alias: {0,1,2}]   ;;  %s5533_s3 = inlined_call_operand.vmem [shape: f32[1,8], index: 3, kind: input, shape index: {}]   ;;  %s5534_s4 = inlined_call_operand.vmem [shape: f32[1,8], index: 4, kind: input, shape index: {}]   ;;  %s5535_s5 = inlined_call_operand.vmem [shape: bf16[8,4], index: 5, kind: input, shape index: {}]   ;;  %s5536_s6 = inlined_call_operand.vmem [shape: f32[1,4], index: 6, kind: input, shape index: {}]   ;;  %s5537_s7 = inlined_call_operand.vmem [shape: bf16[4,2], index: 7, kind: input, shape index: {}]   ;;  %s5538_s8 = inlined_call_operand.vmem [shape: f32[1,2], index: 8, kind: input, shape index: {}]   ;;  %s5539_s9 = inlined_call_operand.vmem [shape: f32[9,2], index: 9, kind: input, shape index: {}]   ;;  %s5540_s10 = inlined_call_operand.vmem [shape: f32[1,2], index: 10, kind: input, shape index: {}]   ;;  %s5541_s11 = inlined_call_operand.vmem [shape: f32[1,4], index: 11, kind: input, shape index: {}]   ;;  %s5542_s12 = inlined_call_operand.vmem [shape: f32[1,4], index: 12, kind: input, shape index: {}]   ;;  %s5543_s13 = inlined_call_operand.vmem [shape: bf16[4,8], index: 13, kind: input, shape index: {}]   ;;  %s5544_s14 = inlined_call_operand.vmem [shape: f32[1,8], index: 14, kind: input, shape index: {}]   ;;  %s5545_s15 = inlined_call_operand.vmem [shape: f32[512,8], index: 15, kind: output, shape index: {}]  }
   0x1   :  { %s3573_s1 = smov 0  }
   0x2 LB: > { %s37_s18 = sadd.s32 1, %s3481_s17  ;;  %p3331_p0 = scmp.ge.s32.totalorder %s3485_s1, 1  ;;  %s3485_s1 = sphi %s3573_s1, %s25_s1   ;;  %s3481_s17 = sphi %s3571_s17, %s5824_s17   ;;  %s3477_s16 = sphi %s3569_s16, %s5823_s16  }
   0x3   : > { %p39_p1 = scmp.ge.s32.totalorder %s37_s18, 2  ;;  %p524_p2 = scmp.lt.s32.totalorder %s3485_s1, 3 }
   0x5   : > { %s5826_s18 = smov (%p39_p1, %s37_s18), 0  ;;  %p525_p3 = pnand %p3331_p0, %p524_p2 }
   0x7   : > { %528 = sbr.rel (%p525_p3) target bundleno = 839 (0x347), region = 80 }
   0xc   : > { %v649_v0 = vld [vmem:[%s5535_s5] sm:$0xf]  ;;  %vm855_vm0 = vcmask 1043456   ;;  %s3332_s20 = sshll.u32 %s3477_s16, 5  ;;  %vm806_vm1 = vcmask 64512   ;;  %vm1016_vm2 = vcmask 1041408  }
   0xd   : > { %v857_v1 = vsel %vm855_vm0, %v649_v0, 0  ;;  %p598_p4 = scmp.lt.s32.totalorder %s3332_s20, 63  ;;  %v3593_v2 = vld [vmem:[%s5533_s3] ss:$0 sm:$0xff]  ;;  %vm967_vm3 = vcmask 31744   ;;  %vm1141_vm4 = vcmask 15360  }
   0xe   : > { %866 = vmatpush.bf16.msra.mxu0 %v857_v1  ;;  %3386 = vmatpush.bf16.msra.mxu3 %v857_v1  ;;  %v3608_v3 = vld [vmem:[%s5534_s4] ss:$0 sm:$0xff]  ;;  %s3488_s30 = smov 2  }
   0xf   : > { %s5828_s20 = smov (!%p598_p4, %s3332_s20), 63 }
  0x10   : > { %s3333_s23 = sshll.u32 %s5828_s20, 3 }
  0x11   : > { %s3603_s26 = scalar_lea.vmem %s5530_s0, %s3333_s23  ;;  %s5315_s21 = scalar_lea.vmem %s5545_s15, %s3333_s23 }
  0x12   : > { %v653_v4 = vld [vmem:[%s3603_s26] sm:$0xff]  ;;  %v654_v5 = vld [vmem:[%s3603_s26 + $0x8] sm:$0xff]  ;;  %v655_v12 = vld [vmem:[%s3603_s26 + $0x10] sm:$0xff] }
  0x13   : > { %v688_v6 = vmul.f32 %v3593_v2, %v653_v4  ;;  %v689_v7 = vmul.f32 %v3593_v2, %v654_v5  ;;  %v656_v13 = vld [vmem:[%s3603_s26 + $0x18] sm:$0xff]  ;;  %v690_v15 = vmul.f32 %v3593_v2, %v655_v12  ;;  %v657_v22 = vld [vmem:[%s3603_s26 + $0x20] sm:$0xff]  ;;  %v658_v23 = vld [vmem:[%s3603_s26 + $0x28] sm:$0xff] }
  0x14   : > { %v691_v16 = vmul.f32 %v3593_v2, %v656_v13  ;;  %v692_v24 = vmul.f32 %v3593_v2, %v657_v22  ;;  %v693_v25 = vmul.f32 %v3593_v2, %v658_v23  ;;  %v659_v31 = vld [vmem:[%s3603_s26 + $0x30] sm:$0xff]  ;;  %v660_v32 = vld [vmem:[%s3603_s26 + $0x38] sm:$0xff]  ;;  %v661_v40 = vld [vmem:[%s3603_s26 + $0x40] sm:$0xff] }
  0x15   : > { %v723_v8 = vadd.f32 %v3608_v3, %v688_v6  ;;  %v724_v9 = vadd.f32 %v3608_v3, %v689_v7  ;;  %v725_v17 = vadd.f32 %v3608_v3, %v690_v15  ;;  %v694_v33 = vmul.f32 %v3593_v2, %v659_v31  ;;  %v662_v41 = vld [vmem:[%s3603_s26 + $0x48] sm:$0xff]  ;;  %v663_v49 = vld [vmem:[%s3603_s26 + $0x50] sm:$0xff]  ;;  %v664_v50 = vld [vmem:[%s3603_s26 + $0x58] sm:$0xff] }
  0x16   : > { %v726_v18 = vadd.f32 %v3608_v3, %v691_v16  ;;  %v727_v26 = vadd.f32 %v3608_v3, %v692_v24  ;;  %v728_v27 = vadd.f32 %v3608_v3, %v693_v25  ;;  %v695_v34 = vmul.f32 %v3593_v2, %v660_v32  ;;  %v677_v51 = vld [vmem:[%s3603_s26 + $0xc0] sm:$0xff]  ;;  %v678_v52 = vld [vmem:[%s3603_s26 + $0xc8] sm:$0xff]  ;;  %v679_v7 = vld [vmem:[%s3603_s26 + $0xd0] sm:$0xff] }
  0x17   : > { %v755_v10 = vmax.f32 %v723_v8, 0.0  ;;  %v756_v11 = vmax.f32 %v724_v9, 0.0  ;;  %v757_v19 = vmax.f32 %v725_v17, 0.0  ;;  %v729_v35 = vadd.f32 %v3608_v3, %v694_v33  ;;  %v665_v5 = vld [vmem:[%s3603_s26 + $0x60] sm:$0xff]  ;;  %v666_v6 = vld [vmem:[%s3603_s26 + $0x68] sm:$0xff]  ;;  %v680_v8 = vld [vmem:[%s3603_s26 + $0xd8] sm:$0xff] }
  0x18   : > { %v758_v20 = vmax.f32 %v726_v18, 0.0  ;;  %v759_v28 = vmax.f32 %v727_v26, 0.0  ;;  %v760_v29 = vmax.f32 %v728_v27, 0.0  ;;  %v730_v36 = vadd.f32 %v3608_v3, %v695_v34  ;;  %v667_v23 = vld [vmem:[%s3603_s26 + $0x70] sm:$0xff]  ;;  %v668_v24 = vld [vmem:[%s3603_s26 + $0x78] sm:$0xff]  ;;  %v681_v25 = vld [vmem:[%s3603_s26 + $0xe0] sm:$0xff] }
  0x19   : > { %v787_v14 = vpack.c.bf16 %v756_v11, %v755_v10  ;;  %v761_v37 = vmax.f32 %v729_v35, 0.0  ;;  %v696_v42 = vmul.f32 %v3593_v2, %v661_v40  ;;  %v697_v43 = vmul.f32 %v3593_v2, %v662_v41  ;;  %v682_v26 = vld [vmem:[%s3603_s26 + $0xe8] sm:$0xff] }
  0x1a   : > { %v788_v21 = vpack.c.bf16 %v758_v20, %v757_v19  ;;  %v789_v30 = vpack.c.bf16 %v760_v29, %v759_v28  ;;  %v762_v38 = vmax.f32 %v730_v36, 0.0  ;;  %v698_v53 = vmul.f32 %v3593_v2, %v663_v49 }
  0x1b   : > { %3336 = vmatmul.msk.bf16.vlgmr.msra.gmra.mxu0 %vm806_vm1, %v787_v14  ;;  %v731_v44 = vadd.f32 %v3608_v3, %v696_v42  ;;  %v732_v45 = vadd.f32 %v3608_v3, %v697_v43  ;;  %v699_v54 = vmul.f32 %v3593_v2, %v664_v50  ;;  %v712_v55 = vmul.f32 %v3593_v2, %v677_v51  ;;  %v669_v43 = vld [vmem:[%s3603_s26 + $0x80] sm:$0xff] }
  0x1c   : > { %v790_v39 = vpack.c.bf16 %v762_v38, %v761_v37  ;;  %v713_v56 = vmul.f32 %v3593_v2, %v678_v52  ;;  %v733_v59 = vadd.f32 %v3608_v3, %v698_v53  ;;  %v700_v9 = vmul.f32 %v3593_v2, %v665_v5  ;;  %v651_v37 = vld [vmem:[%s5537_s7] sm:$0x3] }
  0x1d   : > { %v763_v46 = vmax.f32 %v731_v44, 0.0  ;;  %v764_v47 = vmax.f32 %v732_v45, 0.0  ;;  %v747_v57 = vadd.f32 %v3608_v3, %v712_v55  ;;  %v734_v60 = vadd.f32 %v3608_v3, %v699_v54  ;;  %v670_v44 = vld [vmem:[%s3603_s26 + $0x88] sm:$0xff]  ;;  %v683_v45 = vld [vmem:[%s3603_s26 + $0xf0] sm:$0xff] }
  0x1e   : > { %v748_v58 = vadd.f32 %v3608_v3, %v713_v56  ;;  %v765_v0 = vmax.f32 %v733_v59, 0.0  ;;  %v701_v10 = vmul.f32 %v3593_v2, %v666_v6  ;;  %v714_v11 = vmul.f32 %v3593_v2, %v679_v7 }
  0x1f   : > { %v791_v48 = vpack.c.bf16 %v764_v47, %v763_v46  ;;  %v779_v61 = vmax.f32 %v747_v57, 0.0  ;;  %v766_v1 = vmax.f32 %v734_v60, 0.0  ;;  %v715_v12 = vmul.f32 %v3593_v2, %v680_v8  ;;  %v684_v46 = vld [vmem:[%s3603_s26 + $0xf8] sm:$0xff] }
  0x20   : > { %v780_v62 = vmax.f32 %v748_v58, 0.0  ;;  %v749_v13 = vadd.f32 %v3608_v3, %v714_v11  ;;  %v735_v15 = vadd.f32 %v3608_v3, %v700_v9  ;;  %v736_v16 = vadd.f32 %v3608_v3, %v701_v10 }
  0x21   : > { %v792_v4 = vpack.c.bf16 %v766_v1, %v765_v0  ;;  %v750_v14 = vadd.f32 %v3608_v3, %v715_v12  ;;  %v702_v27 = vmul.f32 %v3593_v2, %v667_v23  ;;  %v703_v28 = vmul.f32 %v3593_v2, %v668_v24 }
  0x22   : > { %v799_v63 = vpack.c.bf16 %v780_v62, %v779_v61  ;;  %v781_v17 = vmax.f32 %v749_v13, 0.0  ;;  %v767_v20 = vmax.f32 %v735_v15, 0.0  ;;  %v716_v29 = vmul.f32 %v3593_v2, %v681_v25  ;;  %v671_v62 = vld [vmem:[%s3603_s26 + $0x90] sm:$0xff]  ;;  %v673_v15 = vld [vmem:[%s3603_s26 + $0xa0] sm:$0xff] }
  0x23   : > { %v782_v18 = vmax.f32 %v750_v14, 0.0  ;;  %v737_v33 = vadd.f32 %v3608_v3, %v702_v27  ;;  %v738_v34 = vadd.f32 %v3608_v3, %v703_v28  ;;  %v1018_v38 = vsel %vm1016_vm2, %v651_v37, 0 }
  0x24   : > { %3348 = vmatmul.msk.bf16.vlgmr.msra.gmra.mxu3 %vm806_vm1, %v799_v63  ;;  %v751_v31 = vadd.f32 %v3608_v3, %v716_v29  ;;  %1027 = vmatpush.bf16.msra.mxu1 %v1018_v38  ;;  %v704_v47 = vmul.f32 %v3593_v2, %v669_v43  ;;  %v718_v49 = vmul.f32 %v3593_v2, %v683_v45  ;;  %v672_v63 = vld [vmem:[%s3603_s26 + $0x98] sm:$0xff]  ;;  %v675_v29 = vld [vmem:[%s3603_s26 + $0xb0] sm:$0xff] }
  0x25   : > { %v800_v19 = vpack.c.bf16 %v782_v18, %v781_v17  ;;  %3387 = vmatpush.bf16.msrb.mxu3 %v1018_v38  ;;  %v769_v40 = vmax.f32 %v737_v33, 0.0  ;;  %v770_v41 = vmax.f32 %v738_v34, 0.0  ;;  %v719_v50 = vmul.f32 %v3593_v2, %v684_v46 }
  0x26   : > { %v783_v35 = vmax.f32 %v751_v31, 0.0  ;;  %v753_v51 = vadd.f32 %v3608_v3, %v718_v49  ;;  %v739_v53 = vadd.f32 %v3608_v3, %v704_v47  ;;  %v706_v0 = vmul.f32 %v3593_v2, %v671_v62 }
  0x27   : > { %v794_v42 = vpack.c.bf16 %v770_v41, %v769_v40  ;;  %v754_v52 = vadd.f32 %v3608_v3, %v719_v50  ;;  %v707_v1 = vmul.f32 %v3593_v2, %v672_v63  ;;  %v708_v17 = vmul.f32 %v3593_v2, %v673_v15 }
  0x28   : > { %v785_v55 = vmax.f32 %v753_v51, 0.0  ;;  %v771_v58 = vmax.f32 %v739_v53, 0.0  ;;  %v741_v5 = vadd.f32 %v3608_v3, %v706_v0  ;;  %v710_v31 = vmul.f32 %v3593_v2, %v675_v29 }
  0x29   : > { %v786_v56 = vmax.f32 %v754_v52, 0.0  ;;  %v742_v6 = vadd.f32 %v3608_v3, %v707_v1 }
  0x2a   : > { %v773_v11 = vmax.f32 %v741_v5, 0.0  ;;  %v745_v33 = vadd.f32 %v3608_v3, %v710_v31 }
  0x2b   : > { %3337 = vmatmul.msk.bf16.gmra.mxu0 %vm806_vm1, %v788_v21  ;;  %v768_v21 = vmax.f32 %v736_v16, 0.0  ;;  %v802_v57 = vpack.c.bf16 %v786_v56, %v785_v55  ;;  %v774_v12 = vmax.f32 %v742_v6, 0.0  ;;  %v674_v16 = vld [vmem:[%s3603_s26 + $0xa8] sm:$0xff] }
  0x2c   : > { %v709_v18 = vmul.f32 %v3593_v2, %v674_v16 }
  0x2d   : > { %v793_v22 = vpack.c.bf16 %v768_v21, %v767_v20  ;;  %v796_v13 = vpack.c.bf16 %v774_v12, %v773_v11 }
  0x2e   : > { %v744_v20 = vadd.f32 %v3608_v3, %v709_v18 }
  0x34   : > { %3349 = vmatmul.msk.bf16.gmra.mxu3 %vm806_vm1, %v800_v19  ;;  %v743_v19 = vadd.f32 %v3608_v3, %v708_v17 }
  0x36   : > { %v775_v25 = vmax.f32 %v743_v19, 0.0 }
  0x3b   : > { %3338 = vmatmul.msk.bf16.gmra.mxu0 %vm806_vm1, %v789_v30  ;;  %v717_v30 = vmul.f32 %v3593_v2, %v682_v26  ;;  %v776_v26 = vmax.f32 %v744_v20, 0.0 }
  0x3d   : > { %v752_v32 = vadd.f32 %v3608_v3, %v717_v30  ;;  %v797_v27 = vpack.c.bf16 %v776_v26, %v775_v25  ;;  %v676_v30 = vld [vmem:[%s3603_s26 + $0xb8] sm:$0xff]  ;;  %v3772_v25 = vld [vmem:[%s5538_s8] ss:$0 sm:$0xff] }
  0x3f   : > { %v784_v36 = vmax.f32 %v752_v32, 0.0  ;;  %v711_v32 = vmul.f32 %v3593_v2, %v676_v30 }
  0x41   : > { %v746_v34 = vadd.f32 %v3608_v3, %v711_v32 }
  0x43   : > { %v778_v40 = vmax.f32 %v746_v34, 0.0 }
  0x4b   : > { %3339 = vmatmul.msk.bf16.gmra.mxu0 %vm806_vm1, %v790_v39  ;;  %v801_v39 = vpack.c.bf16 %v784_v36, %v783_v35 }
  0x4d   : > { %3350 = vmatmul.msk.bf16.gmra.mxu3 %vm806_vm1, %v801_v39  ;;  %v777_v39 = vmax.f32 %v745_v33, 0.0 }
  0x4f   : > { %v798_v41 = vpack.c.bf16 %v778_v40, %v777_v39 }
  0x5b   : > { %3340 = vmatmul.msk.bf16.gmra.mxu0 %vm806_vm1, %v791_v48  ;;  %v705_v48 = vmul.f32 %v3593_v2, %v670_v44 }
  0x5d   : > { %v740_v54 = vadd.f32 %v3608_v3, %v705_v48  ;;  %3351 = vmatmul.msk.bf16.gmra.mxu3 %vm806_vm1, %v802_v57 }
  0x5f   : > { %v772_v59 = vmax.f32 %v740_v54, 0.0 }
  0x61   : > { %v795_v60 = vpack.c.bf16 %v772_v59, %v771_v58 }
  0x6b   : > { %3341 = vmatmul.msk.bf16.gmra.mxu0 %vm806_vm1, %v792_v4  ;;  %v3712_v4 = vld [vmem:[%s5536_s6] ss:$0 sm:$0xff] }
  0x7b   : > { %3342 = vmatmul.msk.bf16.gmra.mxu0 %vm806_vm1, %v793_v22 }
  0x8b   : > { %3343 = vmatmul.msk.bf16.gmra.mxu0 %vm806_vm1, %v794_v42 }
  0x98   : > { %v868_v61 = vpop.f32.mrf.mxu0 }
  0x99   : > { %v869_v8 = vadd.f32 %v3712_v4, %v868_v61 }
  0x9b   : > { %3344 = vmatmul.msk.bf16.gmra.mxu0 %vm806_vm1, %v795_v60 }
  0xa0   : > { %v870_v7 = vpop.f32.mrf.mxu0 }
  0xa1   : > { %v871_v9 = vadd.f32 %v3712_v4, %v870_v7 }
  0xa3   : > { %v948_v10 = vpack.c.bf16 %v871_v9, %v869_v8  ;;  %v3487_v9 = vmov 0.0  }
  0xa4   : > { %1142 = vst.msk [vmem:[#allocation2 + $0x8] sm:$0xff] %vm1141_vm4, %v3487_v9 }
  0xa5   : > { %3352 = vmatmul.msk.bf16.vlgmr.msra.gmra.mxu1 %vm967_vm3, %v948_v10  ;;  %1143 = vst.msk [vmem:[#allocation2 + $0x10] sm:$0xff] %vm1141_vm4, %v3487_v9 }
  0xa6   : > { %1176 = vst.msk [vmem:[#allocation2 + $0x118] sm:$0xff] %vm1141_vm4, %v3487_v9 }
  0xa7   : > { %v928_v50 = vpop.f32.mrf.mxu3  ;;  %1177 = vst.msk [vmem:[#allocation2 + $0x120] sm:$0xff] %vm1141_vm4, %v3487_v9 }
  0xa8   : > { %v873_v14 = vpop.f32.mrf.mxu0  ;;  %v929_v52 = vadd.f32 %v3712_v4, %v928_v50 }
  0xa9   : > { %v874_v22 = vadd.f32 %v3712_v4, %v873_v14 }
  0xab   : > { %3345 = vmatmul.msk.bf16.gmra.mxu0 %vm806_vm1, %v796_v13  ;;  %v1662_v40 = vld [vmem:[#allocation2 + $0x7] sm:$0xff] }
  0xac   : > { %v1822_v50 = vld [vmem:[#allocation2 + $0x9] sm:$0xff] }
  0xaf   : > { %v930_v53 = vpop.f32.mrf.mxu3 }
  0xb0   : > { %v875_v21 = vpop.f32.mrf.mxu0  ;;  %v931_v54 = vadd.f32 %v3712_v4, %v930_v53 }
  0xb1   : > { %v876_v23 = vadd.f32 %v3712_v4, %v875_v21 }
  0xb2   : > { %v960_v58 = vpack.c.bf16 %v931_v54, %v929_v52 }
  0xb3   : > { %v949_v24 = vpack.c.bf16 %v876_v23, %v874_v22  ;;  %v1181_v22 = vlaneseq }
  0xb4   : > { %3364 = vmatmul.msk.bf16.vlgmr.msrb.gmra.mxu3 %vm967_vm3, %v960_v58 }
  0xb5   : > { %3353 = vmatmul.msk.bf16.gmra.mxu1 %vm967_vm3, %v949_v24 }
  0xb7   : > { %v933_v60 = vpop.f32.mrf.mxu3 }
  0xb8   : > { %v878_v28 = vpop.f32.mrf.mxu0  ;;  %v934_v62 = vadd.f32 %v3712_v4, %v933_v60 }
  0xb9   : > { %v879_v36 = vadd.f32 %v3712_v4, %v878_v28  ;;  %v3775_v28 = vshrl.u32 %v1181_v22, 7 }
  0xbb   : > { %3346 = vmatmul.msk.bf16.gmra.mxu0 %vm806_vm1, %v797_v27 }
  0xbf   : > { %v935_v63 = vpop.f32.mrf.mxu3 }
  0xc0   : > { %v880_v35 = vpop.f32.mrf.mxu0  ;;  %v936_v0 = vadd.f32 %v3712_v4, %v935_v63  ;;  %v1184_v63 = vadd.s32 16, %v3775_v28 }
  0xc1   : > { %v881_v37 = vadd.f32 %v3712_v4, %v880_v35  ;;  %v1218_v35 = vand.u32 15, %v3775_v28 }
  0xc2   : > { %v961_v7 = vpack.c.bf16 %v936_v0, %v934_v62 }
  0xc3   : > { %v950_v38 = vpack.c.bf16 %v881_v37, %v879_v36  ;;  %v3792_v37 = vld [vmem:[%s5539_s9] sm:$0xff]  ;;  %vm3794_vm5 = vcmp.gt.s32.totalorder %v1218_v35, 0 }
  0xc4   : > { %3365 = vmatmul.msk.bf16.gmra.mxu3 %vm967_vm3, %v961_v7  ;;  %v3826_v60 = vperm.slane %v3792_v37, 3  ;;  %v1791_v7 = vld [vmem:[#allocation2 + $0x10] sm:$0xff]  ;;  %v3855_v22 = vperm.slane %v3792_v37, 6 }
  0xc5   : > { %3354 = vmatmul.msk.bf16.gmra.mxu1 %vm967_vm3, %v950_v38 }
  0xc8   : > { %v883_v42 = vpop.f32.mrf.mxu0 }
  0xc9   : > { %v884_v2 = vadd.f32 %v3712_v4, %v883_v42  ;;  %v3799_v42 = vperm.slane %v3792_v37, 0 }
  0xcb   : > { %3347 = vmatmul.msk.bf16.gmra.mxu0 %vm806_vm1, %v798_v41 }
  0xd0   : > { %v885_v43 = vpop.f32.mrf.mxu0  ;;  %v938_v10 = vpop.f32.mrf.mxu3 }
  0xd1   : > { %v886_v44 = vadd.f32 %v3712_v4, %v885_v43  ;;  %v939_v12 = vadd.f32 %v3712_v4, %v938_v10  ;;  %v3802_v43 = vperm.slane %v3792_v37, 1 }
  0xd3   : > { %v951_v3 = vpack.c.bf16 %v886_v44, %v884_v2  ;;  %v1758_v44 = vsel %vm3794_vm5, %v1662_v40, 0.0 }
  0xd5   : > { %3355 = vmatmul.msk.bf16.gmra.mxu1 %vm967_vm3, %v951_v3  ;;  %v1790_v3 = vld [vmem:[#allocation2 + $0x8] sm:$0xff] }
  0xd8   : > { %v888_v45 = vpop.f32.mrf.mxu0  ;;  %v940_v13 = vpop.f32.mrf.mxu3 }
  0xd9   : > { %v889_v47 = vadd.f32 %v3712_v4, %v888_v45  ;;  %v941_v14 = vadd.f32 %v3712_v4, %v940_v13  ;;  %v3845_v13 = vperm.slane %v3792_v37, 5 }
  0xdb   : > { %v962_v18 = vpack.c.bf16 %v941_v14, %v939_v12  ;;  %v3842_v12 = vperm.slane %v3792_v37, 4 }
  0xdd   : > { %3366 = vmatmul.msk.bf16.gmra.mxu3 %vm967_vm3, %v962_v18  ;;  %v2017_v18 = vmul.f32 %v3802_v43, %v1791_v7 }
  0xe0   : > { %v890_v46 = vpop.f32.mrf.mxu0  ;;  %v943_v20 = vpop.f32.mrf.mxu3 }
  0xe1   : > { %v891_v48 = vadd.f32 %v3712_v4, %v890_v46  ;;  %v944_v23 = vadd.f32 %v3712_v4, %v943_v20  ;;  %v1951_v46 = vmul.f32 %v3799_v42, %v1758_v44 }
  0xe3   : > { %v952_v49 = vpack.c.bf16 %v891_v48, %v889_v47  ;;  %v2016_v47 = vmul.f32 %v3802_v43, %v1790_v3  ;;  %v3816_v48 = vperm.slane %v3792_v37, 2 }
  0xe5   : > { %3356 = vmatmul.msk.bf16.gmra.mxu1 %vm967_vm3, %v952_v49 }
  0xe8   : > { %v893_v51 = vpop.f32.mrf.mxu0  ;;  %v945_v24 = vpop.f32.mrf.mxu3 }
  0xe9   : > { %v894_v56 = vadd.f32 %v3712_v4, %v893_v51  ;;  %v946_v26 = vadd.f32 %v3712_v4, %v945_v24  ;;  %v1183_v51 = vadd.s32 8, %v3775_v28 }
  0xeb   : > { %v963_v31 = vpack.c.bf16 %v946_v26, %v944_v23  ;;  %v1225_v62 = vand.u32 15, %v1183_v51  ;;  %v3881_v51 = vperm.slane %v3792_v37, 7 }
  0xed   : > { %3367 = vmatmul.msk.bf16.gmra.mxu3 %vm967_vm3, %v963_v31  ;;  %vm3837_vm6 = vcmp.lt.s32.totalorder %v1225_v62, 15 }
  0xf0   : > { %v895_v55 = vpop.f32.mrf.mxu0 }
  0xf1   : > { %v896_v57 = vadd.f32 %v3712_v4, %v895_v55 }
  0xf3   : > { %v953_v59 = vpack.c.bf16 %v896_v57, %v894_v56  ;;  %v2048_v56 = vadd.f32 %v2016_v47, %v1951_v46  ;;  %v1185_v46 = vadd.s32 24, %v3775_v28 }
  0xf5   : > { %3357 = vmatmul.msk.bf16.gmra.mxu1 %vm967_vm3, %v953_v59  ;;  %v2081_v59 = vmul.f32 %v3816_v48, %v1822_v50 }
  0xf8   : > { %v898_v61 = vpop.f32.mrf.mxu0 }
  0xf9   : > { %v899_v5 = vadd.f32 %v3712_v4, %v898_v61 }
 0x100   : > { %v900_v1 = vpop.f32.mrf.mxu0 }
 0x101   : > { %v901_v6 = vadd.f32 %v3712_v4, %v900_v1  ;;  %v2113_v1 = vadd.f32 %v2081_v59, %v2048_v56 }
 0x103   : > { %v954_v8 = vpack.c.bf16 %v901_v6, %v899_v5  ;;  %v1663_v6 = vld [vmem:[#allocation2 + $0xf] sm:$0xff] }
 0x105   : > { %3358 = vmatmul.msk.bf16.gmra.mxu1 %vm967_vm3, %v954_v8 }
 0x108   : > { %v903_v11 = vpop.f32.mrf.mxu0 }
 0x109   : > { %v904_v16 = vadd.f32 %v3712_v4, %v903_v11  ;;  %v1232_v11 = vand.u32 15, %v1184_v63  ;;  %v1186_v63 = vadd.s32 32, %v3775_v28 }
 0x10b   : > { %vm3857_vm7 = vcmp.gt.s32.totalorder %v1232_v11, 0 }
 0x110   : > { %v905_v15 = vpop.f32.mrf.mxu0 }
 0x111   : > { %v906_v17 = vadd.f32 %v3712_v4, %v905_v15 }
 0x113   : > { %v955_v19 = vpack.c.bf16 %v906_v17, %v904_v16  ;;  %v1952_v17 = vmul.f32 %v3799_v42, %v1663_v6  ;;  %v1239_v6 = vand.u32 15, %v1185_v46 }
 0x115   : > { %3359 = vmatmul.msk.bf16.gmra.mxu1 %vm967_vm3, %v955_v19  ;;  %v2049_v31 = vadd.f32 %v2017_v18, %v1952_v17  ;;  %vm3925_vm8 = vcmp.lt.s32.totalorder %v1239_v6, 15  ;;  %v1187_v6 = vadd.s32 40, %v3775_v28 }
 0x118   : > { %v908_v21 = vpop.f32.mrf.mxu0 }
 0x119   : > { %v909_v29 = vadd.f32 %v3712_v4, %v908_v21 }
 0x120   : > { %v910_v27 = vpop.f32.mrf.mxu0 }
 0x121   : > { %v911_v30 = vadd.f32 %v3712_v4, %v910_v27 }
 0x122   : > { %v1029_v32 = vpop.f32.mrf.mxu1 }
 0x123   : > { %v956_v33 = vpack.c.bf16 %v911_v30, %v909_v29  ;;  %v3780_v34 = vadd.f32 %v3772_v25, %v1029_v32 }
 0x125   : > { %v5564_v36 = vmax.f32 %v3780_v34, 0.0  ;;  %3360 = vmatmul.msk.bf16.gmra.mxu1 %vm967_vm3, %v956_v33 }
 0x127   : > { %1144 = vst.msk [vmem:[#allocation2 + $0x18] sm:$0xff] %vm1141_vm4, %v5564_v36 }
 0x128   : > { %v913_v38 = vpop.f32.mrf.mxu0 }
 0x129   : > { %v914_v52 = vadd.f32 %v3712_v4, %v913_v38 }
 0x12a   : > { %v1031_v41 = vpop.f32.mrf.mxu1 }
 0x12b   : > { %v3805_v2 = vadd.f32 %v3772_v25, %v1031_v41 }
 0x12d   : > { %v5563_v45 = vmax.f32 %v3805_v2, 0.0 }
 0x12e   : > { %v1664_v54 = vld [vmem:[#allocation2 + $0x17] sm:$0xff] }
 0x12f   : > { %1145 = vst.msk [vmem:[#allocation2 + $0x20] sm:$0xff] %vm1141_vm4, %v5563_v45  ;;  %v2147_v61 = vsel %vm3794_vm5, %v1664_v54, 0.0  ;;  %v1823_v10 = vld [vmem:[#allocation2 + $0x11] sm:$0xff]  ;;  %v1760_v38 = vsel %vm3857_vm7, %v1664_v54, 0.0 }
 0x130   : > { %v915_v49 = vpop.f32.mrf.mxu0  ;;  %v2216_v5 = vmul.f32 %v3826_v60, %v2147_v61  ;;  %v1792_v15 = vld [vmem:[#allocation2 + $0x18] sm:$0xff]  ;;  %v1919_v21 = vsel %vm3837_vm6, %v1823_v10, 0.0  ;;  %v3893_v61 = vld [vmem:[%s5539_s9 + $0x8] ss:$0 sm:$0xff] }
 0x131   : > { %v916_v53 = vadd.f32 %v3712_v4, %v915_v49  ;;  %v2281_v26 = vmul.f32 %v3842_v12, %v1792_v15  ;;  %v2082_v32 = vmul.f32 %v3816_v48, %v1919_v21 }
 0x132   : > { %v1034_v55 = vpop.f32.mrf.mxu1  ;;  %v2248_v20 = vadd.f32 %v2216_v5, %v2113_v1 }
 0x133   : > { %v957_v57 = vpack.c.bf16 %v916_v53, %v914_v52  ;;  %v3822_v58 = vadd.f32 %v3772_v25, %v1034_v55  ;;  %v2018_v53 = vmul.f32 %v3802_v43, %v1792_v15  ;;  %v2114_v54 = vadd.f32 %v2082_v32, %v2049_v31 }
 0x134   : > { %v2313_v33 = vadd.f32 %v2281_v26, %v2248_v20  ;;  %v1953_v55 = vmul.f32 %v3799_v42, %v1760_v38  ;;  %v1246_v31 = vand.u32 15, %v1186_v63 }
 0x135   : > { %v5560_v0 = vmax.f32 %v3822_v58, 0.0  ;;  %3361 = vmatmul.msk.bf16.gmra.mxu1 %vm967_vm3, %v957_v57 }
 0x136   : > { %v1824_v16 = vld [vmem:[#allocation2 + $0x19] sm:$0xff]  ;;  %v2050_v21 = vadd.f32 %v2018_v53, %v1953_v55  ;;  %vm3939_vm9 = vcmp.gt.s32.totalorder %v1246_v31, 0 }
 0x137   : > { %1146 = vst.msk [vmem:[#allocation2 + $0x28] sm:$0xff] %vm1141_vm4, %v5560_v0  ;;  %v2346_v27 = vmul.f32 %v3845_v13, %v1824_v16  ;;  %v1665_v29 = vld [vmem:[#allocation2 + $0x1f] sm:$0xff] }
 0x138   : > { %v918_v8 = vpop.f32.mrf.mxu0  ;;  %v2217_v3 = vmul.f32 %v3826_v60, %v1665_v29  ;;  %v1793_v37 = vld [vmem:[#allocation2 + $0x20] sm:$0xff] }
 0x139   : > { %v919_v47 = vadd.f32 %v3712_v4, %v918_v8  ;;  %v2378_v50 = vadd.f32 %v2346_v27, %v2313_v33  ;;  %v2083_v8 = vmul.f32 %v3816_v48, %v1824_v16  ;;  %v2282_v15 = vmul.f32 %v3842_v12, %v1793_v37  ;;  %v3920_v16 = vld [vmem:[%s5540_s10] ss:$0 sm:$0xff] }
 0x13a   : > { %v1036_v14 = vpop.f32.mrf.mxu1  ;;  %v2249_v1 = vadd.f32 %v2217_v3, %v2114_v54  ;;  %v1954_v3 = vmul.f32 %v3799_v42, %v1665_v29  ;;  %v2019_v46 = vmul.f32 %v3802_v43, %v1793_v37 }
 0x13b   : > { %v3850_v19 = vadd.f32 %v3772_v25, %v1036_v14 }
 0x13c   : > { %v2314_v32 = vadd.f32 %v2282_v15, %v2249_v1 }
 0x13d   : > { %v5554_v24 = vmax.f32 %v3850_v19, 0.0 }
 0x13e   : > { %v3864_v30 = vld [vmem:[#allocation2 + $0x27] sm:$0xff] }
 0x13f   : > { %1147 = vst.msk [vmem:[#allocation2 + $0x30] sm:$0xff] %vm1141_vm4, %v5554_v24  ;;  %v2412_v35 = vsel %vm3794_vm5, %v3864_v30, 0.0  ;;  %v1825_v44 = vld [vmem:[#allocation2 + $0x21] sm:$0xff]  ;;  %v2149_v5 = vsel %vm3857_vm7, %v3864_v30, 0.0 }
 0x140   : > { %v920_v40 = vpop.f32.mrf.mxu0  ;;  %v2481_v41 = vmul.f32 %v3855_v22, %v2412_v35  ;;  %v3883_v52 = vld [vmem:[#allocation2 + $0x28] sm:$0xff]  ;;  %v2184_v62 = vsel %vm3837_vm6, %v1825_v44, 0.0  ;;  %v2218_v26 = vmul.f32 %v3826_v60, %v2149_v5  ;;  %v1921_v54 = vsel %vm3925_vm8, %v1825_v44, 0.0 }
 0x141   : > { %v921_v49 = vadd.f32 %v3712_v4, %v920_v40  ;;  %v2546_v10 = vmul.f32 %v3881_v51, %v3883_v52  ;;  %v2347_v17 = vmul.f32 %v3845_v13, %v2184_v62  ;;  %v2115_v40 = vadd.f32 %v2083_v8, %v2050_v21 }
 0x142   : > { %v1039_v39 = vpop.f32.mrf.mxu1  ;;  %v2513_v59 = vadd.f32 %v2481_v41, %v2378_v50  ;;  %v2084_v5 = vmul.f32 %v3816_v48, %v1921_v54  ;;  %v1762_v8 = vsel %vm3939_vm9, %v3864_v30, 0.0 }
 0x143   : > { %v958_v56 = vpack.c.bf16 %v921_v49, %v919_v47  ;;  %v3888_v57 = vadd.f32 %v3772_v25, %v1039_v39  ;;  %v2379_v47 = vadd.f32 %v2347_v17, %v2314_v32  ;;  %v2250_v53 = vadd.f32 %v2218_v26, %v2115_v40 }
 0x144   : > { %v2578_v18 = vadd.f32 %v2546_v10, %v2513_v59  ;;  %v2283_v59 = vmul.f32 %v3842_v12, %v3883_v52  ;;  %v2051_v17 = vadd.f32 %v2019_v46, %v1954_v3  ;;  %v1253_v46 = vand.u32 15, %v1187_v6 }
 0x145   : > { %v5561_v7 = vmax.f32 %v3888_v57, 0.0  ;;  %3362 = vmatmul.msk.bf16.gmra.mxu1 %vm967_vm3, %v958_v56 }
 0x146   : > { %v3906_v11 = vld [vmem:[#allocation2 + $0x29] sm:$0xff]  ;;  %v2315_v15 = vadd.f32 %v2283_v59, %v2250_v53  ;;  %v2116_v3 = vadd.f32 %v2084_v5, %v2051_v17  ;;  %vm4009_vm10 = vcmp.lt.s32.totalorder %v1253_v46, 15 }
 0x147   : > { %v3908_v14 = vld [vmem:[#allocation2 + $0x2f] sm:$0xff]  ;;  %1148 = vst.msk [vmem:[#allocation2 + $0x38] sm:$0xff] %vm1141_vm4, %v5561_v7  ;;  %v2611_v20 = vmul.f32 %v3893_v61, %v3906_v11  ;;  %v2348_v37 = vmul.f32 %v3845_v13, %v3906_v11  ;;  %v2085_v5 = vmul.f32 %v3816_v48, %v3906_v11 }
 0x148   : > { %v923_v27 = vpop.f32.mrf.mxu0  ;;  %v2482_v33 = vmul.f32 %v3855_v22, %v3908_v14  ;;  %v3935_v39 = vld [vmem:[#allocation2 + $0x30] sm:$0xff] }
 0x149   : > { %v2643_v38 = vadd.f32 %v2611_v20, %v2578_v18  ;;  %v2547_v1 = vmul.f32 %v3881_v51, %v3935_v39  ;;  %v2219_v20 = vmul.f32 %v3826_v60, %v3908_v14  ;;  %v924_v31 = vadd.f32 %v3712_v4, %v923_v27 }
 0x14a   : > { %v1041_v41 = vpop.f32.mrf.mxu1  ;;  %v2514_v56 = vadd.f32 %v2482_v33, %v2379_v47  ;;  %v2380_v33 = vadd.f32 %v2348_v37, %v2315_v15  ;;  %v2020_v27 = vmul.f32 %v3802_v43, %v3883_v52  ;;  %v1188_v37 = vadd.s32 48, %v3775_v28 }
 0x14b   : > { %v3932_v49 = vadd.f32 %v3772_v25, %v1041_v41  ;;  %v2678_v50 = vadd.f32 %v3920_v16, %v2643_v38  ;;  %v2284_v52 = vmul.f32 %v3842_v12, %v3935_v39 }
 0x14c   : > { %v2579_v21 = vadd.f32 %v2547_v1, %v2514_v56  ;;  %v2251_v56 = vadd.f32 %v2219_v20, %v2116_v3  ;;  %v2021_v3 = vmul.f32 %v3802_v43, %v3935_v39 }
 0x14d   : > { %v5558_v29 = vmax.f32 %v3932_v49, 0.0  ;;  %v2710_v62 = vmax.f32 %v2678_v50, 0.0 }
 0x14e   : > { %v3948_v63 = vld [vmem:[#allocation2 + $0x31] sm:$0xff] }
 0x14f   : > { %v3952_v44 = vld [vmem:[#allocation2 + $0x37] sm:$0xff]  ;;  %1149 = vst.msk [vmem:[#allocation2 + $0x40] sm:$0xff] %vm1141_vm4, %v5558_v29  ;;  %2774 = vrot.lane.b32.xlu0 %v2710_v62, %s3488_s30  ;;  %v2449_v10 = vsel %vm3837_vm6, %v3948_v63, 0.0  ;;  %v2186_v23 = vsel %vm3925_vm8, %v3948_v63, 0.0 }
 0x150   : > { %v925_v18 = vpop.f32.mrf.mxu0  ;;  %v2612_v26 = vmul.f32 %v3893_v61, %v2449_v10  ;;  %v2414_v30 = vsel %vm3857_vm7, %v3952_v44, 0.0  ;;  %v3975_v41 = vld [vmem:[#allocation2 + $0x38] sm:$0xff]  ;;  %v2151_v62 = vsel %vm3939_vm9, %v3952_v44, 0.0  ;;  %v2349_v15 = vmul.f32 %v3845_v13, %v2186_v23 }
 0x151   : > { %v926_v32 = vadd.f32 %v3712_v4, %v925_v18  ;;  %v2483_v9 = vmul.f32 %v3855_v22, %v2414_v30  ;;  %v1955_v4 = vmul.f32 %v3799_v42, %v1762_v8  ;;  %v2548_v1 = vmul.f32 %v3881_v51, %v3975_v41 }
 0x152   : > { %v1044_v38 = vpop.f32.mrf.mxu1  ;;  %v2644_v40 = vadd.f32 %v2612_v26, %v2579_v21  ;;  %v2316_v21 = vadd.f32 %v2284_v52, %v2251_v56  ;;  %v2220_v30 = vmul.f32 %v3826_v60, %v2151_v62  ;;  %v1923_v23 = vsel %vm4009_vm10, %v3948_v63, 0.0 }
 0x153   : > { %v959_v47 = vpack.c.bf16 %v926_v32, %v924_v31  ;;  %v3978_v50 = vadd.f32 %v3772_v25, %v1044_v38  ;;  %v2515_v53 = vadd.f32 %v2483_v9, %v2380_v33  ;;  %v2052_v20 = vadd.f32 %v2020_v27, %v1955_v4 }
 0x154   : > { %v2679_v54 = vadd.f32 %v3920_v16, %v2644_v40  ;;  %v1260_v31 = vand.u32 15, %v1188_v37  ;;  %v1956_v9 = vmul.f32 %v3799_v42, %v3908_v14  ;;  %v2381_v40 = vadd.f32 %v2349_v15, %v2316_v21 }
 0x155   : > { %v5552_v59 = vmax.f32 %v3978_v50, 0.0  ;;  %3363 = vmatmul.msk.bf16.gmra.mxu1 %vm967_vm3, %v959_v47  ;;  %v2580_v17 = vadd.f32 %v2548_v1, %v2515_v53  ;;  %v2117_v33 = vadd.f32 %v2085_v5, %v2052_v20  ;;  %v2285_v56 = vmul.f32 %v3842_v12, %v3975_v41 }
 0x156   : > { %v2711_v6 = vmax.f32 %v2679_v54, 0.0  ;;  %v3999_v8 = vld [vmem:[#allocation2 + $0x39] sm:$0xff]  ;;  %vm4031_vm11 = vcmp.gt.s32.totalorder %v1260_v31, 0  ;;  %v2086_v5 = vmul.f32 %v3816_v48, %v1923_v23  ;;  %v2053_v52 = vadd.f32 %v2021_v3, %v1956_v9 }
 0x157   : > { %v4001_v10 = vld [vmem:[#allocation2 + $0x3f] sm:$0xff]  ;;  %1150 = vst.msk [vmem:[#allocation2 + $0x48] sm:$0xff] %vm1141_vm4, %v5552_v59  ;;  %v2613_v18 = vmul.f32 %v3893_v61, %v3999_v8  ;;  %v2252_v27 = vadd.f32 %v2220_v30, %v2117_v33  ;;  %v2350_v37 = vmul.f32 %v3845_v13, %v3999_v8  ;;  %v1189_v15 = vadd.s32 56, %v3775_v28 }
 0x158   : > { %2776 = vrot.lane.b32.xlu0 %v2711_v6, %s3488_s30  ;;  %v2484_v26 = vmul.f32 %v3855_v22, %v4001_v10  ;;  %v4025_v53 = vld [vmem:[#allocation2 + $0x40] sm:$0xff]  ;;  %v1190_v30 = vadd.s32 64, %v3775_v28  ;;  %v2022_v3 = vmul.f32 %v3802_v43, %v3975_v41 }
 0x159   : > { %v2645_v32 = vadd.f32 %v2613_v18, %v2580_v17  ;;  %v2549_v63 = vmul.f32 %v3881_v51, %v4025_v53  ;;  %v2221_v17 = vmul.f32 %v3826_v60, %v4001_v10  ;;  %v2317_v21 = vadd.f32 %v2285_v56, %v2252_v27 }
 0x15a   : > { %v1046_v38 = vpop.f32.mrf.mxu1  ;;  %v2516_v4 = vadd.f32 %v2484_v26, %v2381_v40  ;;  %v1764_v26 = vsel %vm4031_vm11, %v3952_v44, 0.0  ;;  %v2118_v40 = vadd.f32 %v2086_v5, %v2053_v52  ;;  %v1267_v55 = vand.u32 15, %v1189_v15 }
 0x15b   : > { %v4022_v46 = vadd.f32 %v3772_v25, %v1046_v38  ;;  %v2680_v47 = vadd.f32 %v3920_v16, %v2645_v32  ;;  %v2382_v9 = vadd.f32 %v2350_v37, %v2317_v21  ;;  %v1957_v23 = vmul.f32 %v3799_v42, %v1764_v26 }
 0x15c   : > { %v2581_v18 = vadd.f32 %v2549_v63, %v2516_v4  ;;  %v2087_v63 = vmul.f32 %v3816_v48, %v3999_v8  ;;  %v2286_v5 = vmul.f32 %v3842_v12, %v4025_v53  ;;  %vm4094_vm12 = vcmp.lt.s32.totalorder %v1267_v55, 15 }
 0x15d   : > { %5632 = vst [vmem:[#allocation3_spill] sm:$0xff] %v4022_v46  ;;  %v5550_v14 = vmax.f32 %v4022_v46, 0.0  ;;  %v2712_v39 = vmax.f32 %v2680_v47, 0.0  ;;  %v2054_v8 = vadd.f32 %v2022_v3, %v1957_v23  ;;  %v2023_v55 = vmul.f32 %v3802_v43, %v4025_v53 }
 0x15e   : > { %v4039_v62 = vld [vmem:[#allocation2 + $0x41] sm:$0xff]  ;;  %v1191_v53 = vadd.s32 72, %v3775_v28 }
 0x15f   : > { %v4043_v1 = vld [vmem:[#allocation2 + $0x47] sm:$0xff]  ;;  %1151 = vst.msk [vmem:[#allocation2 + $0x50] sm:$0xff] %vm1141_vm4, %v5550_v14  ;;  %2778 = vrot.lane.b32.xlu1 %v2712_v39, %s3488_s30  ;;  %v2451_v6 = vsel %vm3925_vm8, %v4039_v62, 0.0  ;;  %v2188_v44 = vsel %vm4009_vm10, %v4039_v62, 0.0  ;;  %v2253_v39 = vadd.f32 %v2221_v17, %v2118_v40 }
 0x160   : > { %v2614_v20 = vmul.f32 %v3893_v61, %v2451_v6  ;;  %v2416_v35 = vsel %vm3939_vm9, %v4043_v1, 0.0  ;;  %v4064_v33 = vld [vmem:[#allocation2 + $0x48] sm:$0xff]  ;;  %v2153_v41 = vsel %vm4031_vm11, %v4043_v1, 0.0  ;;  %v2351_v17 = vmul.f32 %v3845_v13, %v2188_v44 }
 0x161   : > { %v2485_v38 = vmul.f32 %v3855_v22, %v2416_v35  ;;  %v2550_v37 = vmul.f32 %v3881_v51, %v4064_v33  ;;  %v2222_v35 = vmul.f32 %v3826_v60, %v2153_v41 }
 0x162   : > { %v1049_v31 = vpop.f32.mrf.mxu1  ;;  %v2646_v32 = vadd.f32 %v2614_v20, %v2581_v18  ;;  %v1274_v18 = vand.u32 15, %v1190_v30  ;;  %v1958_v30 = vmul.f32 %v3799_v42, %v4001_v10 }
 0x163   : > { %v4070_v47 = vadd.f32 %v3772_v25, %v1049_v31  ;;  %v2517_v27 = vadd.f32 %v2485_v38, %v2382_v9  ;;  %v2318_v31 = vadd.f32 %v2286_v5, %v2253_v39  ;;  %v2119_v38 = vadd.f32 %v2087_v63, %v2054_v8 }
 0x164   : > { %v2681_v4 = vadd.f32 %v3920_v16, %v2646_v32  ;;  %vm4113_vm13 = vcmp.gt.s32.totalorder %v1274_v18, 0 }
 0x165   : > { %v5553_v56 = vmax.f32 %v4070_v47, 0.0  ;;  %v2582_v20 = vadd.f32 %v2550_v37, %v2517_v27  ;;  %v2383_v44 = vadd.f32 %v2351_v17, %v2318_v31  ;;  %v1925_v27 = vsel %vm4094_vm12, %v4039_v62, 0.0 }
 0x166   : > { %v2713_v52 = vmax.f32 %v2681_v4, 0.0  ;;  %v1830_v6 = vld [vmem:[#allocation2 + $0x49] sm:$0xff]  ;;  %v2254_v41 = vadd.f32 %v2222_v35, %v2119_v38  ;;  %v2088_v18 = vmul.f32 %v3816_v48, %v1925_v27  ;;  %v1766_v8 = vsel %vm4113_vm13, %v4043_v1, 0.0 }
 0x167   : > { %v4087_v15 = vld [vmem:[#allocation2 + $0x4f] sm:$0xff]  ;;  %1152 = vst.msk [vmem:[#allocation2 + $0x58] sm:$0xff] %vm1141_vm4, %v5553_v56  ;;  %v2615_v21 = vmul.f32 %v3893_v61, %v1830_v6  ;;  %v2352_v17 = vmul.f32 %v3845_v13, %v1830_v6  ;;  %v1281_v1 = vand.u32 15, %v1191_v53 }
 0x168   : > { %2780 = vrot.lane.b32.xlu1 %v2713_v52, %s3488_s30  ;;  %v2486_v32 = vmul.f32 %v3855_v22, %v4087_v15  ;;  %v1799_v4 = vld [vmem:[#allocation2 + $0x50] sm:$0xff]  ;;  %v2287_v52 = vmul.f32 %v3842_v12, %v4064_v33  ;;  %v2223_v31 = vmul.f32 %v3826_v60, %v4087_v15 }
 0x169   : > { %v2647_v9 = vadd.f32 %v2615_v21, %v2582_v20  ;;  %v2551_v62 = vmul.f32 %v3881_v51, %v1799_v4  ;;  %v2055_v21 = vadd.f32 %v2023_v55, %v1958_v30  ;;  %v1192_v30 = vadd.s32 80, %v3775_v28 }
 0x16a   : > { %v1051_v40 = vpop.f32.mrf.mxu1  ;;  %v2518_v10 = vadd.f32 %v2486_v32, %v2383_v44  ;;  %v2319_v38 = vadd.f32 %v2287_v52, %v2254_v41  ;;  %v2024_v41 = vmul.f32 %v3802_v43, %v4064_v33  ;;  %vm4180_vm14 = vcmp.lt.s32.totalorder %v1281_v1, 15 }
 0x16b   : > { %v4107_v3 = vadd.f32 %v3772_v25, %v1051_v40  ;;  %v2682_v23 = vadd.f32 %v3920_v16, %v2647_v9 }
 0x16c   : > { %v2583_v32 = vadd.f32 %v2551_v62, %v2518_v10  ;;  %v2384_v11 = vadd.f32 %v2352_v17, %v2319_v38  ;;  %v1959_v10 = vmul.f32 %v3799_v42, %v1766_v8 }
 0x16d   : > { %5637 = vst [vmem:[#allocation4_spill] sm:$0xff] %v4107_v3  ;;  %v5549_v37 = vmax.f32 %v4107_v3, 0.0  ;;  %v2714_v63 = vmax.f32 %v2682_v23, 0.0 }
 0x16e   : > { %v4119_v5 = vld [vmem:[#allocation2 + $0x57] sm:$0xff] }
 0x16f   : > { %v4124_v20 = vld [vmem:[#allocation2 + $0x51] sm:$0xff]  ;;  %1153 = vst.msk [vmem:[#allocation2 + $0x60] sm:$0xff] %vm1141_vm4, %v5549_v37  ;;  %2782 = vrot.lane.b32.xlu2 %v2714_v63, %s3488_s30  ;;  %v2418_v40 = vsel %vm4031_vm11, %v4119_v5, 0.0  ;;  %v2120_v63 = vadd.f32 %v2088_v18, %v2055_v21  ;;  %v2155_v53 = vsel %vm4113_vm13, %v4119_v5, 0.0  ;;  %v2089_v21 = vmul.f32 %v3816_v48, %v1830_v6 }
 0x170   : > { %v2453_v35 = vsel %vm4009_vm10, %v4124_v20, 0.0  ;;  %v4145_v23 = vld [vmem:[#allocation2 + $0x58] sm:$0xff]  ;;  %v2487_v27 = vmul.f32 %v3855_v22, %v2418_v40  ;;  %v2190_v54 = vsel %vm4094_vm12, %v4124_v20, 0.0 }
 0x171   : > { %v2616_v9 = vmul.f32 %v3893_v61, %v2453_v35  ;;  %v2255_v18 = vadd.f32 %v2223_v31, %v2120_v63  ;;  %v2552_v33 = vmul.f32 %v3881_v51, %v4145_v23  ;;  %v2288_v35 = vmul.f32 %v3842_v12, %v1799_v4 }
 0x172   : > { %v1054_v44 = vpop.f32.mrf.mxu1  ;;  %v2519_v62 = vadd.f32 %v2487_v27, %v2384_v11  ;;  %v2353_v40 = vmul.f32 %v3845_v13, %v2190_v54  ;;  %v1089_v11 = vpop.f32.mrf.mxu3  ;;  %v1288_v27 = vand.u32 15, %v1192_v30 }
 0x173   : > { %v2648_v55 = vadd.f32 %v2616_v9, %v2583_v32  ;;  %v4152_v52 = vadd.f32 %v3772_v25, %v1054_v44  ;;  %v2056_v44 = vadd.f32 %v2024_v41, %v1959_v10  ;;  %v2320_v63 = vadd.f32 %v2288_v35, %v2255_v18 }
 0x174   : > { %v2584_v6 = vadd.f32 %v2552_v33, %v2519_v62  ;;  %v2025_v62 = vmul.f32 %v3802_v43, %v1799_v4  ;;  %vm4199_vm15 = vcmp.gt.s32.totalorder %v1288_v27, 0 }
 0x175   : > { %5640 = vst [vmem:[#allocation5_spill] sm:$0xff] %v4152_v52  ;;  %v2683_v17 = vadd.f32 %v3920_v16, %v2648_v55  ;;  %v5546_v8 = vmax.f32 %v4152_v52, 0.0  ;;  %v2224_v55 = vmul.f32 %v3826_v60, %v2155_v53  ;;  %v2121_v41 = vadd.f32 %v2089_v21, %v2056_v44 }
 0x176   : > { %v4166_v9 = vld [vmem:[#allocation2 + $0x59] sm:$0xff]  ;;  %v1960_v53 = vmul.f32 %v3799_v42, %v4087_v15  ;;  %v1927_v21 = vsel %vm4180_vm14, %v4124_v20, 0.0 }
 0x177   : > { %v2715_v32 = vmax.f32 %v2683_v17, 0.0  ;;  %v4168_v38 = vld [vmem:[#allocation2 + $0x5f] sm:$0xff]  ;;  %1154 = vst.msk [vmem:[#allocation2 + $0x68] sm:$0xff] %vm1141_vm4, %v5546_v8  ;;  %v2617_v31 = vmul.f32 %v3893_v61, %v4166_v9  ;;  %v2385_v8 = vadd.f32 %v2353_v40, %v2320_v63  ;;  %v2256_v30 = vadd.f32 %v2224_v55, %v2121_v41 }
 0x178   : > { %v2488_v17 = vmul.f32 %v3855_v22, %v4168_v38  ;;  %v4194_v35 = vld [vmem:[#allocation2 + $0x60] sm:$0xff]  ;;  %v2289_v55 = vmul.f32 %v3842_v12, %v4145_v23  ;;  %v1193_v63 = vadd.s32 88, %v3775_v28  ;;  %v1768_v41 = vsel %vm4199_vm15, %v4119_v5, 0.0 }
 0x179   : > { %2784 = vrot.lane.b32.xlu2 %v2715_v32, %s3488_s30  ;;  %v2649_v54 = vadd.f32 %v2617_v31, %v2584_v6  ;;  %v4188_v32 = vadd.f32 %v3772_v25, %v1089_v11  ;;  %v2354_v6 = vmul.f32 %v3845_v13, %v4166_v9  ;;  %v2553_v20 = vmul.f32 %v3881_v51, %v4194_v35 }
 0x17a   : > { %v1056_v33 = vpop.f32.mrf.mxu1  ;;  %v2520_v4 = vadd.f32 %v2488_v17, %v2385_v8  ;;  %v2090_v8 = vmul.f32 %v3816_v48, %v1927_v21  ;;  %v2057_v17 = vadd.f32 %v2025_v62, %v1960_v53  ;;  %v2225_v21 = vmul.f32 %v3826_v60, %v4168_v38 }
 0x17b   : > { %5643 = vst [vmem:[#allocation6_spill] sm:$0xff] %v4188_v32  ;;  %v4191_v18 = vadd.f32 %v3772_v25, %v1056_v33  ;;  %v2684_v1 = vadd.f32 %v3920_v16, %v2649_v54  ;;  %v5547_v40 = vmax.f32 %v4188_v32, 0.0  ;;  %v2321_v33 = vadd.f32 %v2289_v55, %v2256_v30 }
 0x17c   : > { %v2585_v53 = vadd.f32 %v2553_v20, %v2520_v4  ;;  %v1194_v5 = vadd.s32 96, %v3775_v28  ;;  %v1961_v30 = vmul.f32 %v3799_v42, %v1768_v41  ;;  %v2026_v55 = vmul.f32 %v3802_v43, %v4145_v23 }
 0x17d   : > { %5644 = vst [vmem:[#allocation7_spill] sm:$0xff] %v4191_v18  ;;  %v5548_v44 = vmax.f32 %v4191_v18, 0.0  ;;  %v2716_v31 = vmax.f32 %v2684_v1, 0.0  ;;  %v1091_v1 = vpop.f32.mrf.mxu3  ;;  %v2122_v37 = vadd.f32 %v2090_v8, %v2057_v17  ;;  %v2091_v8 = vmul.f32 %v3816_v48, %v4166_v9 }
 0x17e   : > { %v4209_v11 = vld [vmem:[#allocation2 + $0x61] sm:$0xff]  ;;  %1168 = vst.msk [vmem:[#allocation2 + $0xd8] sm:$0xff] %vm1141_vm4, %v5547_v40  ;;  %v4239_v26 = vadd.f32 %v3772_v25, %v1091_v1  ;;  %v1295_v1 = vand.u32 15, %v1193_v63 }
 0x17f   : > { %v4213_v27 = vld [vmem:[#allocation2 + $0x67] sm:$0xff]  ;;  %1155 = vst.msk [vmem:[#allocation2 + $0x70] sm:$0xff] %vm1141_vm4, %v5548_v44  ;;  %2786 = vrot.lane.b32.xlu0 %v2716_v31, %s3488_s30  ;;  %v2455_v54 = vsel %vm4094_vm12, %v4209_v11, 0.0  ;;  %v2386_v44 = vadd.f32 %v2354_v6, %v2321_v33  ;;  %v2257_v33 = vadd.f32 %v2225_v21, %v2122_v37  ;;  %v2058_v21 = vadd.f32 %v2026_v55, %v1961_v30 }
 0x180   : > { %v2618_v62 = vmul.f32 %v3893_v61, %v2455_v54  ;;  %v2420_v40 = vsel %vm4113_vm13, %v4213_v27, 0.0  ;;  %5647 = vst [vmem:[#allocation8_spill] sm:$0xff] %v4239_v26  ;;  %v4244_v54 = vld [vmem:[#allocation2 + $0x68] sm:$0xff]  ;;  %v5551_v6 = vmax.f32 %v4239_v26, 0.0  ;;  %v2157_v23 = vsel %vm4199_vm15, %v4213_v27, 0.0 }
 0x181   : > { %v2489_v31 = vmul.f32 %v3855_v22, %v2420_v40  ;;  %v2192_v40 = vsel %vm4180_vm14, %v4209_v11, 0.0  ;;  %vm4282_vm0 = vcmp.lt.s32.totalorder %v1295_v1, 15  ;;  %v2123_v55 = vadd.f32 %v2091_v8, %v2058_v21 }
 0x182   : > { %v1059_v4 = vpop.f32.mrf.mxu1  ;;  %v2650_v20 = vadd.f32 %v2618_v62, %v2585_v53  ;;  %1169 = vst.msk [vmem:[#allocation2 + $0xe0] sm:$0xff] %vm1141_vm4, %v5551_v6  ;;  %v1196_v53 = vadd.s32 112, %v3775_v28  ;;  %v2290_v62 = vmul.f32 %v3842_v12, %v4194_v35  ;;  %v2355_v9 = vmul.f32 %v3845_v13, %v2192_v40 }
 0x183   : > { %v4247_v39 = vadd.f32 %v3772_v25, %v1059_v4  ;;  %v2521_v14 = vadd.f32 %v2489_v31, %v2386_v44  ;;  %v2554_v44 = vmul.f32 %v3881_v51, %v4244_v54  ;;  %v2226_v6 = vmul.f32 %v3826_v60, %v2157_v23 }
 0x184   : > { %v2685_v41 = vadd.f32 %v3920_v16, %v2650_v20  ;;  %v2322_v56 = vadd.f32 %v2290_v62, %v2257_v33  ;;  %v1962_v23 = vmul.f32 %v3799_v42, %v4168_v38  ;;  %v1929_v38 = vsel %vm4282_vm0, %v4209_v11, 0.0 }
 0x185   : > { %5648 = vst [vmem:[#allocation9_spill] sm:$0xff] %v4247_v39  ;;  %v5557_v17 = vmax.f32 %v4247_v39, 0.0  ;;  %v2586_v4 = vadd.f32 %v2554_v44, %v2521_v14  ;;  %v1094_v59 = vpop.f32.mrf.mxu3  ;;  %v1316_v14 = vand.u32 15, %v1196_v53  ;;  %v1195_v44 = vadd.s32 104, %v3775_v28 }
 0x186   : > { %v2717_v31 = vmax.f32 %v2685_v41, 0.0  ;;  %v4268_v37 = vld [vmem:[#allocation2 + $0x69] sm:$0xff]  ;;  %v1302_v41 = vand.u32 15, %v1194_v5  ;;  %v2387_v33 = vadd.f32 %v2355_v9, %v2322_v56  ;;  %v4292_v62 = vadd.f32 %v3772_v25, %v1094_v59 }
 0x187   : > { %v4270_v63 = vld [vmem:[#allocation2 + $0x6f] sm:$0xff]  ;;  %1156 = vst.msk [vmem:[#allocation2 + $0x78] sm:$0xff] %vm1141_vm4, %v5557_v17  ;;  %v2619_v20 = vmul.f32 %v3893_v61, %v4268_v37  ;;  %v2258_v53 = vadd.f32 %v2226_v6, %v2123_v55  ;;  %v2291_v9 = vmul.f32 %v3842_v12, %v4244_v54  ;;  %vm4333_vm6 = vcmp.gt.s32.totalorder %v1316_v14, 0 }
 0x188   : > { %2788 = vrot.lane.b32.xlu1 %v2717_v31, %s3488_s30  ;;  %v2490_v24 = vmul.f32 %v3855_v22, %v4270_v63  ;;  %v2027_v31 = vmul.f32 %v3802_v43, %v4194_v35  ;;  %5651 = vst [vmem:[#allocation10_spill] sm:$0xff] %v4292_v62  ;;  %v4298_v21 = vld [vmem:[#allocation2 + $0x70] sm:$0xff]  ;;  %vm4303_vm5 = vcmp.gt.s32.totalorder %v1302_v41, 0  ;;  %v5555_v59 = vmax.f32 %v4292_v62, 0.0 }
 0x189   : > { %v2651_v40 = vadd.f32 %v2619_v20, %v2586_v4  ;;  %v2356_v20 = vmul.f32 %v3845_v13, %v4268_v37  ;;  %v2555_v11 = vmul.f32 %v3881_v51, %v4298_v21  ;;  %v1198_v17 = vadd.s32 128, %v3775_v28 }
 0x18a   : > { %v1061_v5 = vpop.f32.mrf.mxu1  ;;  %v2522_v56 = vadd.f32 %v2490_v24, %v2387_v33  ;;  %1170 = vst.msk [vmem:[#allocation2 + $0xe8] sm:$0xff] %vm1141_vm4, %v5555_v59  ;;  %v2092_v24 = vmul.f32 %v3816_v48, %v1929_v38  ;;  %v1770_v33 = vsel %vm4303_vm5, %v4213_v27, 0.0  ;;  %v2029_v7 = vmul.f32 %v3802_v43, %v4298_v21 }
 0x18b   : > { %v4295_v1 = vadd.f32 %v3772_v25, %v1061_v5  ;;  %v2686_v8 = vadd.f32 %v3920_v16, %v2651_v40  ;;  %v1309_v40 = vand.u32 15, %v1195_v44  ;;  %v2059_v5 = vadd.f32 %v2027_v31, %v1962_v23 }
 0x18c   : > { %v2323_v44 = vadd.f32 %v2291_v9, %v2258_v53  ;;  %v2227_v31 = vmul.f32 %v3826_v60, %v4270_v63  ;;  %v2587_v38 = vadd.f32 %v2555_v11, %v2522_v56  ;;  %v1963_v53 = vmul.f32 %v3799_v42, %v1770_v33 }
 0x18d   : > { %5652 = vst [vmem:[#allocation11_spill] sm:$0xff] %v4295_v1  ;;  %v5556_v35 = vmax.f32 %v4295_v1, 0.0  ;;  %v2718_v6 = vmax.f32 %v2686_v8, 0.0  ;;  %v1096_v23 = vpop.f32.mrf.mxu3  ;;  %v2028_v9 = vmul.f32 %v3802_v43, %v4244_v54  ;;  %v2124_v29 = vadd.f32 %v2092_v24, %v2059_v5 }
 0x18e   : > { %v4313_v55 = vld [vmem:[#allocation2 + $0x71] sm:$0xff]  ;;  %v4345_v14 = vadd.f32 %v3772_v25, %v1096_v23  ;;  %vm4362_vm7 = vcmp.lt.s32.totalorder %v1309_v40, 15  ;;  %v2093_v24 = vmul.f32 %v3816_v48, %v4268_v37  ;;  %v1330_v0 = vand.u32 15, %v1198_v17 }
 0x18f   : > { %v4317_v41 = vld [vmem:[#allocation2 + $0x77] sm:$0xff]  ;;  %1157 = vst.msk [vmem:[#allocation2 + $0x80] sm:$0xff] %vm1141_vm4, %v5556_v35  ;;  %2790 = vrot.lane.b32.xlu2 %v2718_v6, %s3488_s30  ;;  %v2457_v8 = vsel %vm4180_vm14, %v4313_v55, 0.0  ;;  %v2388_v6 = vadd.f32 %v2356_v20, %v2323_v44  ;;  %v2194_v44 = vsel %vm4282_vm0, %v4313_v55, 0.0  ;;  %v2259_v33 = vadd.f32 %v2227_v31, %v2124_v29 }
 0x190   : > { %v2620_v35 = vmul.f32 %v3893_v61, %v2457_v8  ;;  %v2422_v27 = vsel %vm4199_vm15, %v4317_v41, 0.0  ;;  %5657 = vst [vmem:[#allocation12_spill] sm:$0xff] %v4345_v14  ;;  %v1804_v8 = vld [vmem:[#allocation2 + $0x78] sm:$0xff]  ;;  %v5559_v23 = vmax.f32 %v4345_v14, 0.0  ;;  %v2159_v54 = vsel %vm4303_vm5, %v4317_v41, 0.0 }
 0x191   : > { %v2491_v10 = vmul.f32 %v3855_v22, %v2422_v27  ;;  %v2292_v29 = vmul.f32 %v3842_v12, %v4298_v21  ;;  %v2357_v37 = vmul.f32 %v3845_v13, %v2194_v44  ;;  %v1772_v17 = vsel %vm4333_vm6, %v4317_v41, 0.0 }
 0x192   : > { %v1064_v56 = vpop.f32.mrf.mxu1  ;;  %v2652_v11 = vadd.f32 %v2620_v35, %v2587_v38  ;;  %v2556_v38 = vmul.f32 %v3881_v51, %v1804_v8  ;;  %1171 = vst.msk [vmem:[#allocation2 + $0xf0] sm:$0xff] %vm1141_vm4, %v5559_v23  ;;  %vm4407_vm8 = vcmp.gt.s32.totalorder %v1330_v0, 0 }
 0x193   : > { %v4352_v15 = vadd.f32 %v3772_v25, %v1064_v56  ;;  %v2523_v20 = vadd.f32 %v2491_v10, %v2388_v6  ;;  %v1197_v6 = vadd.s32 120, %v3775_v28  ;;  %v2060_v10 = vadd.f32 %v2028_v9, %v1963_v53 }
 0x194   : > { %v2687_v27 = vadd.f32 %v3920_v16, %v2652_v11  ;;  %v2228_v53 = vmul.f32 %v3826_v60, %v2159_v54  ;;  %v2324_v44 = vadd.f32 %v2292_v29, %v2259_v33 }
 0x195   : > { %5658 = vst [vmem:[#allocation13_spill] sm:$0xff] %v4352_v15  ;;  %v5562_v5 = vmax.f32 %v4352_v15, 0.0  ;;  %v2588_v11 = vadd.f32 %v2556_v38, %v2523_v20  ;;  %v1099_v9 = vpop.f32.mrf.mxu3  ;;  %v2125_v20 = vadd.f32 %v2093_v24, %v2060_v10 }
 0x196   : > { %v2719_v40 = vmax.f32 %v2687_v27, 0.0  ;;  %v4376_v31 = vld [vmem:[#allocation2 + $0x79] sm:$0xff]  ;;  %v1964_v27 = vmul.f32 %v3799_v42, %v4270_v63  ;;  %v2389_v54 = vadd.f32 %v2357_v37, %v2324_v44  ;;  %v4398_v36 = vadd.f32 %v3772_v25, %v1099_v9 }
 0x197   : > { %v4378_v56 = vld [vmem:[#allocation2 + $0x7f] sm:$0xff]  ;;  %1158 = vst.msk [vmem:[#allocation2 + $0x88] sm:$0xff] %vm1141_vm4, %v5562_v5  ;;  %v2621_v23 = vmul.f32 %v3893_v61, %v4376_v31  ;;  %v1323_v63 = vand.u32 15, %v1197_v6 }
 0x198   : > { %2792 = vrot.lane.b32.xlu0 %v2719_v40, %s3488_s30  ;;  %v2492_v5 = vmul.f32 %v3855_v22, %v4378_v56  ;;  %5661 = vst [vmem:[#allocation14_spill] sm:$0xff] %v4398_v36  ;;  %v1805_v29 = vld [vmem:[#allocation2 + $0x80] sm:$0xff]  ;;  %v2260_v40 = vadd.f32 %v2228_v53, %v2125_v20  ;;  %v2061_v24 = vadd.f32 %v2029_v7, %v1964_v27  ;;  %v5565_v37 = vmax.f32 %v4398_v36, 0.0 }
 0x199   : > { %v2653_v38 = vadd.f32 %v2621_v23, %v2588_v11  ;;  %v1931_v23 = vsel %vm4362_vm7, %v4313_v55, 0.0  ;;  %v1965_v53 = vmul.f32 %v3799_v42, %v1772_v17  ;;  %v2030_v55 = vmul.f32 %v3802_v43, %v1804_v8 }
 0x19a   : > { %v1066_v45 = vpop.f32.mrf.mxu1  ;;  %v2524_v10 = vadd.f32 %v2492_v5, %v2389_v54  ;;  %v2557_v0 = vmul.f32 %v3881_v51, %v1805_v29  ;;  %1172 = vst.msk [vmem:[#allocation2 + $0xf8] sm:$0xff] %vm1141_vm4, %v5565_v37  ;;  %v2094_v9 = vmul.f32 %v3816_v48, %v1931_v23  ;;  %v1200_v20 = vadd.s32 144, %v3775_v28 }
 0x19b   : > { %v4401_v21 = vadd.f32 %v3772_v25, %v1066_v45  ;;  %v2688_v33 = vadd.f32 %v3920_v16, %v2653_v38  ;;  %v2293_v25 = vmul.f32 %v3842_v12, %v1804_v8  ;;  %v2358_v45 = vmul.f32 %v3845_v13, %v4376_v31  ;;  %v4634_v38 = vld [vmem:[%s5541_s11] ss:$0 sm:$0xff] }
 0x19c   : > { %vm4433_vm9 = vcmp.lt.s32.totalorder %v1323_v63, 15  ;;  %v2229_v17 = vmul.f32 %v3826_v60, %v4378_v56  ;;  %v2589_v54 = vadd.f32 %v2557_v0, %v2524_v10  ;;  %v2062_v37 = vadd.f32 %v2030_v55, %v1965_v53 }
 0x19d   : > { %5662 = vst [vmem:[#allocation15_spill] sm:$0xff] %v4401_v21  ;;  %v5566_v6 = vmax.f32 %v4401_v21, 0.0  ;;  %v2720_v11 = vmax.f32 %v2688_v33, 0.0  ;;  %v2325_v27 = vadd.f32 %v2293_v25, %v2260_v40  ;;  %v1101_v44 = vpop.f32.mrf.mxu3  ;;  %v4446_v40 = vld [vmem:[%s5538_s8] ss:$0 sm:$0xff]  ;;  %v1199_v25 = vadd.s32 136, %v3775_v28 }
 0x19e   : > { %v4418_v7 = vld [vmem:[#allocation2 + $0x81] sm:$0xff]  ;;  %v4449_v63 = vadd.f32 %v4446_v40, %v1101_v44  ;;  %v2095_v53 = vmul.f32 %v3816_v48, %v4376_v31 }
 0x19f   : > { %v1678_v5 = vld [vmem:[#allocation2 + $0x87] sm:$0xff]  ;;  %1159 = vst.msk [vmem:[#allocation2 + $0x90] sm:$0xff] %vm1141_vm4, %v5566_v6  ;;  %2794 = vrot.lane.b32.xlu1 %v2720_v11, %s3488_s30  ;;  %v2459_v8 = vsel %vm4282_vm0, %v4418_v7, 0.0  ;;  %v2390_v11 = vadd.f32 %v2358_v45, %v2325_v27  ;;  %v2126_v45 = vadd.f32 %v2094_v9, %v2061_v24  ;;  %v2196_v6 = vsel %vm4362_vm7, %v4418_v7, 0.0 }
 0x1a0   : > { %v2622_v33 = vmul.f32 %v3893_v61, %v2459_v8  ;;  %v2424_v23 = vsel %vm4303_vm5, %v1678_v5, 0.0  ;;  %5667 = vst [vmem:[#allocation16_spill] sm:$0xff] %v4449_v63  ;;  %v1806_v8 = vld [vmem:[#allocation2 + $0x88] sm:$0xff]  ;;  %v2161_v4 = vsel %vm4333_vm6, %v1678_v5, 0.0  ;;  %v5569_v44 = vmax.f32 %v4449_v63, 0.0 }
 0x1a1   : > { %v2493_v30 = vmul.f32 %v3855_v22, %v2424_v23  ;;  %v1966_v24 = vmul.f32 %v3799_v42, %v4378_v56  ;;  %v2294_v9 = vmul.f32 %v3842_v12, %v1805_v29  ;;  %v1774_v31 = vsel %vm4407_vm8, %v1678_v5, 0.0 }
 0x1a2   : > { %v1069_v10 = vpop.f32.mrf.mxu1  ;;  %v2654_v0 = vadd.f32 %v2622_v33, %v2589_v54  ;;  %v2261_v54 = vadd.f32 %v2229_v17, %v2126_v45  ;;  %v1344_v33 = vand.u32 15, %v1200_v20  ;;  %1173 = vst.msk [vmem:[#allocation2 + $0x100] sm:$0xff] %vm1141_vm4, %v5569_v44  ;;  %v2359_v20 = vmul.f32 %v3845_v13, %v2196_v6 }
 0x1a3   : > { %v4455_v27 = vadd.f32 %v4446_v40, %v1069_v10  ;;  %v2525_v23 = vadd.f32 %v2493_v30, %v2390_v11  ;;  %v2558_v11 = vmul.f32 %v3881_v51, %v1806_v8  ;;  %v2031_v56 = vmul.f32 %v3802_v43, %v1805_v29 }
 0x1a4   : > { %v2689_v55 = vadd.f32 %v3920_v16, %v2654_v0  ;;  %v2230_v0 = vmul.f32 %v3826_v60, %v2161_v4  ;;  %v1933_v5 = vsel %vm4433_vm9, %v4418_v7, 0.0  ;;  %v2326_v6 = vadd.f32 %v2294_v9, %v2261_v54 }
 0x1a5   : > { %5668 = vst [vmem:[#allocation17_spill] sm:$0xff] %v4455_v27  ;;  %v5572_v36 = vmax.f32 %v4455_v27, 0.0  ;;  %v2590_v45 = vadd.f32 %v2558_v11, %v2525_v23  ;;  %v1104_v44 = vpop.f32.mrf.mxu3  ;;  %v1337_v62 = vand.u32 15, %v1199_v25  ;;  %v1967_v14 = vmul.f32 %v3799_v42, %v1774_v31 }
 0x1a6   : > { %v2721_v30 = vmax.f32 %v2689_v55, 0.0  ;;  %v1838_v10 = vld [vmem:[#allocation2 + $0x89] sm:$0xff]  ;;  %v2127_v55 = vadd.f32 %v2095_v53, %v2062_v37  ;;  %v2391_v11 = vadd.f32 %v2359_v20, %v2326_v6  ;;  %v4489_v32 = vadd.f32 %v4446_v40, %v1104_v44 }
 0x1a7   : > { %v1679_v17 = vld [vmem:[#allocation2 + $0x8f] sm:$0xff]  ;;  %1160 = vst.msk [vmem:[#allocation2 + $0x98] sm:$0xff] %vm1141_vm4, %v5572_v36  ;;  %v2623_v63 = vmul.f32 %v3893_v61, %v1838_v10  ;;  %v2032_v36 = vmul.f32 %v3802_v43, %v1806_v8  ;;  %v2096_v7 = vmul.f32 %v3816_v48, %v1933_v5  ;;  %v2063_v37 = vadd.f32 %v2031_v56, %v1966_v24 }
 0x1a8   : > { %2796 = vrot.lane.b32.xlu2 %v2721_v30, %s3488_s30  ;;  %v2494_v4 = vmul.f32 %v3855_v22, %v1679_v17  ;;  %v2262_v26 = vadd.f32 %v2230_v0, %v2127_v55  ;;  %5669 = vst [vmem:[#allocation18_spill] sm:$0xff] %v4489_v32  ;;  %v1807_v25 = vld [vmem:[#allocation2 + $0x90] sm:$0xff]  ;;  %vm4496_vm10 = vcmp.gt.s32.totalorder %v1344_v33, 0  ;;  %v5575_v31 = vmax.f32 %v4489_v32, 0.0 }
 0x1a9   : > { %v2655_v29 = vadd.f32 %v2623_v63, %v2590_v45  ;;  %v2295_v63 = vmul.f32 %v3842_v12, %v1806_v8  ;;  %vm4502_vm11 = vcmp.lt.s32.totalorder %v1337_v62, 15  ;;  %v2360_v20 = vmul.f32 %v3845_v13, %v1838_v10 }
 0x1aa   : > { %v1071_v23 = vpop.f32.mrf.mxu1  ;;  %v2526_v30 = vadd.f32 %v2494_v4, %v2391_v11  ;;  %v4509_v56 = vadd.s32 160, %v3775_v28  ;;  %v2064_v33 = vadd.f32 %v2032_v36, %v1967_v14  ;;  %v2559_v8 = vmul.f32 %v3881_v51, %v1807_v25  ;;  %1174 = vst.msk [vmem:[#allocation2 + $0x108] sm:$0xff] %vm1141_vm4, %v5575_v31 }
 0x1ab   : > { %v4493_v53 = vadd.f32 %v4446_v40, %v1071_v23  ;;  %v2690_v54 = vadd.f32 %v3920_v16, %v2655_v29  ;;  %v2327_v55 = vadd.f32 %v2295_v63, %v2262_v26  ;;  %v2128_v62 = vadd.f32 %v2096_v7, %v2063_v37  ;;  %v3022_v7 = vld [vmem:[%s5543_s13] sm:$0x3] }
 0x1ac   : > { %v2097_v6 = vmul.f32 %v3816_v48, %v1838_v10  ;;  %v1968_v36 = vmul.f32 %v3799_v42, %v1679_v17  ;;  %v2231_v4 = vmul.f32 %v3826_v60, %v1679_v17  ;;  %v2591_v29 = vadd.f32 %v2559_v8, %v2526_v30 }
 0x1ad   : > { %5670 = vst [vmem:[#allocation19_spill] sm:$0xff] %v4493_v53  ;;  %v5578_v24 = vmax.f32 %v4493_v53, 0.0  ;;  %v2722_v0 = vmax.f32 %v2690_v54, 0.0  ;;  %v1106_v10 = vpop.f32.mrf.mxu3  ;;  %v2033_v37 = vmul.f32 %v3802_v43, %v1807_v25  ;;  %v2392_v35 = vadd.f32 %v2360_v20, %v2327_v55 }
 0x1ae   : > { %v4511_v45 = vld [vmem:[#allocation2 + $0x91] sm:$0xff]  ;;  %v4538_v63 = vadd.f32 %v4446_v40, %v1106_v10  ;;  %v2129_v10 = vadd.f32 %v2097_v6, %v2064_v33  ;;  %v2296_v33 = vmul.f32 %v3842_v12, %v1807_v25  ;;  %v5699_v9 = vmax.f32 %v3932_v49, 0.0 }
 0x1af   : > { %v1680_v5 = vld [vmem:[#allocation2 + $0x97] sm:$0xff]  ;;  %1161 = vst.msk [vmem:[#allocation2 + $0xa0] sm:$0xff] %vm1141_vm4, %v5578_v24  ;;  %2798 = vrot.lane.b32.xlu0 %v2722_v0, %s3488_s30  ;;  %v2461_v14 = vsel %vm4362_vm7, %v4511_v45, 0.0  ;;  %v2198_v0 = vsel %vm4433_vm9, %v4511_v45, 0.0  ;;  %v1935_v25 = vsel %vm4502_vm11, %v4511_v45, 0.0 }
 0x1b0   : > { %v2163_v26 = vsel %vm4407_vm8, %v1680_v5, 0.0  ;;  %v2624_v23 = vmul.f32 %v3893_v61, %v2461_v14  ;;  %v2426_v11 = vsel %vm4333_vm6, %v1680_v5, 0.0  ;;  %5675 = vst [vmem:[#allocation20_spill] sm:$0xff] %v4538_v63  ;;  %v1776_v61 = vsel %vm4496_vm10, %v1680_v5, 0.0  ;;  %v1808_v59 = vld [vmem:[#allocation2 + $0x98] sm:$0xff] }
 0x1b1   : > { %v2495_v54 = vmul.f32 %v3855_v22, %v2426_v11  ;;  %v2232_v8 = vmul.f32 %v3826_v60, %v2163_v26  ;;  %v5576_v55 = vmax.f32 %v4538_v63, 0.0  ;;  %v3076_v11 = vsel %vm1016_vm2, %v3022_v7, 0  ;;  %v4568_v7 = vld [vmem:[%s5539_s9 + $0x8] ss:$0 sm:$0xff] }
 0x1b2   : > { %v1074_v17 = vpop.f32.mrf.mxu1  ;;  %v2656_v30 = vadd.f32 %v2624_v23, %v2591_v29  ;;  %v2263_v23 = vadd.f32 %v2231_v4, %v2128_v62  ;;  %v1358_v5 = vand.u32 15, %v4509_v56  ;;  %3085 = vmatpush.bf16.msra.mxu2 %v3076_v11  ;;  %3388 = vmatpush.bf16.msra.mxu3 %v3076_v11  ;;  %v1969_v26 = vmul.f32 %v3799_v42, %v1776_v61 }
 0x1b3   : > { %v4547_v14 = vadd.f32 %v4446_v40, %v1074_v17  ;;  %v2527_v20 = vadd.f32 %v2495_v54, %v2392_v35  ;;  %v2034_v17 = vmul.f32 %v3802_v43, %v1808_v59  ;;  %v2560_v35 = vmul.f32 %v3881_v51, %v1808_v59  ;;  %1175 = vst.msk [vmem:[#allocation2 + $0x110] sm:$0xff] %vm1141_vm4, %v5576_v55 }
 0x1b4   : > { %v2691_v29 = vadd.f32 %v3920_v16, %v2656_v30  ;;  %v2361_v56 = vmul.f32 %v3845_v13, %v2198_v0  ;;  %v2264_v30 = vadd.f32 %v2232_v8, %v2129_v10  ;;  %v2065_v61 = vadd.f32 %v2033_v37, %v1968_v36  ;;  %v4582_v8 = vld [vmem:[#allocation2 + $0xdf] sm:$0xff] }
 0x1b5   : > { %5676 = vst [vmem:[#allocation21_spill] sm:$0xff] %v4547_v14  ;;  %v5577_v31 = vmax.f32 %v4547_v14, 0.0  ;;  %v2592_v4 = vadd.f32 %v2560_v35, %v2527_v20  ;;  %v2328_v0 = vadd.f32 %v2296_v33, %v2263_v23  ;;  %v1209_v20 = vadd.s32 216, %v3775_v28 }
 0x1b6   : > { %v2723_v16 = vmax.f32 %v2691_v29, 0.0  ;;  %v1840_v62 = vld [vmem:[#allocation2 + $0x99] sm:$0xff]  ;;  %v2066_v29 = vadd.f32 %v2034_v17, %v1969_v26  ;;  %v2297_v35 = vmul.f32 %v3842_v12, %v1808_v59  ;;  %vm4578_vm2 = vcmp.gt.s32.totalorder %v1358_v5, 0 }
 0x1b7   : > { %v1681_v6 = vld [vmem:[#allocation2 + $0x9f] sm:$0xff]  ;;  %1162 = vst.msk [vmem:[#allocation2 + $0xa8] sm:$0xff] %vm1141_vm4, %v5577_v31  ;;  %v2625_v54 = vmul.f32 %v4568_v7, %v1840_v62  ;;  %v2099_v45 = vmul.f32 %v3816_v48, %v1840_v62  ;;  %v2362_v36 = vmul.f32 %v3845_v13, %v1840_v62  ;;  %v2393_v23 = vadd.f32 %v2361_v56, %v2328_v0 }
 0x1b8   : > { %2800 = vrot.lane.b32.xlu1 %v2723_v16, %s3488_s30  ;;  %v2496_v11 = vmul.f32 %v3855_v22, %v1681_v6  ;;  %v1809_v37 = vld [vmem:[#allocation2 + $0xa0] sm:$0xff]  ;;  %v2098_v33 = vmul.f32 %v3816_v48, %v1935_v25  ;;  %v2329_v17 = vadd.f32 %v2297_v35, %v2264_v30  ;;  %v4597_v16 = vadd.s32 176, %v3775_v28 }
 0x1b9   : > { %v2657_v55 = vadd.f32 %v2625_v54, %v2592_v4  ;;  %v4593_v59 = vld [vmem:[%s5540_s10] ss:$0 sm:$0xff]  ;;  %v1970_v62 = vmul.f32 %v3799_v42, %v1681_v6  ;;  %v1407_v56 = vand.u32 15, %v1209_v20  ;;  %v1978_v25 = vmul.f32 %v3799_v42, %v4582_v8 }
 0x1ba   : > { %v1076_v10 = vpop.f32.mrf.mxu1  ;;  %v2528_v4 = vadd.f32 %v2496_v11, %v2393_v23  ;;  %v4600_v54 = vld [vmem:[#allocation2 + $0xe0] sm:$0xff]  ;;  %v2035_v24 = vmul.f32 %v3802_v43, %v1809_v37  ;;  %v2131_v30 = vadd.f32 %v2099_v45, %v2066_v29  ;;  %v2298_v63 = vmul.f32 %v3842_v12, %v1809_v37 }
 0x1bb   : > { %v4588_v26 = vadd.f32 %v4446_v40, %v1076_v10  ;;  %v2692_v5 = vadd.f32 %v4593_v59, %v2657_v55  ;;  %v2233_v55 = vmul.f32 %v3826_v60, %v1681_v6  ;;  %v2561_v11 = vmul.f32 %v3881_v51, %v1809_v37 }
 0x1bc   : > { %v2394_v23 = vadd.f32 %v2362_v36, %v2329_v17  ;;  %v2130_v29 = vadd.f32 %v2098_v33, %v2065_v61  ;;  %v2043_v45 = vmul.f32 %v3802_v43, %v4600_v54  ;;  %vm4625_vm12 = vcmp.lt.s32.totalorder %v1407_v56, 15 }
 0x1bd   : > { %5679 = vst [vmem:[#allocation22_spill] sm:$0xff] %v4588_v26  ;;  %v5580_v0 = vmax.f32 %v4588_v26, 0.0  ;;  %v2724_v10 = vmax.f32 %v2692_v5, 0.0  ;;  %v2593_v37 = vadd.f32 %v2561_v11, %v2528_v4  ;;  %v4636_v33 = vadd.f32 %v2035_v24, %v1970_v62 }
 0x1be   : > { %v4607_v35 = vld [vmem:[#allocation2 + $0xa1] sm:$0xff]  ;;  %v2265_v24 = vadd.f32 %v2233_v55, %v2130_v29  ;;  %v4663_v29 = vld [vmem:[#allocation2 + $0xef] sm:$0xff]  ;;  %v1372_v39 = vand.u32 15, %v4597_v16 }
 0x1bf   : > { %5680 = vst [vmem:[#allocation23_spill] sm:$0xff] %v4607_v35  ;;  %v1682_v20 = vld [vmem:[#allocation2 + $0xa7] sm:$0xff]  ;;  %2802 = vrot.lane.b32.xlu2 %v2724_v10, %s3488_s30  ;;  %v2463_v5 = vsel %vm4433_vm9, %v4607_v35, 0.0  ;;  %v2200_v53 = vsel %vm4502_vm11, %v4607_v35, 0.0 }
 0x1c0   : > { %1163 = vst.msk [vmem:[#allocation2 + $0xb0] sm:$0xff] %vm1141_vm4, %v5580_v0  ;;  %v2165_v6 = vsel %vm4496_vm10, %v1682_v20, 0.0  ;;  %v2626_v36 = vmul.f32 %v4568_v7, %v2463_v5  ;;  %v2428_v17 = vsel %vm4407_vm8, %v1682_v20, 0.0  ;;  %v4629_v10 = vld [vmem:[#allocation2 + $0xe1] sm:$0xff]  ;;  %v1778_v4 = vsel %vm4578_vm2, %v1682_v20, 0.0 }
 0x1c1   : > { %v2775_v61 = vpop.permute.xlu0 %2774  ;;  %5683 = vst [vmem:[#allocation24_spill] sm:$0xff] %v4636_v33  ;;  %v1810_v11 = vld [vmem:[#allocation2 + $0xa8] sm:$0xff]  ;;  %v2497_v41 = vmul.f32 %v3855_v22, %v2428_v17  ;;  %v2234_v56 = vmul.f32 %v3826_v60, %v2165_v6  ;;  %v5684_v5 = vmax.f32 %v3780_v34, 0.0  ;;  %v1945_v17 = vsel %vm4625_vm12, %v4629_v10, 0.0  ;;  %v4657_v34 = vld [vmem:[%s5542_s12] ss:$0 sm:$0xff] }
 0x1c2   : > { %v1079_v26 = vpop.f32.mrf.mxu1  ;;  %v2658_v14 = vadd.f32 %v2626_v36, %v2593_v37  ;;  %v2075_v6 = vadd.f32 %v2043_v45, %v1978_v25  ;;  %v1971_v36 = vmul.f32 %v3799_v42, %v1778_v4  ;;  %v2036_v55 = vmul.f32 %v3802_v43, %v1810_v11  ;;  %v4674_v4 = vld [vmem:[#allocation2 + $0xf1] sm:$0xff] }
 0x1c3   : > { %v2870_v32 = vsel %vm1141_vm4, %v5684_v5, %v2775_v61  ;;  %v4649_v62 = vadd.f32 %v4446_v40, %v1079_v26  ;;  %v2529_v20 = vadd.f32 %v2497_v41, %v2394_v23  ;;  %v2562_v26 = vmul.f32 %v3881_v51, %v1810_v11  ;;  %v4665_v23 = vld [vmem:[#allocation2 + $0xf0] sm:$0xff]  ;;  %v4670_v5 = vld [vmem:[#allocation2 + $0xff] sm:$0xff]  ;;  %5686 = vst [vmem:[#allocation26_spill] sm:$0xff] %v4674_v4 }
 0x1c4   : > { %v2693_v37 = vadd.f32 %v4593_v59, %v2658_v14  ;;  %v2906_v61 = vmul.f32 %v4634_v38, %v2870_v32  ;;  %v2363_v45 = vmul.f32 %v3845_v13, %v2200_v53  ;;  %v2266_v41 = vadd.f32 %v2234_v56, %v2131_v30  ;;  %v4672_v14 = vld [vmem:[#allocation2 + $0x100] sm:$0xff] }
 0x1c5   : > { %5685 = vst [vmem:[#allocation25_spill] sm:$0xff] %v4649_v62  ;;  %v1982_v1 = vmul.f32 %v3799_v42, %v4670_v5  ;;  %v2047_v32 = vmul.f32 %v3802_v43, %v4672_v14  ;;  %v2108_v25 = vmul.f32 %v3816_v48, %v1945_v17  ;;  %v5687_v53 = vmax.f32 %v4649_v62, 0.0 }
 0x1c6   : > { %v2725_v27 = vmax.f32 %v2693_v37, 0.0  ;;  %v2594_v30 = vadd.f32 %v2562_v26, %v2529_v20  ;;  %v2243_v37 = vmul.f32 %v3826_v60, %v4663_v29  ;;  %v2299_v52 = vmul.f32 %v3842_v12, %v1810_v11 }
 0x1c7   : > { %v1842_v21 = vld [vmem:[#allocation2 + $0xa9] sm:$0xff]  ;;  %1164 = vst.msk [vmem:[#allocation2 + $0xb8] sm:$0xff] %vm1141_vm4, %v5687_v53  ;;  %v2330_v18 = vadd.f32 %v2298_v63, %v2265_v24  ;;  %v2210_v17 = vsel %vm4625_vm12, %v4674_v4, 0.0  ;;  %v2308_v53 = vmul.f32 %v3842_v12, %v4665_v23  ;;  %v2942_v20 = vadd.f32 %v4657_v34, %v2906_v61 }
 0x1c8   : > { %v1683_v15 = vld [vmem:[#allocation2 + $0xaf] sm:$0xff]  ;;  %v2627_v56 = vmul.f32 %v4568_v7, %v1842_v21  ;;  %2804 = vrot.lane.b32.xlu0 %v2725_v27, %s3488_s30  ;;  %v4696_v62 = vadd.f32 %v2036_v55, %v1971_v36  ;;  %v2331_v11 = vadd.f32 %v2299_v52, %v2266_v41  ;;  %v4699_v63 = vadd.f32 %v2047_v32, %v1982_v1 }
 0x1c9   : > { %v2783_v26 = vpop.permute.xlu2 %2782  ;;  %v2498_v3 = vmul.f32 %v3855_v22, %v1683_v15  ;;  %v2395_v46 = vadd.f32 %v2363_v45, %v2330_v18  ;;  %v2140_v24 = vadd.f32 %v2108_v25, %v2075_v6  ;;  %v5690_v4 = vmax.f32 %v3805_v2, 0.0  ;;  %v1811_v55 = vld [vmem:[#allocation2 + $0xb0] sm:$0xff] }
 0x1ca   : > { %v2659_v16 = vadd.f32 %v2627_v56, %v2594_v30  ;;  %v1081_v33 = vpop.f32.mrf.mxu1  ;;  %v2777_v27 = vpop.permute.xlu0 %2776  ;;  %5688 = vst [vmem:[#allocation27_spill] sm:$0xff] %v4699_v63  ;;  %v4710_v30 = vmul.f32 %v3826_v60, %v4670_v5  ;;  %v5692_v18 = vmax.f32 %v3888_v57, 0.0  ;;  %vm4716_vm13 = vcmp.gt.s32.totalorder %v1372_v39, 0 }
 0x1cb   : > { %v4702_v35 = vadd.f32 %v4446_v40, %v1081_v33  ;;  %v2871_v61 = vsel %vm1141_vm4, %v5690_v4, %v2777_v27  ;;  %v2530_v6 = vadd.f32 %v2498_v3, %v2395_v46  ;;  %v5693_v33 = vmov 0 }
 0x1cc   : > { %v2694_v36 = vadd.f32 %v4593_v59, %v2659_v16  ;;  %5691 = vst [vmem:[#allocation29_spill] sm:$0xff] %v4710_v30  ;;  %v2874_v52 = vsel %vm1141_vm4, %v5692_v18, %v2783_v26  ;;  %v2907_v1 = vmul.f32 %v4634_v38, %v2871_v61  ;;  %v5694_v33 = vsel %vm4716_vm13, 4294967295, %v5693_v33 }
 0x1cd   : > { %5689 = vst [vmem:[#allocation28_spill] sm:$0xff] %v4702_v35  ;;  %v2275_v2 = vadd.f32 %v2243_v37, %v2140_v24  ;;  %v2974_v25 = vmax.f32 %v2942_v20, 0.0  ;;  %v5598_v45 = vmax.f32 %v4702_v35, 0.0  ;;  %v2364_v41 = vmul.f32 %v3845_v13, %v1842_v21 }
 0x1ce   : > { %5695 = vst [vmem:[#allocation30_spill] sm:$0xff] %v5694_v33  ;;  %v2726_v4 = vmax.f32 %v2694_v36, 0.0  ;;  %v2943_v32 = vadd.f32 %v4657_v34, %v2907_v1  ;;  %v4723_v56 = vld [vmem:[#allocation2 + $0xb1] sm:$0xff]  ;;  %v2563_v57 = vmul.f32 %v3881_v51, %v1811_v55  ;;  %v2373_v3 = vmul.f32 %v3845_v13, %v2210_v17  ;;  %v4752_v1 = vld [vmem:[#allocation2 + $0x101] sm:$0xff] }
 0x1cf   : > { %v4726_v26 = vld [vmem:[#allocation2 + $0xb7] sm:$0xff]  ;;  %v2340_v46 = vadd.f32 %v2308_v53, %v2275_v2  ;;  %v2910_v39 = vmul.f32 %v4634_v38, %v2874_v52  ;;  %1165 = vst.msk [vmem:[#allocation2 + $0xc0] sm:$0xff] %vm1141_vm4, %v5598_v45  ;;  %v2101_v37 = vmul.f32 %v3816_v48, %v1842_v21  ;;  %v1972_v20 = vmul.f32 %v3799_v42, %v1683_v15 }
 0x1d0   : > { %2806 = vrot.lane.b32.xlu1 %v2726_v4, %s3488_s30  ;;  %v2465_v16 = vsel %vm4502_vm11, %v4723_v56, 0.0  ;;  %v2975_v27 = vmax.f32 %v2943_v32, 0.0  ;;  %v2037_v53 = vmul.f32 %v3802_v43, %v1811_v55  ;;  %v2595_v17 = vadd.f32 %v2563_v57, %v2530_v6  ;;  %v4747_v18 = vld [vmem:[#allocation2 + $0xb8] sm:$0xff]  ;;  %5696 = vst [vmem:[#allocation31_spill] sm:$0xff] %v4752_v1 }
 0x1d1   : > { %v2628_v24 = vmul.f32 %v4568_v7, %v2465_v16  ;;  %v2779_v61 = vpop.permute.xlu1 %2778  ;;  %v4742_v36 = vmul.f32 %v3826_v60, %v1683_v15  ;;  %v4745_v21 = vmul.f32 %v3842_v12, %v1811_v55  ;;  %v2396_v52 = vadd.f32 %v2364_v41, %v2331_v11 }
 0x1d2   : > { %v2430_v44 = vsel %vm4496_vm10, %v4726_v26, 0.0  ;;  %v5697_v6 = vmax.f32 %v3822_v58, 0.0  ;;  %v1084_v4 = vpop.f32.mrf.mxu1  ;;  %v3006_v15 = vpack.c.bf16 %v2975_v27, %v2974_v25  ;;  %v2405_v16 = vadd.f32 %v2373_v3, %v2340_v46 }
 0x1d3   : > { %v2785_v32 = vpop.permute.xlu2 %2784  ;;  %v2660_v57 = vadd.f32 %v2628_v24, %v2595_v17  ;;  %v4758_v55 = vadd.f32 %v4657_v34, %v2910_v39  ;;  %v4761_v11 = vadd.f32 %v4446_v40, %v1084_v4  ;;  %v2499_v45 = vmul.f32 %v3855_v22, %v2430_v44 }
 0x1d4   : > { %v2872_v2 = vsel %vm1141_vm4, %v5697_v6, %v2779_v61  ;;  %v2875_v41 = vsel %vm1141_vm4, %v5699_v9, %v2785_v32  ;;  %3368 = vmatmul.msk.bf16.vlgmr.msra.gmra.mxu2 %vm967_vm3, %v3006_v15  ;;  %v2564_v25 = vmul.f32 %v3881_v51, %v4747_v18  ;;  %v2475_v46 = vsel %vm4625_vm12, %v4752_v1, 0.0 }
 0x1d5   : > { %5698 = vst [vmem:[#allocation32_spill] sm:$0xff] %v4761_v11  ;;  %v2695_v58 = vadd.f32 %v4593_v59, %v2660_v57  ;;  %v2508_v3 = vmul.f32 %v3855_v22, %v4670_v5  ;;  %v2908_v49 = vmul.f32 %v4634_v38, %v2872_v2  ;;  %v5599_v39 = vmax.f32 %v4761_v11, 0.0 }
 0x1d6   : > { %v2531_v27 = vadd.f32 %v2499_v45, %v2396_v52  ;;  %v2573_v17 = vmul.f32 %v3881_v51, %v4672_v14  ;;  %v2911_v24 = vmul.f32 %v4634_v38, %v2875_v41  ;;  %v1844_v44 = vld [vmem:[#allocation2 + $0xb9] sm:$0xff]  ;;  %v1210_v4 = vadd.s32 224, %v3775_v28 }
 0x1d7   : > { %v2727_v61 = vmax.f32 %v2695_v58, 0.0  ;;  %v2540_v6 = vadd.f32 %v2508_v3, %v2405_v16  ;;  %v4783_v0 = vadd.f32 %v2101_v37, %v4696_v62  ;;  %1166 = vst.msk [vmem:[#allocation2 + $0xc8] sm:$0xff] %vm1141_vm4, %v5599_v39  ;;  %v4788_v5 = vadd.f32 %v2037_v53, %v1972_v20  ;;  %v4804_v16 = vld [vmem:[#allocation2 + $0xe8] sm:$0xff]  ;;  %v4870_v35 = vld [vmem:[#allocation2 + $0xbf] sm:$0xff] }
 0x1d8   : > { %v1780_v45 = vsel %vm4716_vm13, %v4726_v26, 0.0  ;;  %v4795_v52 = vmul.f32 %v3842_v12, %v4672_v14  ;;  %v2596_v62 = vadd.f32 %v2564_v25, %v2531_v27  ;;  %v2629_v37 = vmul.f32 %v4568_v7, %v1844_v44  ;;  %v4811_v27 = vld [vmem:[#allocation2 + $0xe7] sm:$0xff] }
 0x1d9   : > { %5700 = vst [vmem:[#allocation33_spill] sm:$0xff] %v4783_v0  ;;  %2808 = vrot.lane.b32.xlu2 %v2727_v61, %s3488_s30  ;;  %v1212_v32 = vadd.s32 240, %v3775_v28  ;;  %v2038_v20 = vmul.f32 %v3802_v43, %v4747_v18  ;;  %v2605_v53 = vadd.f32 %v2573_v17, %v2540_v6  ;;  %v2638_v15 = vmul.f32 %v4568_v7, %v2475_v46  ;;  %v4813_v61 = vld [vmem:[#allocation2 + $0xf7] sm:$0xff] }
 0x1da   : > { %5701 = vst [vmem:[#allocation34_spill] sm:$0xff] %v4788_v5  ;;  %v1414_v57 = vand.u32 15, %v1210_v4  ;;  %v2944_v14 = vadd.f32 %v4657_v34, %v2908_v49  ;;  %v4808_v9 = vadd.f32 %v4657_v34, %v2911_v24  ;;  %v1086_v41 = vpop.f32.mrf.mxu1  ;;  %v2781_v58 = vpop.permute.xlu1 %2780  ;;  %v1973_v25 = vmul.f32 %v3799_v42, %v1780_v45  ;;  %v4825_v4 = vld [vmem:[#allocation2 + $0xe9] sm:$0xff] }
 0x1db   : > { %5702 = vst [vmem:[#allocation35_spill] sm:$0xff] %v4795_v52  ;;  %v2661_v3 = vadd.f32 %v2629_v37, %v2596_v62  ;;  %v4816_v17 = vadd.f32 %v4446_v40, %v1086_v41  ;;  %v5705_v46 = vmax.f32 %v3850_v19, 0.0  ;;  %v1428_v49 = vand.u32 15, %v1212_v32 }
 0x1dc   : > { %5703 = vst [vmem:[#allocation36_spill] sm:$0xff] %v4813_v61  ;;  %vm4821_vm14 = vcmp.gt.s32.totalorder %v1414_v57, 0  ;;  %v2103_v62 = vmul.f32 %v3816_v48, %v1844_v44  ;;  %v2044_v40 = vmul.f32 %v3802_v43, %v4804_v16  ;;  %v2670_v41 = vadd.f32 %v2638_v15, %v2605_v53 }
 0x1dd   : > { %5704 = vst [vmem:[#allocation37_spill] sm:$0xff] %v4816_v17  ;;  %v2873_v6 = vsel %vm1141_vm4, %v5705_v46, %v2781_v58  ;;  %v2696_v37 = vadd.f32 %v4593_v59, %v2661_v3  ;;  %v5600_v19 = vmax.f32 %v4816_v17, 0.0  ;;  %v1786_v32 = vsel %vm4821_vm14, %v4811_v27, 0.0 }
 0x1de   : > { %v2909_v45 = vmul.f32 %v4634_v38, %v2873_v6  ;;  %v2175_v57 = vsel %vm4821_vm14, %v4813_v61, 0.0  ;;  %v1979_v6 = vmul.f32 %v3799_v42, %v1786_v32  ;;  %v2109_v3 = vmul.f32 %v3816_v48, %v4825_v4  ;;  %v4912_v52 = vld [vmem:[#allocation2 + $0xc8] sm:$0xff] }
 0x1df   : > { %v2728_v46 = vmax.f32 %v2696_v37, 0.0  ;;  %1167 = vst.msk [vmem:[#allocation2 + $0xd0] sm:$0xff] %vm1141_vm4, %v5600_v19  ;;  %v2070_v53 = vadd.f32 %v2038_v20, %v1973_v25  ;;  %v4851_v39 = vmul.f32 %v3842_v12, %v4747_v18  ;;  %vm4853_vm15 = vcmp.gt.s32.totalorder %v1428_v49, 0  ;;  %v4857_v37 = vld [vmem:[#allocation2 + $0xf8] sm:$0xff]  ;;  %v2145_v25 = vld [vmem:[#allocation2 + $0x107] sm:$0xff] }
 0x1e0   : > { %v2945_v58 = vadd.f32 %v4657_v34, %v2909_v45  ;;  %v5709_v45 = vmov 0  ;;  %5712 = vst [vmem:[#allocation40_spill] sm:$0xff] %v4857_v37  ;;  %v2976_v32 = vmax.f32 %v2944_v14, 0.0  ;;  %v4860_v19 = vld [vmem:[#allocation2 + $0xf9] sm:$0xff]  ;;  %v2076_v20 = vadd.f32 %v2044_v40, %v1979_v6  ;;  %v4889_v6 = vld [vmem:[#allocation2 + $0x109] sm:$0xff] }
 0x1e1   : > { %5708 = vst [vmem:[#allocation38_spill] sm:$0xff] %v4851_v39  ;;  %v5710_v45 = vsel %vm4853_vm15, 4294967295, %v5709_v45  ;;  %2810 = vrot.lane.b32.xlu2 %v2728_v46, %s3488_s30  ;;  %v2244_v15 = vmul.f32 %v3826_v60, %v2175_v57  ;;  %v2979_v11 = vmax.f32 %v4808_v9, 0.0  ;;  %v4864_v18 = vadd.f32 %v2103_v62, %v2070_v53  ;;  %v4872_v14 = vld [vmem:[#allocation2 + $0xc0] sm:$0xff] }
 0x1e2   : > { %5711 = vst [vmem:[#allocation39_spill] sm:$0xff] %v5710_v45  ;;  %v2977_v2 = vmax.f32 %v2945_v58, 0.0  ;;  %v4867_v49 = vmul.f32 %v3845_v13, %v1844_v44  ;;  %v2705_v17 = vadd.f32 %v4593_v59, %v2670_v41  ;;  %v1788_v40 = vsel %vm4853_vm15, %v4813_v61, 0.0  ;;  %v4904_v45 = vld [vmem:[#allocation2 + $0xc1] sm:$0xff] }
 0x1e3   : > { %5713 = vst [vmem:[#allocation41_spill] sm:$0xff] %v4860_v19  ;;  %v2141_v46 = vadd.f32 %v2109_v3, %v2076_v20  ;;  %v2309_v9 = vmul.f32 %v3842_v12, %v4857_v37  ;;  %v2177_v62 = vsel %vm4853_vm15, %v2145_v25, 0.0  ;;  %v2374_v44 = vmul.f32 %v3845_v13, %v4860_v19 }
 0x1e4   : > { %5714 = vst [vmem:[#allocation42_spill] sm:$0xff] %v4864_v18  ;;  %v3007_v58 = vpack.c.bf16 %v2977_v2, %v2976_v32  ;;  %v2440_v41 = vsel %vm4821_vm14, %v2145_v25, 0.0  ;;  %v1205_v57 = vadd.s32 184, %v3775_v28  ;;  %v4887_v2 = vld [vmem:[#allocation2 + $0x108] sm:$0xff]  ;;  %v1974_v53 = vmul.f32 %v3799_v42, %v4870_v35 }
 0x1e5   : > { %5715 = vst [vmem:[#allocation43_spill] sm:$0xff] %v4867_v49  ;;  %v2276_v3 = vadd.f32 %v2244_v15, %v2141_v46  ;;  %v2039_v32 = vmul.f32 %v3802_v43, %v4872_v14  ;;  %v1206_v20 = vadd.s32 192, %v3775_v28  ;;  %v2737_v63 = vmax.f32 %v2705_v17, 0.0 }
 0x1e6   : > { %3369 = vmatmul.msk.bf16.gmra.mxu2 %vm967_vm3, %v3007_v58  ;;  %5716 = vst [vmem:[#allocation44_spill] sm:$0xff] %v4887_v2  ;;  %v4898_v24 = vmul.f32 %v3802_v43, %v4857_v37  ;;  %v4902_v25 = vmul.f32 %v3816_v48, %v4860_v19  ;;  %v1379_v58 = vand.u32 15, %v1205_v57  ;;  %v4907_v15 = vmul.f32 %v3799_v42, %v1788_v40  ;;  %v4910_v33 = vld [vmem:[#allocation2 + $0xcf] sm:$0xff] }
 0x1e7   : > { %5717 = vst [vmem:[#allocation45_spill] sm:$0xff] %v4889_v6  ;;  %v2341_v46 = vadd.f32 %v2309_v9, %v2276_v3  ;;  %v2509_v18 = vmul.f32 %v3855_v22, %v2440_v41  ;;  %v1386_v17 = vand.u32 15, %v1206_v20  ;;  %v2639_v57 = vmul.f32 %v4568_v7, %v4889_v6  ;;  %v4925_v9 = vld [vmem:[#allocation2 + $0xc7] sm:$0xff] }
 0x1e8   : > { %5718 = vst [vmem:[#allocation46_spill] sm:$0xff] %v4898_v24  ;;  %v4915_v24 = vmul.f32 %v3826_v60, %v2177_v62  ;;  %vm4921_vm0 = vcmp.lt.s32.totalorder %v1379_v58, 15  ;;  %v5726_v3 = vmax.f32 %v4758_v55, 0.0  ;;  %v4935_v6 = vld [vmem:[#allocation2 + $0xc9] sm:$0xff]  ;;  %v4937_v58 = vld [vmem:[#allocation2 + $0xd1] sm:$0xff]  ;;  %v1207_v37 = vadd.s32 200, %v3775_v28 }
 0x1e9   : > { %5719 = vst [vmem:[#allocation47_spill] sm:$0xff] %v4902_v25  ;;  %v2574_v25 = vmul.f32 %v3881_v51, %v4887_v2  ;;  %2828 = vrot.lane.b32.xlu2 %v2737_v63, %s3488_s30  ;;  %v2406_v41 = vadd.f32 %v2374_v44, %v2341_v46  ;;  %v1941_v62 = vsel %vm4921_vm0, %v4904_v45, 0.0  ;;  %v2239_v63 = vmul.f32 %v3826_v60, %v4910_v33  ;;  %v4946_v55 = vld [vmem:[#allocation2 + $0xd8] sm:$0xff]  ;;  %v4952_v46 = vld [vmem:[#allocation2 + $0xd0] sm:$0xff]  ;;  %v2791_v0 = vpop.permute.xlu2 %2790 }
 0x1ea   : > { %5720 = vst [vmem:[#allocation48_spill] sm:$0xff] %v4907_v15  ;;  %v3008_v20 = vpack.c.bf16 %v2979_v11, %v5726_v3  ;;  %v4933_v15 = vld [vmem:[#allocation2 + $0xd7] sm:$0xff]  ;;  %v2104_v30 = vmul.f32 %v3816_v48, %v1941_v62  ;;  %vm4942_vm5 = vcmp.gt.s32.totalorder %v1386_v17, 0  ;;  %v2504_v3 = vmul.f32 %v3855_v22, %v4582_v8 }
 0x1eb   : > { %5721 = vst [vmem:[#allocation49_spill] sm:$0xff] %v4910_v33  ;;  %v4948_v11 = vld [vmem:[#allocation2 + $0xd9] sm:$0xff]  ;;  %v2569_v62 = vmul.f32 %v3881_v51, %v4600_v54  ;;  %v1782_v17 = vsel %vm4942_vm5, %v4925_v9, 0.0  ;;  %v2105_v5 = vmul.f32 %v3816_v48, %v4935_v6  ;;  %v2206_v19 = vsel %vm4921_vm0, %v4937_v58, 0.0 }
 0x1ec   : > { %5722 = vst [vmem:[#allocation50_spill] sm:$0xff] %v4912_v52  ;;  %v1975_v2 = vmul.f32 %v3799_v42, %v1782_v17  ;;  %v2304_v17 = vmul.f32 %v3842_v12, %v4952_v46  ;;  %v1976_v39 = vmul.f32 %v3799_v42, %v4910_v33  ;;  %v2370_v40 = vmul.f32 %v3845_v13, %v4948_v11 }
 0x1ed   : > { %5723 = vst [vmem:[#allocation51_spill] sm:$0xff] %v4915_v24  ;;  %v2071_v24 = vadd.f32 %v2039_v32, %v1974_v53  ;;  %v2040_v53 = vmul.f32 %v3802_v43, %v4912_v52  ;;  %v2541_v32 = vadd.f32 %v2509_v18, %v2406_v41  ;;  %v2171_v18 = vsel %vm4942_vm5, %v4933_v15, 0.0 }
 0x1ee   : > { %5727 = vst [vmem:[#allocation52_spill] sm:$0xff] %v4935_v6  ;;  %v4972_v52 = vmul.f32 %v3802_v43, %v4946_v55  ;;  %v2240_v49 = vmul.f32 %v3826_v60, %v2171_v18  ;;  %v1393_v18 = vand.u32 15, %v1207_v37 }
 0x1ef   : > { %5730 = vst [vmem:[#allocation53_spill] sm:$0xff] %v4948_v11  ;;  %v2136_v1 = vadd.f32 %v2104_v30, %v2071_v24  ;;  %v2606_v41 = vadd.f32 %v2574_v25, %v2541_v32  ;;  %v4976_v30 = vmul.f32 %v3816_v48, %v4948_v11  ;;  %v2072_v6 = vadd.f32 %v2040_v53, %v1975_v2 }
 0x1f0   : > { %v2471_v32 = vsel %vm4921_vm0, %v4629_v10, 0.0  ;;  %v2041_v2 = vmul.f32 %v3802_v43, %v4952_v46  ;;  %vm5004_vm6 = vcmp.lt.s32.totalorder %v1393_v18, 15 }
 0x1f1   : > { %5731 = vst [vmem:[#allocation54_spill] sm:$0xff] %v4976_v30  ;;  %v2271_v24 = vadd.f32 %v2239_v63, %v2136_v1  ;;  %v2671_v25 = vadd.f32 %v2639_v57, %v2606_v41  ;;  %v2369_v1 = vmul.f32 %v3845_v13, %v2206_v19  ;;  %v2137_v63 = vadd.f32 %v2105_v5, %v2072_v6  ;;  %v2787_v41 = vpop.permute.xlu0 %2786 }
 0x1f2   : > { %v2305_v57 = vmul.f32 %v3842_v12, %v4946_v55  ;;  %v2634_v33 = vmul.f32 %v4568_v7, %v2471_v32  ;;  %v2436_v5 = vsel %vm4942_vm5, %v4811_v27, 0.0  ;;  %v5732_v19 = vmax.f32 %v4070_v47, 0.0 }
 0x1f3   : > { %v2336_v61 = vadd.f32 %v2304_v17, %v2271_v24  ;;  %v2706_v53 = vadd.f32 %v4593_v59, %v2671_v25  ;;  %v2272_v24 = vadd.f32 %v2240_v49, %v2137_v63  ;;  %v2073_v37 = vadd.f32 %v2041_v2, %v1976_v39 }
 0x1f4   : > { %v5002_v6 = vsel %vm1141_vm4, %v5732_v19, %v2791_v0  ;;  %v2570_v49 = vmul.f32 %v3881_v51, %v4804_v16  ;;  %v1943_v44 = vsel %vm5004_vm6, %v4937_v58, 0.0  ;;  %v5735_v47 = vmax.f32 %v3978_v50, 0.0 }
 0x1f5   : > { %v2401_v30 = vadd.f32 %v2369_v1, %v2336_v61  ;;  %v2738_v17 = vmax.f32 %v2706_v53, 0.0  ;;  %v2337_v61 = vadd.f32 %v2305_v57, %v2272_v24  ;;  %v2505_v32 = vmul.f32 %v3855_v22, %v2436_v5 }
 0x1f6   : > { %v2876_v0 = vsel %vm1141_vm4, %v5735_v47, %v2787_v41  ;;  %3370 = vmatmul.msk.bf16.gmra.mxu2 %vm967_vm3, %v3008_v20  ;;  %v2106_v39 = vmul.f32 %v3816_v48, %v1943_v44  ;;  %v2635_v63 = vmul.f32 %v4568_v7, %v4825_v4  ;;  %v2241_v2 = vmul.f32 %v3826_v60, %v4582_v8 }
 0x1f7   : > { %v2536_v11 = vadd.f32 %v2504_v3, %v2401_v30  ;;  %2830 = vrot.lane.b32.xlu2 %v2738_v17, %s3488_s30  ;;  %v1201_v3 = vadd.s32 152, %v3775_v28  ;;  %v2402_v1 = vadd.f32 %v2370_v40, %v2337_v61  ;;  %v2306_v50 = vmul.f32 %v3842_v12, %v4600_v54  ;;  %v5738_v17 = vld [vmem:[#allocation26_spill] sm:$0xff] }
 0x1f8   : > { %v2138_v53 = vadd.f32 %v2106_v39, %v2073_v37  ;;  %v2506_v20 = vmul.f32 %v3855_v22, %v4663_v29  ;;  %v2912_v18 = vmul.f32 %v4634_v38, %v2876_v0  ;;  %v2571_v8 = vmul.f32 %v3881_v51, %v4665_v23  ;;  %v5739_v37 = vld [vmem:[#allocation23_spill] sm:$0xff] }
 0x1f9   : > { %v2601_v30 = vadd.f32 %v2569_v62, %v2536_v11  ;;  %v1351_v57 = vand.u32 15, %v1201_v3  ;;  %v2537_v24 = vadd.f32 %v2505_v32, %v2402_v1  ;;  %v2208_v11 = vsel %vm5004_vm6, %v4629_v10, 0.0  ;;  %v5740_v3 = vld [vmem:[#allocation3_spill] sm:$0xff] }
 0x1fa   : > { %v2273_v62 = vadd.f32 %v2241_v2, %v2138_v53  ;;  %v1208_v54 = vadd.s32 208, %v3775_v28  ;;  %v2789_v61 = vpop.permute.xlu1 %2788  ;;  %v2371_v47 = vmul.f32 %v3845_v13, %v2208_v11  ;;  %v5741_v25 = vmax.f32 %v5740_v3, 0.0 }
 0x1fb   : > { %v2666_v41 = vadd.f32 %v2634_v33, %v2601_v30  ;;  %vm5035_vm7 = vcmp.lt.s32.totalorder %v1351_v57, 15  ;;  %v2602_v19 = vadd.f32 %v2570_v49, %v2537_v24  ;;  %v2473_v33 = vsel %vm5004_vm6, %v5738_v17, 0.0 }
 0x1fc   : > { %v1937_v10 = vsel %vm5035_vm7, %v5739_v37, 0.0  ;;  %v2338_v44 = vadd.f32 %v2306_v50, %v2273_v62  ;;  %v2202_v32 = vsel %vm5035_vm7, %v4723_v56, 0.0  ;;  %v2948_v49 = vadd.f32 %v4657_v34, %v2912_v18  ;;  %v5742_v50 = vld [vmem:[#allocation24_spill] sm:$0xff] }
 0x1fd   : > { %v2701_v5 = vadd.f32 %v4593_v59, %v2666_v41  ;;  %v2100_v0 = vmul.f32 %v3816_v48, %v1937_v10  ;;  %v2877_v30 = vsel %vm1141_vm4, %v5741_v25, %v2789_v61  ;;  %v2667_v1 = vadd.f32 %v2635_v63, %v2602_v19 }
 0x1fe   : > { %v2913_v2 = vmul.f32 %v4634_v38, %v2877_v30  ;;  %v2403_v53 = vadd.f32 %v2371_v47, %v2338_v44  ;;  %v1400_v41 = vand.u32 15, %v1208_v54  ;;  %v2636_v11 = vmul.f32 %v4568_v7, %v2473_v33  ;;  %v5746_v30 = vld [vmem:[#allocation36_spill] sm:$0xff] }
 0x1ff   : > { %v2733_v39 = vmax.f32 %v2701_v5, 0.0  ;;  %v2132_v57 = vadd.f32 %v2100_v0, %v5742_v50  ;;  %v2702_v24 = vadd.f32 %v4593_v59, %v2667_v1  ;;  %v2365_v18 = vmul.f32 %v3845_v13, %v2202_v32  ;;  %v5747_v1 = vld [vmem:[#allocation33_spill] sm:$0xff]  ;;  %v5748_v50 = vld [vmem:[#allocation54_spill] sm:$0xff] }
 0x200   : > { %v2500_v62 = vmul.f32 %v3855_v22, %v4870_v35  ;;  %v2949_v5 = vadd.f32 %v4657_v34, %v2913_v2  ;;  %v2538_v63 = vadd.f32 %v2506_v20, %v2403_v53  ;;  %vm5066_vm8 = vcmp.gt.s32.totalorder %v1400_v41, 0 }
 0x201   : > { %2820 = vrot.lane.b32.xlu2 %v2733_v39, %s3488_s30  ;;  %v2267_v19 = vadd.f32 %v4742_v36, %v2132_v57  ;;  %v2980_v54 = vmax.f32 %v2948_v49, 0.0  ;;  %v2734_v10 = vmax.f32 %v2702_v24, 0.0  ;;  %v2467_v33 = vsel %vm5035_vm7, %v4904_v45, 0.0  ;;  %v5749_v24 = vld [vmem:[#allocation38_spill] sm:$0xff] }
 0x202   : > { %v1784_v61 = vsel %vm5066_vm8, %v4933_v15, 0.0  ;;  %v2981_v44 = vmax.f32 %v2949_v5, 0.0  ;;  %v2603_v47 = vadd.f32 %v2571_v8, %v2538_v63  ;;  %v5080_v0 = vmul.f32 %v4634_v38, %v5002_v6 }
 0x203   : > { %v2332_v20 = vadd.f32 %v4745_v21, %v2267_v19  ;;  %v1977_v36 = vmul.f32 %v3799_v42, %v1784_v61  ;;  %2822 = vrot.lane.b32.xlu0 %v2734_v10, %s3488_s30  ;;  %v2173_v40 = vsel %vm5066_vm8, %v4811_v27, 0.0  ;;  %v5745_v32 = vsel %vm4578_vm2, %v4726_v26, 0.0  ;;  %v5750_v10 = vld [vmem:[#allocation40_spill] sm:$0xff]  ;;  %v5751_v61 = vld [vmem:[#allocation43_spill] sm:$0xff] }
 0x204   : > { %v2236_v8 = vmul.f32 %v3826_v60, %v5745_v32  ;;  %v2432_v21 = vsel %vm4578_vm2, %v4925_v9, 0.0  ;;  %v2668_v49 = vadd.f32 %v2636_v11, %v2603_v47  ;;  %v3009_v6 = vpack.c.bf16 %v2981_v44, %v2980_v54  ;;  %v5753_v32 = vld [vmem:[#allocation52_spill] sm:$0xff] }
 0x205   : > { %v2397_v39 = vadd.f32 %v2365_v18, %v2332_v20  ;;  %v2074_v3 = vadd.f32 %v4972_v52, %v1977_v36  ;;  %v2565_v25 = vmul.f32 %v3881_v51, %v4872_v14  ;;  %v2630_v27 = vmul.f32 %v4568_v7, %v2467_v33  ;;  %v5752_v36 = vld [vmem:[#allocation50_spill] sm:$0xff] }
 0x206   : > { %v2438_v26 = vsel %vm5066_vm8, %v5746_v30, 0.0  ;;  %v2268_v2 = vadd.f32 %v2236_v8, %v5747_v1  ;;  %v2703_v53 = vadd.f32 %v4593_v59, %v2668_v49  ;;  %3371 = vmatmul.msk.bf16.gmra.mxu2 %vm967_vm3, %v3009_v6  ;;  %v2242_v52 = vmul.f32 %v3826_v60, %v2173_v40 }
 0x207   : > { %v2532_v31 = vadd.f32 %v2500_v62, %v2397_v39  ;;  %v2139_v57 = vadd.f32 %v5748_v50, %v2074_v3  ;;  %v2307_v41 = vmul.f32 %v3842_v12, %v4804_v16  ;;  %v2501_v18 = vmul.f32 %v3855_v22, %v2432_v21 }
 0x208   : > { %v2333_v11 = vadd.f32 %v5749_v24, %v2268_v2  ;;  %v1203_v5 = vadd.s32 168, %v3775_v28  ;;  %v2735_v63 = vmax.f32 %v2703_v53, 0.0  ;;  %v2372_v62 = vmul.f32 %v3845_v13, %v4825_v4  ;;  %v2146_v4 = vld [vmem:[#allocation2 + $0x10f] sm:$0xff] }
 0x209   : > { %v2597_v19 = vadd.f32 %v2565_v25, %v2532_v31  ;;  %v2274_v37 = vadd.f32 %v2242_v52, %v2139_v57  ;;  %v2507_v54 = vmul.f32 %v3855_v22, %v2438_v26  ;;  %v2572_v33 = vmul.f32 %v3881_v51, %v5750_v10  ;;  %v5756_v26 = vld [vmem:[#allocation4_spill] sm:$0xff]  ;;  %v5758_v52 = vld [vmem:[#allocation41_spill] sm:$0xff] }
 0x20a   : > { %v2398_v44 = vadd.f32 %v5751_v61, %v2333_v11  ;;  %v1365_v16 = vand.u32 15, %v1203_v5  ;;  %2824 = vrot.lane.b32.xlu1 %v2735_v63, %s3488_s30  ;;  %v2566_v40 = vmul.f32 %v3881_v51, %v5752_v36  ;;  %v2631_v8 = vmul.f32 %v4568_v7, %v5753_v32  ;;  %v2793_v25 = vpop.permute.xlu0 %2792 }
 0x20b   : > { %v2662_v47 = vadd.f32 %v2630_v27, %v2597_v19  ;;  %v2339_v20 = vadd.f32 %v2307_v41, %v2274_v37  ;;  %v2237_v49 = vmul.f32 %v3826_v60, %v4870_v35  ;;  %v1211_v39 = vadd.s32 232, %v3775_v28 }
 0x20c   : > { %v2533_v21 = vadd.f32 %v2501_v18, %v2398_v44  ;;  %vm5122_vm9 = vcmp.lt.s32.totalorder %v1365_v16, 15  ;;  %v1213_v30 = vadd.s32 248, %v3775_v28  ;;  %v5757_v1 = vmax.f32 %v5756_v26, 0.0  ;;  %v5759_v28 = vld [vmem:[#allocation34_spill] sm:$0xff] }
 0x20d   : > { %v2697_v6 = vadd.f32 %v4593_v59, %v2662_v47  ;;  %v2404_v3 = vadd.f32 %v2372_v62, %v2339_v20  ;;  %v1939_v27 = vsel %vm5122_vm9, %v4723_v56, 0.0  ;;  %v2204_v35 = vsel %vm5122_vm9, %v4904_v45, 0.0  ;;  %v2797_v62 = vpop.permute.xlu2 %2796  ;;  %v5762_v47 = vld [vmem:[#allocation49_spill] sm:$0xff] }
 0x20e   : > { %v2879_v2 = vsel %vm1141_vm4, %v5757_v1, %v2793_v25  ;;  %v2598_v53 = vadd.f32 %v2566_v40, %v2533_v21  ;;  %v2102_v31 = vmul.f32 %v3816_v48, %v1939_v27  ;;  %v2637_v41 = vmul.f32 %v4568_v7, %v5758_v52  ;;  %v5769_v52 = vld [vmem:[#allocation5_spill] sm:$0xff] }
 0x20f   : > { %v2729_v50 = vmax.f32 %v2697_v6, 0.0  ;;  %v2539_v57 = vadd.f32 %v2507_v54, %v2404_v3  ;;  %v2915_v56 = vmul.f32 %v4634_v38, %v2879_v2  ;;  %v2302_v18 = vmul.f32 %v3842_v12, %v4872_v14 }
 0x210   : > { %v2663_v24 = vadd.f32 %v2631_v8, %v2598_v53  ;;  %v2134_v11 = vadd.f32 %v2102_v31, %v5759_v28  ;;  %v1421_v5 = vand.u32 15, %v1211_v39  ;;  %v2367_v19 = vmul.f32 %v3845_v13, %v2204_v35  ;;  %v5771_v28 = vld [vmem:[#allocation29_spill] sm:$0xff] }
 0x211   : > { %2812 = vrot.lane.b32.xlu0 %v2729_v50, %s3488_s30  ;;  %v2604_v63 = vadd.f32 %v2572_v33, %v2539_v57  ;;  %v1435_v45 = vand.u32 15, %v1213_v30  ;;  %v1980_v37 = vmul.f32 %v3799_v42, %v4663_v29  ;;  %v2951_v54 = vadd.f32 %v4657_v34, %v2915_v56  ;;  %v5768_v30 = vld [vmem:[#allocation31_spill] sm:$0xff] }
 0x212   : > { %v2269_v10 = vadd.f32 %v2237_v49, %v2134_v11  ;;  %vm5152_vm10 = vcmp.lt.s32.totalorder %v1421_v5, 15  ;;  %v2045_v14 = vmul.f32 %v3802_v43, %v4665_v23  ;;  %v2950_v33 = vadd.f32 %v4657_v34, %v5080_v0  ;;  %v5765_v43 = vld [vmem:[#allocation44_spill] sm:$0xff]  ;;  %v5766_v0 = vld [vmem:[#allocation7_spill] sm:$0xff] }
 0x213   : > { %v2669_v44 = vadd.f32 %v2637_v41, %v2604_v63  ;;  %v2698_v16 = vadd.f32 %v4593_v59, %v2663_v24  ;;  %v1947_v42 = vsel %vm5152_vm10, %v5738_v17, 0.0  ;;  %v2502_v20 = vmul.f32 %v3855_v22, %v5762_v47  ;;  %v2795_v17 = vpop.permute.xlu1 %2794  ;;  %v2182_v24 = vld [vmem:[#allocation2 + $0x111] sm:$0xff] }
 0x214   : > { %v2334_v29 = vadd.f32 %v2302_v18, %v2269_v10  ;;  %vm5166_vm11 = vcmp.lt.s32.totalorder %v1435_v45, 15  ;;  %v2077_v8 = vadd.f32 %v2045_v14, %v1980_v37  ;;  %v5172_v23 = vmul.f32 %v3842_v12, %v5765_v43  ;;  %v5774_v43 = vld [vmem:[#allocation42_spill] sm:$0xff] }
 0x215   : > { %v5767_v21 = vmax.f32 %v5766_v0, 0.0  ;;  %v2704_v39 = vadd.f32 %v4593_v59, %v2669_v44  ;;  %v2110_v6 = vmul.f32 %v3816_v48, %v1947_v42  ;;  %v2983_v3 = vmax.f32 %v2951_v54, 0.0 }
 0x216   : > { %v2399_v25 = vadd.f32 %v2367_v19, %v2334_v29  ;;  %v2469_v27 = vsel %vm5122_vm9, %v4937_v58, 0.0  ;;  %v2212_v26 = vsel %vm5152_vm10, %v5768_v30, 0.0  ;;  %v2730_v2 = vmax.f32 %v2698_v16, 0.0  ;;  %v2180_v19 = vld [vmem:[#allocation2 + $0x110] sm:$0xff] }
 0x217   : > { %v2881_v49 = vsel %vm1141_vm4, %v5767_v21, %v2797_v62  ;;  %v2736_v1 = vmax.f32 %v2704_v39, 0.0  ;;  %v1949_v53 = vsel %vm5166_vm11, %v5768_v30, 0.0  ;;  %v2142_v31 = vadd.f32 %v2110_v6, %v2077_v8  ;;  %v5772_v62 = vld [vmem:[#allocation35_spill] sm:$0xff]  ;;  %v5775_v21 = vld [vmem:[#allocation48_spill] sm:$0xff] }
 0x218   : > { %v2982_v35 = vmax.f32 %v2950_v33, 0.0  ;;  %v2534_v50 = vadd.f32 %v2502_v20, %v2399_v25  ;;  %v2567_v57 = vmul.f32 %v3881_v51, %v4952_v46  ;;  %v5770_v41 = vmax.f32 %v5769_v52, 0.0 }
 0x219   : > { %v2917_v56 = vmul.f32 %v4634_v38, %v2881_v49  ;;  %2826 = vrot.lane.b32.xlu1 %v2736_v1, %s3488_s30  ;;  %2814 = vrot.lane.b32.xlu0 %v2730_v2, %s3488_s30  ;;  %v2277_v11 = vadd.f32 %v5771_v28, %v2142_v31  ;;  %v2375_v18 = vmul.f32 %v3845_v13, %v2212_v26  ;;  %v2169_v33 = vsel %vm4716_vm13, %v4925_v9, 0.0  ;;  %v5776_v49 = vld [vmem:[#allocation46_spill] sm:$0xff]  ;;  %v5777_v26 = vld [vmem:[#allocation47_spill] sm:$0xff] }
 0x21a   : > { %v2880_v58 = vsel %vm1141_vm4, %v5770_v41, %v2795_v17  ;;  %v2599_v5 = vadd.f32 %v2567_v57, %v2534_v50  ;;  %v2632_v63 = vmul.f32 %v4568_v7, %v2469_v27  ;;  %v2112_v46 = vmul.f32 %v3816_v48, %v1949_v53  ;;  %v2410_v17 = vld [vmem:[#allocation2 + $0x117] sm:$0xff]  ;;  %v5780_v57 = vld [vmem:[#allocation45_spill] sm:$0xff] }
 0x21b   : > { %v3010_v45 = vpack.c.bf16 %v2983_v3, %v2982_v35  ;;  %v2916_v37 = vmul.f32 %v4634_v38, %v2880_v58  ;;  %v2342_v54 = vadd.f32 %v5772_v62, %v2277_v11  ;;  %v2510_v10 = vmul.f32 %v3855_v22, %v2146_v4  ;;  %v5779_v35 = vld [vmem:[#allocation27_spill] sm:$0xff]  ;;  %v2444_v11 = vld [vmem:[#allocation2 + $0x118] sm:$0xff]  ;;  %v3427_v62 = vld [vmem:[%s5539_s9 + $0x8] ss:$0 sm:$0xff] }
 0x21c   : > { %v2664_v44 = vadd.f32 %v2632_v63, %v2599_v5  ;;  %v2214_v16 = vsel %vm5166_vm11, %v2182_v24, 0.0  ;;  %v2477_v42 = vsel %vm5152_vm10, %v2182_v24, 0.0  ;;  %v2238_v48 = vmul.f32 %v3826_v60, %v2169_v33  ;;  %v5781_v41 = vld [vmem:[#allocation51_spill] sm:$0xff]  ;;  %v2447_v5 = vld [vmem:[#allocation2 + $0x121] sm:$0xff] }
 0x21d   : > { %3372 = vmatmul.msk.bf16.gmra.mxu2 %vm967_vm3, %v3010_v45  ;;  %v2407_v29 = vadd.f32 %v2375_v18, %v2342_v54  ;;  %v2575_v47 = vmul.f32 %v3881_v51, %v2180_v19  ;;  %v2303_v20 = vmul.f32 %v3842_v12, %v5752_v36  ;;  %v2434_v9 = vsel %vm4716_vm13, %v4933_v15, 0.0  ;;  %v2445_v45 = vld [vmem:[#allocation2 + $0x120] sm:$0xff] }
 0x21e   : > { %v2699_v8 = vadd.f32 %v4593_v59, %v2664_v44  ;;  %v2270_v0 = vadd.f32 %v2238_v48, %v5774_v43  ;;  %v2368_v61 = vmul.f32 %v3845_v13, %v5753_v32  ;;  %v2078_v39 = vadd.f32 %v5776_v49, %v5775_v21 }
 0x21f   : > { %v2952_v6 = vadd.f32 %v4657_v34, %v2916_v37  ;;  %v2247_v3 = vmul.f32 %v3826_v60, %v2146_v4  ;;  %v2542_v36 = vadd.f32 %v2510_v10, %v2407_v29  ;;  %v2640_v25 = vmul.f32 %v4568_v7, %v2477_v42  ;;  %v2411_v4 = vld [vmem:[#allocation2 + $0x11f] sm:$0xff] }
 0x220   : > { %v2731_v27 = vmax.f32 %v2699_v8, 0.0  ;;  %v2335_v15 = vadd.f32 %v2303_v20, %v2270_v0  ;;  %v2503_v30 = vmul.f32 %v3855_v22, %v2434_v9  ;;  %v2143_v1 = vadd.f32 %v5777_v26, %v2078_v39  ;;  %v2446_v10 = vld [vmem:[#allocation2 + $0x119] sm:$0xff] }
 0x221   : > { %v2312_v2 = vmul.f32 %v3842_v12, %v2180_v19  ;;  %v2607_v32 = vadd.f32 %v2575_v47, %v2542_v36  ;;  %v2442_v31 = vsel %vm4853_vm15, %v2410_v17, 0.0  ;;  %v2144_v50 = vadd.f32 %v2112_v46, %v5779_v35  ;;  %v2799_v8 = vpop.permute.xlu0 %2798  ;;  %v3428_v0 = vld [vmem:[%s5540_s10] ss:$0 sm:$0xff] }
 0x222   : > { %v2376_v60 = vmul.f32 %v3845_v13, %v5780_v57  ;;  %v2953_v52 = vadd.f32 %v4657_v34, %v2917_v56  ;;  %2816 = vrot.lane.b32.xlu1 %v2731_v27, %s3488_s30  ;;  %v2400_v7 = vadd.f32 %v2368_v61, %v2335_v15  ;;  %v2278_v58 = vadd.f32 %v5781_v41, %v2143_v1  ;;  %v5783_v39 = vld [vmem:[#allocation9_spill] sm:$0xff] }
 0x223   : > { %v2984_v24 = vmax.f32 %v2952_v6, 0.0  ;;  %v2377_v12 = vmul.f32 %v3845_v13, %v2214_v16  ;;  %v2672_v28 = vadd.f32 %v2640_v25, %v2607_v32  ;;  %v2279_v18 = vadd.f32 %v2247_v3, %v2144_v50  ;;  %v5782_v13 = vld [vmem:[#allocation53_spill] sm:$0xff] }
 0x224   : > { %v2535_v63 = vadd.f32 %v2503_v30, %v2400_v7  ;;  %v2568_v46 = vmul.f32 %v3881_v51, %v4946_v55  ;;  %v2343_v19 = vadd.f32 %v5172_v23, %v2278_v58  ;;  %v2511_v56 = vmul.f32 %v3855_v22, %v2442_v31  ;;  %v5785_v30 = vld [vmem:[#allocation11_spill] sm:$0xff]  ;;  %v5787_v41 = vld [vmem:[#allocation13_spill] sm:$0xff] }
 0x225   : > { %v2707_v37 = vadd.f32 %v4593_v59, %v2672_v28  ;;  %v2633_v54 = vmul.f32 %v3427_v62, %v5782_v13  ;;  %v2344_v14 = vadd.f32 %v2312_v2, %v2279_v18  ;;  %v2512_v33 = vmul.f32 %v3855_v22, %v2411_v4  ;;  %v5789_v28 = vld [vmem:[#allocation15_spill] sm:$0xff]  ;;  %v5791_v13 = vld [vmem:[#allocation17_spill] sm:$0xff] }
 0x226   : > { %v2600_v44 = vadd.f32 %v2568_v46, %v2535_v63  ;;  %v2408_v16 = vadd.f32 %v2376_v60, %v2343_v19  ;;  %v2576_v55 = vmul.f32 %v3881_v51, %v2444_v11  ;;  %v2479_v23 = vsel %vm5166_vm11, %v2447_v5, 0.0 }
 0x227   : > { %v2739_v42 = vmax.f32 %v2707_v37, 0.0  ;;  %v2409_v48 = vadd.f32 %v2377_v12, %v2344_v14  ;;  %v2577_v59 = vmul.f32 %v3881_v51, %v2445_v45  ;;  %v2985_v29 = vmax.f32 %v2953_v52, 0.0  ;;  %v2803_v52 = vpop.permute.xlu2 %2802  ;;  %v5793_v14 = vld [vmem:[#allocation19_spill] sm:$0xff] }
 0x228   : > { %v2665_v47 = vadd.f32 %v2633_v54, %v2600_v44  ;;  %v2543_v20 = vadd.f32 %v2511_v56, %v2408_v16  ;;  %v2641_v9 = vmul.f32 %v3427_v62, %v2446_v10  ;;  %v2642_v22 = vmul.f32 %v3427_v62, %v2479_v23 }
 0x229   : > { %2832 = vrot.lane.b32.xlu0 %v2739_v42, %s3488_s30  ;;  %v2544_v43 = vadd.f32 %v2512_v33, %v2409_v48  ;;  %v3011_v21 = vpack.c.bf16 %v2985_v29, %v2984_v24  ;;  %v5784_v17 = vmax.f32 %v5783_v39, 0.0  ;;  %v5786_v26 = vmax.f32 %v5785_v30, 0.0  ;;  %v5278_v24 = vld [vmem:[%s5541_s11] ss:$0 sm:$0xff]  ;;  %v3433_v39 = vld [vmem:[%s3603_s26 + $0x10] sm:$0xff] }
 0x22a   : > { %v2700_v61 = vadd.f32 %v3428_v0, %v2665_v47  ;;  %v2608_v40 = vadd.f32 %v2576_v55, %v2543_v20  ;;  %v2801_v25 = vpop.permute.xlu1 %2800  ;;  %v5788_v58 = vmax.f32 %v5787_v41, 0.0  ;;  %v5790_v11 = vmax.f32 %v5789_v28, 0.0  ;;  %v5299_v55 = vld [vmem:[%s5542_s12] ss:$0 sm:$0xff] }
 0x22b   : > { %v2609_v49 = vadd.f32 %v2577_v59, %v2544_v43  ;;  %v2882_v51 = vsel %vm1141_vm4, %v5784_v17, %v2799_v8  ;;  %v2883_v1 = vsel %vm1141_vm4, %v5786_v26, %v2801_v25  ;;  %v5792_v54 = vmax.f32 %v5791_v13, 0.0  ;;  %v5306_v59 = vld [vmem:[%s5544_s14] ss:$0 sm:$0xff] }
 0x22c   : > { %v2732_v6 = vmax.f32 %v2700_v61, 0.0  ;;  %v2673_v3 = vadd.f32 %v2641_v9, %v2608_v40  ;;  %v2918_v15 = vmul.f32 %v4634_v38, %v2882_v51  ;;  %v2919_v2 = vmul.f32 %v4634_v38, %v2883_v1  ;;  %v3431_v8 = vld [vmem:[%s3603_s26] sm:$0xff]  ;;  %v3432_v61 = vld [vmem:[%s3603_s26 + $0x8] sm:$0xff] }
 0x22d   : > { %3373 = vmatmul.msk.bf16.gmra.mxu2 %vm967_vm3, %v3011_v21  ;;  %v2674_v36 = vadd.f32 %v2642_v22, %v2609_v49  ;;  %v2884_v4 = vsel %vm1141_vm4, %v5788_v58, %v2803_v52  ;;  %v5794_v33 = vmax.f32 %v5793_v14, 0.0  ;;  %v5799_v52 = vld [vmem:[#allocation8_spill] sm:$0xff] }
 0x22e   : > { %2818 = vrot.lane.b32.xlu1 %v2732_v6, %s3488_s30  ;;  %v2708_v27 = vadd.f32 %v3428_v0, %v2673_v3  ;;  %v2955_v31 = vadd.f32 %v4657_v34, %v2919_v2  ;;  %v2954_v35 = vadd.f32 %v4657_v34, %v2918_v15  ;;  %v2920_v12 = vmul.f32 %v5278_v24, %v2884_v4  ;;  %v3434_v3 = vld [vmem:[%s3603_s26 + $0x18] sm:$0xff] }
 0x22f   : > { %v2709_v53 = vadd.f32 %v3428_v0, %v2674_v36 }
 0x230   : > { %v2740_v32 = vmax.f32 %v2708_v27, 0.0  ;;  %v2987_v57 = vmax.f32 %v2955_v31, 0.0  ;;  %v2986_v60 = vmax.f32 %v2954_v35, 0.0  ;;  %v2956_v46 = vadd.f32 %v4657_v34, %v2920_v12  ;;  %v5795_v27 = vld [vmem:[#allocation6_spill] sm:$0xff]  ;;  %v3435_v31 = vld [vmem:[%s3603_s26 + $0x20] sm:$0xff] }
 0x231   : > { %v2741_v50 = vmax.f32 %v2709_v53, 0.0  ;;  %v5796_v15 = vmax.f32 %v5795_v27, 0.0 }
 0x232   : > { %2834 = vrot.lane.b32.xlu0 %v2740_v32, %s3488_s30  ;;  %v3012_v7 = vpack.c.bf16 %v2987_v57, %v2986_v60  ;;  %v2988_v56 = vmax.f32 %v2956_v46, 0.0  ;;  %v5801_v46 = vld [vmem:[#allocation22_spill] sm:$0xff] }
 0x233   : > { %v2809_v62 = vpop.permute.xlu2 %2808 }
 0x234   : > { %v2887_v44 = vsel %vm1141_vm4, %v5794_v33, %v2809_v62  ;;  %v5803_v33 = vld [vmem:[#allocation12_spill] sm:$0xff] }
 0x236   : > { %2836 = vrot.lane.b32.xlu1 %v2741_v50, %s3488_s30  ;;  %v5797_v50 = vld [vmem:[#allocation21_spill] sm:$0xff] }
 0x237   : > { %v5798_v57 = vmax.f32 %v5797_v50, 0.0 }
 0x23a   : > { %v2805_v38 = vpop.permute.xlu0 %2804 }
 0x23b   : > { %v2885_v18 = vsel %vm1141_vm4, %v5790_v11, %v2805_v38  ;;  %v2811_v1 = vpop.permute.xlu2 %2810 }
 0x23c   : > { %v2921_v5 = vmul.f32 %v5278_v24, %v2885_v18  ;;  %v2888_v60 = vsel %vm1141_vm4, %v5798_v57, %v2811_v1  ;;  %v5811_v57 = vld [vmem:[#allocation14_spill] sm:$0xff] }
 0x23d   : > { %3374 = vmatmul.msk.bf16.gmra.mxu2 %vm967_vm3, %v3012_v7  ;;  %v5800_v7 = vmax.f32 %v5799_v52, 0.0  ;;  %v2924_v38 = vmul.f32 %v5278_v24, %v2888_v60  ;;  %v5812_v60 = vmax.f32 %v5811_v57, 0.0 }
 0x23e   : > { %v2957_v63 = vadd.f32 %v4657_v34, %v2921_v5  ;;  %v2923_v34 = vmul.f32 %v5278_v24, %v2887_v44  ;;  %v5804_v44 = vmax.f32 %v5803_v33, 0.0 }
 0x240   : > { %v2989_v19 = vmax.f32 %v2957_v63, 0.0  ;;  %v2959_v42 = vadd.f32 %v5299_v55, %v2923_v34 }
 0x242   : > { %v2807_v45 = vpop.permute.xlu1 %2806  ;;  %v3013_v37 = vpack.c.bf16 %v2989_v19, %v2988_v56  ;;  %v2991_v29 = vmax.f32 %v2959_v42, 0.0  ;;  %v5802_v19 = vmax.f32 %v5801_v46, 0.0 }
 0x243   : > { %v2886_v10 = vsel %vm1141_vm4, %v5792_v54, %v2807_v45  ;;  %v2960_v45 = vadd.f32 %v5299_v55, %v2924_v38  ;;  %v3436_v54 = vld [vmem:[%s3603_s26 + $0x28] sm:$0xff] }
 0x244   : > { %v2922_v16 = vmul.f32 %v5278_v24, %v2886_v10 }
 0x245   : > { %v2992_v34 = vmax.f32 %v2960_v45, 0.0 }
 0x246   : > { %v2958_v23 = vadd.f32 %v5299_v55, %v2922_v16 }
 0x248   : > { %v2990_v48 = vmax.f32 %v2958_v23, 0.0 }
 0x24a   : > { %v3014_v47 = vpack.c.bf16 %v2991_v29, %v2990_v48 }
 0x24d   : > { %3375 = vmatmul.msk.bf16.gmra.mxu2 %vm967_vm3, %v3013_v37  ;;  %v2829_v37 = vpop.permute.xlu2 %2828 }
 0x24e   : > { %v2897_v16 = vsel %vm1141_vm4, %v5804_v44, %v2829_v37 }
 0x24f   : > { %v2933_v48 = vmul.f32 %v5278_v24, %v2897_v16 }
 0x257   : > { %v3087_v20 = vpop.f32.mrf.mxu2 }
 0x258   : > { %v3088_v9 = vadd.f32 %v5306_v59, %v3087_v20 }
 0x25a   : > { %v3167_v43 = vadd.f32 %v3431_v8, %v3088_v9  ;;  %v5805_v9 = vld [vmem:[#allocation10_spill] sm:$0xff] }
 0x25b   : > { %v5806_v8 = vmax.f32 %v5805_v9, 0.0 }
 0x25c   : > { %3199 = vst.msk [vmem:[%s5315_s21] sm:$0xff] %vm806_vm1, %v3167_v43 }
 0x25d   : > { %3376 = vmatmul.msk.bf16.gmra.mxu2 %vm967_vm3, %v3014_v47 }
 0x25f   : > { %v3089_v22 = vpop.f32.mrf.mxu2 }
 0x260   : > { %v3090_v0 = vadd.f32 %v5306_v59, %v3089_v22 }
 0x262   : > { %v3168_v40 = vadd.f32 %v3432_v61, %v3090_v0  ;;  %v3437_v61 = vld [vmem:[%s3603_s26 + $0x30] sm:$0xff] }
 0x264   : > { %3200 = vst.msk [vmem:[%s5315_s21 + $0x8] sm:$0xff] %vm806_vm1, %v3168_v40 }
 0x269   : > { %v3092_v21 = vpop.f32.mrf.mxu2 }
 0x26a   : > { %v3093_v49 = vadd.f32 %v5306_v59, %v3092_v21  ;;  %v2969_v21 = vadd.f32 %v5299_v55, %v2933_v48 }
 0x26c   : > { %v3169_v17 = vadd.f32 %v3433_v39, %v3093_v49  ;;  %v5807_v39 = vld [vmem:[#allocation25_spill] sm:$0xff]  ;;  %v3001_v27 = vmax.f32 %v2969_v21, 0.0 }
 0x26e   : > { %3201 = vst.msk [vmem:[%s5315_s21 + $0x10] sm:$0xff] %vm806_vm1, %v3169_v17  ;;  %v5808_v17 = vmax.f32 %v5807_v39, 0.0 }
 0x271   : > { %v3094_v51 = vpop.f32.mrf.mxu2 }
 0x272   : > { %v3095_v6 = vadd.f32 %v5306_v59, %v3094_v51 }
 0x274   : > { %v3170_v36 = vadd.f32 %v3434_v3, %v3095_v6  ;;  %v2831_v3 = vpop.permute.xlu2 %2830 }
 0x275   : > { %v2823_v25 = vpop.permute.xlu0 %2822  ;;  %v2898_v52 = vsel %vm1141_vm4, %v5812_v60, %v2831_v3  ;;  %v3440_v3 = vld [vmem:[%s3603_s26 + $0x48] sm:$0xff] }
 0x276   : > { %3202 = vst.msk [vmem:[%s5315_s21 + $0x18] sm:$0xff] %vm806_vm1, %v3170_v36  ;;  %v2894_v30 = vsel %vm1141_vm4, %v5796_v15, %v2823_v25 }
 0x277   : > { %v2930_v2 = vmul.f32 %v5278_v24, %v2894_v30 }
 0x279   : > { %v3097_v26 = vpop.f32.mrf.mxu2  ;;  %v2966_v58 = vadd.f32 %v5299_v55, %v2930_v2 }
 0x27a   : > { %v3098_v32 = vadd.f32 %v5306_v59, %v3097_v26  ;;  %v5809_v26 = vld [vmem:[#allocation28_spill] sm:$0xff] }
 0x27b   : > { %v2998_v11 = vmax.f32 %v2966_v58, 0.0  ;;  %v5810_v1 = vmax.f32 %v5809_v26, 0.0 }
 0x27c   : > { %v2825_v53 = vpop.permute.xlu1 %2824  ;;  %v3171_v35 = vadd.f32 %v3435_v31, %v3098_v32 }
 0x27d   : > { %v2895_v41 = vsel %vm1141_vm4, %v5800_v7, %v2825_v53  ;;  %v3438_v53 = vld [vmem:[%s3603_s26 + $0x38] sm:$0xff] }
 0x27e   : > { %v2931_v4 = vmul.f32 %v5278_v24, %v2895_v41  ;;  %3203 = vst.msk [vmem:[%s5315_s21 + $0x20] sm:$0xff] %vm806_vm1, %v3171_v35 }
 0x280   : > { %v2967_v12 = vadd.f32 %v5299_v55, %v2931_v4  ;;  %v2934_v4 = vmul.f32 %v5278_v24, %v2898_v52 }
 0x281   : > { %v3099_v28 = vpop.f32.mrf.mxu2 }
 0x282   : > { %v2999_v18 = vmax.f32 %v2967_v12, 0.0  ;;  %v3100_v63 = vadd.f32 %v5306_v59, %v3099_v28  ;;  %v2821_v12 = vpop.permute.xlu2 %2820  ;;  %v5813_v28 = vld [vmem:[#allocation16_spill] sm:$0xff]  ;;  %v2970_v46 = vadd.f32 %v5299_v55, %v2934_v4 }
 0x283   : > { %v2813_v5 = vpop.permute.xlu0 %2812 }
 0x284   : > { %v2889_v56 = vsel %vm1141_vm4, %v5802_v19, %v2813_v5  ;;  %v3018_v62 = vpack.c.bf16 %v2999_v18, %v2998_v11  ;;  %v3172_v10 = vadd.f32 %v3436_v54, %v3100_v63  ;;  %v5814_v11 = vmax.f32 %v5813_v28, 0.0  ;;  %v5815_v19 = vld [vmem:[#allocation37_spill] sm:$0xff] }
 0x285   : > { %v2925_v13 = vmul.f32 %v5278_v24, %v2889_v56  ;;  %v5816_v56 = vmax.f32 %v5815_v19, 0.0  ;;  %v3002_v48 = vmax.f32 %v2970_v46, 0.0  ;;  %v3446_v19 = vld [vmem:[%s3603_s26 + $0x78] sm:$0xff] }
 0x286   : > { %3380 = vmatmul.msk.bf16.vlgmr.msra.gmra.mxu3 %vm967_vm3, %v3018_v62  ;;  %3204 = vst.msk [vmem:[%s5315_s21 + $0x28] sm:$0xff] %vm806_vm1, %v3172_v10 }
 0x287   : > { %v2961_v14 = vadd.f32 %v5299_v55, %v2925_v13  ;;  %v2893_v45 = vsel %vm1141_vm4, %v5816_v56, %v2821_v12 }
 0x288   : > { %v2929_v16 = vmul.f32 %v5278_v24, %v2893_v45 }
 0x289   : > { %v2993_v23 = vmax.f32 %v2961_v14, 0.0  ;;  %v3102_v42 = vpop.f32.mrf.mxu2  ;;  %v5817_v14 = vld [vmem:[#allocation32_spill] sm:$0xff] }
 0x28a   : > { %v3103_v20 = vadd.f32 %v5306_v59, %v3102_v42  ;;  %v5818_v33 = vmax.f32 %v5817_v14, 0.0  ;;  %v2965_v9 = vadd.f32 %v5299_v55, %v2929_v16  ;;  %v3448_v14 = vld [vmem:[%s3603_s26 + $0x88] sm:$0xff] }
 0x28b   : > { %v2827_v29 = vpop.permute.xlu1 %2826  ;;  %v3015_v47 = vpack.c.bf16 %v2993_v23, %v2992_v34  ;;  %v2815_v22 = vpop.permute.xlu0 %2814  ;;  %v3439_v23 = vld [vmem:[%s3603_s26 + $0x40] sm:$0xff] }
 0x28c   : > { %v2896_v43 = vsel %vm1141_vm4, %v5806_v8, %v2827_v29  ;;  %v3173_v40 = vadd.f32 %v3437_v61, %v3103_v20  ;;  %v2890_v51 = vsel %vm1141_vm4, %v5808_v17, %v2815_v22  ;;  %v5819_v22 = vld [vmem:[#allocation18_spill] sm:$0xff] }
 0x28d   : > { %v2932_v0 = vmul.f32 %v5278_v24, %v2896_v43  ;;  %3377 = vmatmul.msk.bf16.gmra.mxu2 %vm967_vm3, %v3015_v47  ;;  %v2926_v36 = vmul.f32 %v5278_v24, %v2890_v51  ;;  %v2997_v51 = vmax.f32 %v2965_v9, 0.0 }
 0x28e   : > { %3205 = vst.msk [vmem:[%s5315_s21 + $0x30] sm:$0xff] %vm806_vm1, %v3173_v40 }
 0x28f   : > { %v2968_v49 = vadd.f32 %v5299_v55, %v2932_v0  ;;  %v2962_v35 = vadd.f32 %v5299_v55, %v2926_v36  ;;  %v5820_v0 = vmax.f32 %v5819_v22, 0.0 }
 0x291   : > { %v3000_v6 = vmax.f32 %v2968_v49, 0.0  ;;  %v3104_v25 = vpop.f32.mrf.mxu2  ;;  %v2994_v41 = vmax.f32 %v2962_v35, 0.0  ;;  %v5821_v49 = vld [vmem:[#allocation20_spill] sm:$0xff] }
 0x292   : > { %v3105_v15 = vadd.f32 %v5306_v59, %v3104_v25  ;;  %v5822_v39 = vmax.f32 %v5821_v49, 0.0 }
 0x293   : > { %v3019_v32 = vpack.c.bf16 %v3001_v27, %v3000_v6 }
 0x294   : > { %v2817_v30 = vpop.permute.xlu1 %2816  ;;  %v3174_v31 = vadd.f32 %v3438_v53, %v3105_v15 }
 0x295   : > { %v2891_v2 = vsel %vm1141_vm4, %v5810_v1, %v2817_v30 }
 0x296   : > { %v2927_v50 = vmul.f32 %v5278_v24, %v2891_v2  ;;  %3381 = vmatmul.msk.bf16.gmra.mxu3 %vm967_vm3, %v3019_v32  ;;  %3206 = vst.msk [vmem:[%s5315_s21 + $0x38] sm:$0xff] %vm806_vm1, %v3174_v31  ;;  %v3441_v32 = vld [vmem:[%s3603_s26 + $0x50] sm:$0xff] }
 0x298   : > { %v2963_v7 = vadd.f32 %v5299_v55, %v2927_v50 }
 0x29a   : > { %v2995_v58 = vmax.f32 %v2963_v7, 0.0  ;;  %v3443_v7 = vld [vmem:[%s3603_s26 + $0x60] sm:$0xff] }
 0x29b   : > { %v2833_v38 = vpop.permute.xlu0 %2832 }
 0x29c   : > { %v2899_v18 = vsel %vm1141_vm4, %v5814_v11, %v2833_v38  ;;  %v3016_v5 = vpack.c.bf16 %v2995_v58, %v2994_v41  ;;  %v3444_v38 = vld [vmem:[%s3603_s26 + $0x68] sm:$0xff] }
 0x29d   : > { %v2935_v63 = vmul.f32 %v5278_v24, %v2899_v18  ;;  %v3445_v18 = vld [vmem:[%s3603_s26 + $0x70] sm:$0xff] }
 0x29e   : > { %3378 = vmatmul.msk.bf16.gmra.mxu2 %vm967_vm3, %v3016_v5 }
 0x29f   : > { %v2971_v37 = vadd.f32 %v5299_v55, %v2935_v63 }
 0x2a0   : > { %v3107_v62 = vpop.f32.mrf.mxu2  ;;  %v2819_v13 = vpop.permute.xlu1 %2818 }
 0x2a1   : > { %v3108_v54 = vadd.f32 %v5306_v59, %v3107_v62  ;;  %v3003_v10 = vmax.f32 %v2971_v37, 0.0  ;;  %v2892_v44 = vsel %vm1141_vm4, %v5818_v33, %v2819_v13  ;;  %v3447_v62 = vld [vmem:[%s3603_s26 + $0x80] sm:$0xff] }
 0x2a2   : > { %v2928_v34 = vmul.f32 %v5278_v24, %v2892_v44 }
 0x2a3   : > { %v3175_v42 = vadd.f32 %v3439_v23, %v3108_v54  ;;  %v3020_v20 = vpack.c.bf16 %v3003_v10, %v3002_v48 }
 0x2a4   : > { %v2964_v29 = vadd.f32 %v5299_v55, %v2928_v34  ;;  %v2835_v47 = vpop.permute.xlu0 %2834  ;;  %v3449_v34 = vld [vmem:[%s3603_s26 + $0xc0] sm:$0xff] }
 0x2a5   : > { %3207 = vst.msk [vmem:[%s5315_s21 + $0x40] sm:$0xff] %vm806_vm1, %v3175_v42  ;;  %v2900_v61 = vsel %vm1141_vm4, %v5820_v0, %v2835_v47  ;;  %v3450_v47 = vld [vmem:[%s3603_s26 + $0x90] sm:$0xff] }
 0x2a6   : > { %3382 = vmatmul.msk.bf16.gmra.mxu3 %vm967_vm3, %v3020_v20  ;;  %v2996_v43 = vmax.f32 %v2964_v29, 0.0  ;;  %v2936_v25 = vmul.f32 %v5278_v24, %v2900_v61 }
 0x2a8   : > { %v3109_v8 = vpop.f32.mrf.mxu2  ;;  %v2837_v40 = vpop.permute.xlu1 %2836  ;;  %v3017_v27 = vpack.c.bf16 %v2997_v51, %v2996_v43  ;;  %v2972_v30 = vadd.f32 %v5299_v55, %v2936_v25  ;;  %v3454_v25 = vld [vmem:[%s3603_s26 + $0xa0] sm:$0xff] }
 0x2a9   : > { %v3110_v21 = vadd.f32 %v5306_v59, %v3109_v8  ;;  %v2901_v17 = vsel %vm1141_vm4, %v5822_v39, %v2837_v40  ;;  %v3451_v8 = vld [vmem:[%s3603_s26 + $0xc8] sm:$0xff]  ;;  %v3452_v40 = vld [vmem:[%s3603_s26 + $0x98] sm:$0xff]  ;;  %v3453_v39 = vld [vmem:[%s3603_s26 + $0xd0] sm:$0xff] }
 0x2aa   : > { %v2937_v6 = vmul.f32 %v5278_v24, %v2901_v17  ;;  %v3004_v24 = vmax.f32 %v2972_v30, 0.0 }
 0x2ab   : > { %v3176_v36 = vadd.f32 %v3440_v3, %v3110_v21 }
 0x2ac   : > { %v2973_v15 = vadd.f32 %v5299_v55, %v2937_v6  ;;  %v3442_v55 = vld [vmem:[%s3603_s26 + $0x58] sm:$0xff] }
 0x2ad   : > { %3208 = vst.msk [vmem:[%s5315_s21 + $0x48] sm:$0xff] %vm806_vm1, %v3176_v36 }
 0x2ae   : > { %3379 = vmatmul.msk.bf16.gmra.mxu2 %vm967_vm3, %v3017_v27  ;;  %v3005_v2 = vmax.f32 %v2973_v15, 0.0  ;;  %v3455_v15 = vld [vmem:[%s3603_s26 + $0xd8] sm:$0xff] }
 0x2b0   : > { %v3112_v26 = vpop.f32.mrf.mxu2  ;;  %v3021_v31 = vpack.c.bf16 %v3005_v2, %v3004_v24 }
 0x2b1   : > { %v3113_v1 = vadd.f32 %v5306_v59, %v3112_v26 }
 0x2b3   : > { %v3177_v53 = vadd.f32 %v3441_v32, %v3113_v1 }
 0x2b5   : > { %3209 = vst.msk [vmem:[%s5315_s21 + $0x50] sm:$0xff] %vm806_vm1, %v3177_v53  ;;  %v3456_v53 = vld [vmem:[%s3603_s26 + $0xa8] sm:$0xff] }
 0x2b6   : > { %3383 = vmatmul.msk.bf16.gmra.mxu3 %vm967_vm3, %v3021_v31  ;;  %v3457_v31 = vld [vmem:[%s3603_s26 + $0xe0] sm:$0xff] }
 0x2b8   : > { %v3114_v35 = vpop.f32.mrf.mxu2 }
 0x2b9   : > { %v3115_v50 = vadd.f32 %v5306_v59, %v3114_v35 }
 0x2bb   : > { %v3178_v57 = vadd.f32 %v3442_v55, %v3115_v50 }
 0x2bd   : > { %3210 = vst.msk [vmem:[%s5315_s21 + $0x58] sm:$0xff] %vm806_vm1, %v3178_v57 }
 0x2c0   : > { %v3117_v60 = vpop.f32.mrf.mxu2 }
 0x2c1   : > { %v3118_v52 = vadd.f32 %v5306_v59, %v3117_v60 }
 0x2c3   : > { %v3179_v41 = vadd.f32 %v3443_v7, %v3118_v52  ;;  %v3458_v52 = vld [vmem:[%s3603_s26 + $0xb0] sm:$0xff] }
 0x2c5   : > { %3211 = vst.msk [vmem:[%s5315_s21 + $0x60] sm:$0xff] %vm806_vm1, %v3179_v41  ;;  %v3459_v41 = vld [vmem:[%s3603_s26 + $0xe8] sm:$0xff] }
 0x2c8   : > { %v3119_v58 = vpop.f32.mrf.mxu2 }
 0x2c9   : > { %v3120_v4 = vadd.f32 %v5306_v59, %v3119_v58 }
 0x2cb   : > { %v3180_v12 = vadd.f32 %v3444_v38, %v3120_v4 }
 0x2cd   : > { %3212 = vst.msk [vmem:[%s5315_s21 + $0x68] sm:$0xff] %vm806_vm1, %v3180_v12 }
 0x2d0   : > { %v3122_v28 = vpop.f32.mrf.mxu2 }
 0x2d1   : > { %v3123_v11 = vadd.f32 %v5306_v59, %v3122_v28 }
 0x2d3   : > { %v3181_v5 = vadd.f32 %v3445_v18, %v3123_v11  ;;  %v3460_v11 = vld [vmem:[%s3603_s26 + $0xb8] sm:$0xff] }
 0x2d5   : > { %3213 = vst.msk [vmem:[%s5315_s21 + $0x70] sm:$0xff] %vm806_vm1, %v3181_v5  ;;  %v3461_v5 = vld [vmem:[%s3603_s26 + $0xf0] sm:$0xff] }
 0x2d8   : > { %v3124_v63 = vpop.f32.mrf.mxu2 }
 0x2d9   : > { %v3125_v46 = vadd.f32 %v5306_v59, %v3124_v63 }
 0x2db   : > { %v3182_v56 = vadd.f32 %v3446_v19, %v3125_v46 }
 0x2dd   : > { %3214 = vst.msk [vmem:[%s5315_s21 + $0x78] sm:$0xff] %vm806_vm1, %v3182_v56  ;;  %v3462_v56 = vld [vmem:[%s3603_s26 + $0xf8] sm:$0xff] }
 0x2e0   : > { %v3127_v45 = vpop.f32.mrf.mxu2 }
 0x2e1   : > { %v3128_v37 = vadd.f32 %v5306_v59, %v3127_v45 }
 0x2e3   : > { %v3183_v13 = vadd.f32 %v3447_v62, %v3128_v37 }
 0x2e5   : > { %3215 = vst.msk [vmem:[%s5315_s21 + $0x80] sm:$0xff] %vm806_vm1, %v3183_v13 }
 0x2e8   : > { %v3129_v54 = vpop.f32.mrf.mxu2 }
 0x2e9   : > { %v3130_v10 = vadd.f32 %v5306_v59, %v3129_v54 }
 0x2eb   : > { %v3184_v33 = vadd.f32 %v3448_v14, %v3130_v10 }
 0x2ed   : > { %3216 = vst.msk [vmem:[%s5315_s21 + $0x88] sm:$0xff] %vm806_vm1, %v3184_v33 }
 0x309   : > { %v3147_v44 = vpop.f32.mrf.mxu3 }
 0x30a   : > { %v3148_v16 = vadd.f32 %v5306_v59, %v3147_v44 }
 0x30c   : > { %v3191_v23 = vadd.f32 %v3449_v34, %v3148_v16 }
 0x30e   : > { %3223 = vst.msk [vmem:[%s5315_s21 + $0xc0] sm:$0xff] %vm806_vm1, %v3191_v23 }
 0x310   : > { %v3132_v42 = vpop.f32.mrf.mxu2 }
 0x311   : > { %v3133_v48 = vadd.f32 %v5306_v59, %v3132_v42  ;;  %v3149_v29 = vpop.f32.mrf.mxu3 }
 0x312   : > { %v3150_v9 = vadd.f32 %v5306_v59, %v3149_v29 }
 0x313   : > { %v3185_v20 = vadd.f32 %v3450_v47, %v3133_v48 }
 0x314   : > { %v3192_v43 = vadd.f32 %v3451_v8, %v3150_v9 }
 0x315   : > { %3217 = vst.msk [vmem:[%s5315_s21 + $0x90] sm:$0xff] %vm806_vm1, %v3185_v20 }
 0x316   : > { %3224 = vst.msk [vmem:[%s5315_s21 + $0xc8] sm:$0xff] %vm806_vm1, %v3192_v43 }
 0x318   : > { %v3134_v22 = vpop.f32.mrf.mxu2 }
 0x319   : > { %v3135_v0 = vadd.f32 %v5306_v59, %v3134_v22  ;;  %v3152_v61 = vpop.f32.mrf.mxu3 }
 0x31a   : > { %v3153_v49 = vadd.f32 %v5306_v59, %v3152_v61 }
 0x31b   : > { %v3186_v21 = vadd.f32 %v3452_v40, %v3135_v0 }
 0x31c   : > { %v3193_v17 = vadd.f32 %v3453_v39, %v3153_v49 }
 0x31d   : > { %3218 = vst.msk [vmem:[%s5315_s21 + $0x98] sm:$0xff] %vm806_vm1, %v3186_v21 }
 0x31e   : > { %3225 = vst.msk [vmem:[%s5315_s21 + $0xd0] sm:$0xff] %vm806_vm1, %v3193_v17 }
 0x321   : > { %v3137_v51 = vpop.f32.mrf.mxu2  ;;  %v3154_v3 = vpop.f32.mrf.mxu3 }
 0x322   : > { %v3138_v6 = vadd.f32 %v5306_v59, %v3137_v51  ;;  %v3155_v36 = vadd.f32 %v5306_v59, %v3154_v3 }
 0x324   : > { %v3187_v27 = vadd.f32 %v3454_v25, %v3138_v6  ;;  %v3194_v30 = vadd.f32 %v3455_v15, %v3155_v36 }
 0x326   : > { %3219 = vst.msk [vmem:[%s5315_s21 + $0xa0] sm:$0xff] %vm806_vm1, %v3187_v27 }
 0x327   : > { %3226 = vst.msk [vmem:[%s5315_s21 + $0xd8] sm:$0xff] %vm806_vm1, %v3194_v30 }
 0x329   : > { %v3139_v26 = vpop.f32.mrf.mxu2  ;;  %v3157_v2 = vpop.f32.mrf.mxu3 }
 0x32a   : > { %v3140_v1 = vadd.f32 %v5306_v59, %v3139_v26  ;;  %v3158_v32 = vadd.f32 %v5306_v59, %v3157_v2 }
 0x32c   : > { %v3188_v24 = vadd.f32 %v3456_v53, %v3140_v1  ;;  %v3195_v35 = vadd.f32 %v3457_v31, %v3158_v32 }
 0x32e   : > { %3220 = vst.msk [vmem:[%s5315_s21 + $0xa8] sm:$0xff] %vm806_vm1, %v3188_v24 }
 0x32f   : > { %3227 = vst.msk [vmem:[%s5315_s21 + $0xe0] sm:$0xff] %vm806_vm1, %v3195_v35 }
 0x331   : > { %v3142_v50 = vpop.f32.mrf.mxu2  ;;  %v3159_v57 = vpop.f32.mrf.mxu3 }
 0x332   : > { %v3143_v55 = vadd.f32 %v5306_v59, %v3142_v50  ;;  %v3160_v60 = vadd.f32 %v5306_v59, %v3159_v57 }
 0x334   : > { %v3189_v7 = vadd.f32 %v3458_v52, %v3143_v55  ;;  %v3196_v58 = vadd.f32 %v3459_v41, %v3160_v60 }
 0x336   : > { %3221 = vst.msk [vmem:[%s5315_s21 + $0xb0] sm:$0xff] %vm806_vm1, %v3189_v7 }
 0x337   : > { %3228 = vst.msk [vmem:[%s5315_s21 + $0xe8] sm:$0xff] %vm806_vm1, %v3196_v58 }
 0x339   : > { %v3144_v4 = vpop.f32.mrf.mxu2  ;;  %v3162_v12 = vpop.f32.mrf.mxu3 }
 0x33a   : > { %v3145_v38 = vadd.f32 %v5306_v59, %v3144_v4  ;;  %v3163_v28 = vadd.f32 %v5306_v59, %v3162_v12 }
 0x33c   : > { %v3190_v18 = vadd.f32 %v3460_v11, %v3145_v38  ;;  %v3197_v63 = vadd.f32 %v3461_v5, %v3163_v28 }
 0x33e   : > { %3222 = vst.msk [vmem:[%s5315_s21 + $0xb8] sm:$0xff] %vm806_vm1, %v3190_v18 }
 0x33f   : > { %3229 = vst.msk [vmem:[%s5315_s21 + $0xf0] sm:$0xff] %vm806_vm1, %v3197_v63 }
 0x341   : > { %v3164_v46 = vpop.f32.mrf.mxu3 }
 0x342   : > { %v3165_v19 = vadd.f32 %v5306_v59, %v3164_v46 }
 0x344   : > { %v3198_v45 = vadd.f32 %v3462_v56, %v3165_v19 }
 0x346   : > { %3230 = vst.msk [vmem:[%s5315_s21 + $0xf8] sm:$0xff] %vm806_vm1, %v3198_v45 }
 0x347 PF: > { %s25_s1 = sadd.s32 1, %s3485_s1   ;;  %s5823_s16 = smov %s3481_s17 }
 0x348   : > { %p22_p5 = scmp.ge.s32.totalorder %s25_s1, 4   ;;  %s5824_s17 = smov %s5826_s18 }
 0x34a   :  { %24 = sbr.rel (!%p22_p5) target bundleno = 2 (0x2), region = 116 }

</bundles_post_ra>
